<compile_context>
chip_gen: v7x
topology: tpu7x:2x2x1
jax: 0.10.0
libtpu: 0.0.40
codegen_flags: <defaults>
</compile_context>

<pallas_src>
import functools

import jax
import jax.numpy as jnp
import numpy as np
from jax import lax
from jax.experimental import pallas as pl
from jax.experimental.pallas import tpu as pltpu


def _round_up(x, m):
    return ((x + m - 1) // m) * m


def _tensorcores_per_chip():
    """Best-effort detection: v7x has 2 TensorCores per chip, v5e/v6e have 1."""
    try:
        kind = jax.devices()[0].device_kind.lower()
    except Exception:  # pragma: no cover - defensive
        return 1
    return 2 if "v7" in kind else 1


# ----------------------------------------------------------------------------
# Fused kernel: staged stacked-K conv + max-pool + MXU column-select + BN + LeakyReLU
# ----------------------------------------------------------------------------
def _fused_conv_pool_bn_lrelu_kernel(x_ref, w_ref, s_ref, scale_ref, shift_ref,
                                     o_ref, xs_ref, acc_ref, *,
                                     tap_offsets, pool_offsets, v_slab,
                                     l_conv, l_sel, cin_p, group, neg_slope):
    # x_ref:     (1, Cin_p, LANE_X)   flattened padded volumes of `group` batch elems
    # w_ref:     (Cout_p, KT*Cin_p)   stacked per-tap conv weights
    # s_ref:     (L_SEL, LP_OUT)      0/1 selection matrix (valid pooled columns)
    # scale/shift: (Cout_p, 1)        folded BatchNorm affine
    # o_ref:     (group, Cout_p, LP_OUT)
    # xs_ref:    (KT*Cin_p, L_CONV)   staged conv operand (scratch)
    # acc_ref:   (Cout_p, L_CONV)     conv output slab (scratch)

    # --- stage the 27 tap-shifted slices once (rows are fully overwritten) ---
    for t, off in enumerate(tap_offsets):
        xs_ref[t * cin_p:(t + 1) * cin_p, :] = x_ref[0, :, off:off + l_conv]

    # --- single stacked-K matmul on the MXU (K = KT*Cin_p) ---
    acc_ref[...] = jnp.dot(w_ref[...], xs_ref[...],
                           preferred_element_type=jnp.float32)

    scale = scale_ref[...]
    shift = shift_ref[...]

    # --- per batch element: 2x2x2 max pool, MXU compaction, BN affine, LeakyReLU ---
    for b in range(group):
        base = b * v_slab
        p0 = pool_offsets[0]
        m = acc_ref[:, base + p0:base + p0 + l_sel]
        for poff in pool_offsets[1:]:
            m = jnp.maximum(m, acc_ref[:, base + poff:base + poff + l_sel])
        # Exact gather of the valid pooled columns via 0/1 matmul (MXU is idle here).
        compact = jnp.dot(m, s_ref[...], preferred_element_type=jnp.float32)
        y = compact * scale + shift
        o_ref[b] = jnp.where(y >= 0.0, y, neg_slope * y)


# ----------------------------------------------------------------------------
# Build-time preparation (hoisted out of the per-forward path) + jitted forward
# ----------------------------------------------------------------------------
def make_conv_layer_forward(params, in_shape, *, kernel=(3, 1, 1), pooling=(2, 2, 0),
                            neg_slope=0.01, eps=1e-5):
    """Returns a jitted forward(x) equivalent to ConvLayer.forward in eval mode."""
    _, k_stride, k_pad = kernel
    p_size, p_stride, p_pad = pooling
    assert p_pad == 0, "only pool padding 0 implemented for this config"

    N, Cin, D, H, W = in_shape
    w_np = np.asarray(params["w"], np.float32)            # (Cout, Cin, KD, KH, KW)
    Cout, Cw, KD, KH, KW = w_np.shape
    assert Cw == Cin
    KT = KD * KH * KW

    Dpad, Hpad, Wpad = D + 2 * k_pad, H + 2 * k_pad, W + 2 * k_pad
    Do = (Dpad - KD) // k_stride + 1
    Ho = (Hpad - KH) // k_stride + 1
    Wo = (Wpad - KW) // k_stride + 1
    Dp = (Do - p_size) // p_stride + 1
    Hp = (Ho - p_size) // p_stride + 1
    Wp = (Wo - p_size) // p_stride + 1
    n_valid = Dp * Hp * Wp

    HW = Hpad * Wpad
    V = Dpad * HW                                          # flat padded volume per batch

    # Static flat-index offsets for conv taps and pool window (in padded-input space).
    tap_offsets = tuple(kd * HW + kh * Wpad + kw
                        for kd in range(KD) for kh in range(KH) for kw in range(KW))
    pool_offsets = tuple(k_stride * (ad * HW + ah * Wpad + aw)
                         for ad in range(p_size) for ah in range(p_size)
                         for aw in range(p_size))
    max_pool_base = k_stride * p_stride * ((Dp - 1) * HW + (Hp - 1) * Wpad + (Wp - 1))
    max_pool_off = max(pool_offsets)
    max_tap_off = max(tap_offsets)

    Cin_p = _round_up(Cin, 8)
    Cout_p = _round_up(Cout, 8)
    KTC = KT * Cin_p

    # Batch grouping: fold batch into lanes on 1-TC chips; one batch per step on v7x.
    cores = _tensorcores_per_chip()
    if cores > 1 and N % cores == 0:
        num_groups = cores          # v7x: both TensorCores get a batch element
    else:
        num_groups = 1              # v5e/v6e: single grid step, batch folded into lanes
    G = N // num_groups
    N_pad = num_groups * G

    V_SLAB = V                                             # per-batch lane slab width
    L_SEL = _round_up(max_pool_base + 1, 128)              # pool/select window length
    L_CONV = _round_up((G - 1) * V_SLAB + max_pool_off + L_SEL, 128)
    LANE_X = _round_up(max_tap_off + L_CONV, 128)          # >= G*V by construction
    LP_OUT = _round_up(n_valid, 128)

    # ---- hoisted parameter preprocessing (runs once) ----
    # weights -> (Cout_p, KT*Cin_p), row order [tap, channel] to match the staging order
    wt = np.transpose(w_np, (0, 2, 3, 4, 1)).reshape(Cout, KT, Cin)
    wt = np.pad(wt, ((0, Cout_p - Cout), (0, 0), (0, Cin_p - Cin)))
    w_flat = jnp.asarray(wt.reshape(Cout_p, KTC))

    gamma = np.asarray(params["gamma"], np.float32)
    beta = np.asarray(params["beta"], np.float32)
    mean = np.asarray(params["mean"], np.float32)
    var = np.asarray(params["var"], np.float32)
    scale_np = gamma / np.sqrt(var + eps)
    shift_np = beta - mean * scale_np
    scale = jnp.asarray(np.pad(scale_np, (0, Cout_p - Cout)).reshape(Cout_p, 1))
    shift = jnp.asarray(np.pad(shift_np, (0, Cout_p - Cout)).reshape(Cout_p, 1))

    # 0/1 selection matrix: valid pooled column -> compact output column
    s_np = np.zeros((L_SEL, LP_OUT), np.float32)
    for dp in range(Dp):
        for hp in range(Hp):
            for wp in range(Wp):
                q = k_stride * p_stride * (dp * HW + hp * Wpad + wp)
                s_np[q, (dp * Hp + hp) * Wp + wp] = 1.0
    s_mat = jnp.asarray(s_np)

    kernel_fn = functools.partial(
        _fused_conv_pool_bn_lrelu_kernel,
        tap_offsets=tap_offsets, pool_offsets=pool_offsets, v_slab=V_SLAB,
        l_conv=L_CONV, l_sel=L_SEL, cin_p=Cin_p, group=G, neg_slope=neg_slope)

    pallas_fn = pl.pallas_call(
        kernel_fn,
        out_shape=jax.ShapeDtypeStruct((N_pad, Cout_p, LP_OUT), jnp.float32),
        grid=(num_groups,),
        in_specs=[
            pl.BlockSpec((1, Cin_p, LANE_X), lambda g: (g, 0, 0)),
            pl.BlockSpec((Cout_p, KTC), lambda g: (0, 0)),
            pl.BlockSpec((L_SEL, LP_OUT), lambda g: (0, 0)),
            pl.BlockSpec((Cout_p, 1), lambda g: (0, 0)),
            pl.BlockSpec((Cout_p, 1), lambda g: (0, 0)),
        ],
        out_specs=pl.BlockSpec((G, Cout_p, LP_OUT), lambda g: (g, 0, 0)),
        scratch_shapes=[
            pltpu.VMEM((KTC, L_CONV), jnp.float32),   # staged stacked-K operand
            pltpu.VMEM((Cout_p, L_CONV), jnp.float32),  # conv output slab
        ],
        compiler_params=pltpu.CompilerParams(
            dimension_semantics=("parallel",)),
    )

    @jax.jit
    def forward(x):
        x = x.astype(jnp.float32)
        # zero padding is load-bearing: conv halo + padded channels/lanes must be zero
        xp = jnp.pad(x, ((0, 0), (0, 0),
                         (k_pad, k_pad), (k_pad, k_pad), (k_pad, k_pad)))
        xf = xp.reshape(N, Cin, V)
        xf = jnp.pad(xf, ((0, N_pad - N), (0, Cin_p - Cin), (0, 0)))
        # fold the batch group into the lane axis: (num_groups, Cin_p, G*V)
        slabs = xf.reshape(num_groups, G, Cin_p, V)
        slabs = jnp.transpose(slabs, (0, 2, 1, 3)).reshape(num_groups, Cin_p, G * V)
        slabs = jnp.pad(slabs, ((0, 0), (0, 0), (0, LANE_X - G * V)))

        y = pallas_fn(slabs, w_flat, s_mat, scale, shift)   # (N_pad, Cout_p, LP_OUT)
        out = y[:N, :Cout, :n_valid].reshape(N, Cout, Dp, Hp, Wp)
        # Dropout is identity in eval mode.
        return out

    return forward


# ----------------------------------------------------------------------------
# Reference (pure JAX) for validation
# ----------------------------------------------------------------------------
def _reference(x_ncdhw, params, kernel, pooling):
    _, k_stride, k_pad = kernel
    p_size, p_stride, _ = pooling
    y = lax.conv_general_dilated(
        x_ncdhw, params["w"],
        window_strides=(k_stride,) * 3,
        padding=[(k_pad, k_pad)] * 3,
        dimension_numbers=("NCDHW", "OIDHW", "NCDHW"))
    y = lax.reduce_window(y, -jnp.inf, lax.max,
                          window_dimensions=(1, 1, p_size, p_size, p_size),
                          window_strides=(1, 1, p_stride, p_stride, p_stride),
                          padding="VALID")
    eps = 1e-5
    g = params["gamma"][None, :, None, None, None]
    b = params["beta"][None, :, None, None, None]
    m = params["mean"][None, :, None, None, None]
    v = params["var"][None, :, None, None, None]
    y = (y - m) / jnp.sqrt(v + eps) * g + b
    return jnp.where(y >= 0, y, 0.01 * y)


# ----------------------------------------------------------------------------
if __name__ == "__main__":
    # Module config: ConvLayer(in_channels=4, out_channels=8, kernel=(3,1,1),
    #                          pooling=(2,2,0), drop_rate=0.5, relu_type='leaky')
    in_channels, out_channels = 4, 8
    kernel = (3, 1, 1)      # (size, stride, padding)
    pooling = (2, 2, 0)     # (size, stride, padding)

    key = jax.random.PRNGKey(0)
    kx, kw, kg, kb, km, kv = jax.random.split(key, 6)

    # input: N=2, Cin=4, D=H=W=8  (NCDHW, as PyTorch Conv3d expects)
    x = jax.random.normal(kx, (2, in_channels, 8, 8, 8), dtype=jnp.float32)

    params = {
        "w": 0.1 * jax.random.normal(kw, (out_channels, in_channels, 3, 3, 3), jnp.float32),
        "gamma": 1.0 + 0.1 * jax.random.normal(kg, (out_channels,), jnp.float32),
        "beta": 0.1 * jax.random.normal(kb, (out_channels,), jnp.float32),
        "mean": 0.1 * jax.random.normal(km, (out_channels,), jnp.float32),
        "var": jax.random.uniform(kv, (out_channels,), jnp.float32, 0.5, 1.5),
    }

    # Build once (parameter prep + selection matrix hoisted out of the forward path).
    forward = make_conv_layer_forward(x, params, kernel=kernel, pooling=pooling) \
        if False else make_conv_layer_forward(params, x.shape, kernel=kernel, pooling=pooling)

    out = jax.block_until_ready(forward(x))

    ref = jax.block_until_ready(_reference(x, params, kernel, pooling))
    np.testing.assert_allclose(np.asarray(out), np.asarray(ref), rtol=1e-4, atol=1e-4)

    assert out.shape == (2, out_channels, 4, 4, 4), out.shape
    print("KERNEL_OK")
</pallas_src>

<mosaic_0001>
module attributes {stable_mosaic.version = 11 : i64} {
  func.func @_fused_conv_pool_bn_lrelu_kernel(%arg0: i32, %arg1: memref<1x8x2176xf32, #tpu.memory_space<vmem>>, %arg2: memref<8x216xf32, #tpu.memory_space<vmem>>, %arg3: memref<768x128xf32, #tpu.memory_space<vmem>>, %arg4: memref<8x1xf32, #tpu.memory_space<vmem>>, %arg5: memref<8x1xf32, #tpu.memory_space<vmem>>, %arg6: memref<2x8x128xf32, #tpu.memory_space<vmem>>, %arg7: memref<216x1920xf32, #tpu.memory_space<vmem>>, %arg8: memref<8x1920xf32, #tpu.memory_space<vmem>>) attributes {dimension_semantics = [#tpu.dimension_semantics<parallel>], iteration_bounds = array<i64: 1>, scalar_prefetch = 0 : i64, scratch_operands = 2 : i64, tpu.core_type = #tpu.core_type<tc>, window_params = [{transform_indices = @transform_0, window_bounds = array<i64: 1, 8, 2176>}, {pipeline_mode = #tpu.pipeline_mode<synchronous>, transform_indices = @transform_1, window_bounds = array<i64: 8, 216>}, {pipeline_mode = #tpu.pipeline_mode<synchronous>, transform_indices = @transform_2, window_bounds = array<i64: 768, 128>}, {pipeline_mode = #tpu.pipeline_mode<synchronous>, transform_indices = @transform_3, window_bounds = array<i64: 8, 1>}, {pipeline_mode = #tpu.pipeline_mode<synchronous>, transform_indices = @transform_4, window_bounds = array<i64: 8, 1>}, {transform_indices = @transform_5, window_bounds = array<i64: 2, 8, 128>}]} {
    %c0 = arith.constant 0 : index
    %c0_0 = arith.constant 0 : index
    %c0_1 = arith.constant 0 : index
    %0 = vector.load %arg1[%c0, %c0_0, %c0_1] : memref<1x8x2176xf32, #tpu.memory_space<vmem>>, vector<1x8x1920xf32>
    %1 = vector.shape_cast %0 : vector<1x8x1920xf32> to vector<8x1920xf32>
    %c0_2 = arith.constant 0 : index
    %c0_3 = arith.constant 0 : index
    %2 = vector.load %arg7[%c0_2, %c0_3] : memref<216x1920xf32, #tpu.memory_space<vmem>>, vector<8x1920xf32>
    tpu.vector_store %arg7[%c0_2, %c0_3], %1 {strides = array<i32>} : memref<216x1920xf32, #tpu.memory_space<vmem>>, vector<8x1920xf32>,
    %c0_4 = arith.constant 0 : index
    %c0_5 = arith.constant 0 : index
    %c1 = arith.constant 1 : index
    %3 = vector.load %arg1[%c0_4, %c0_5, %c1] : memref<1x8x2176xf32, #tpu.memory_space<vmem>>, vector<1x8x1920xf32>
    %4 = vector.shape_cast %3 : vector<1x8x1920xf32> to vector<8x1920xf32>
    %c8 = arith.constant 8 : index
    %c0_6 = arith.constant 0 : index
    %5 = vector.load %arg7[%c8, %c0_6] : memref<216x1920xf32, #tpu.memory_space<vmem>>, vector<8x1920xf32>
    tpu.vector_store %arg7[%c8, %c0_6], %4 {strides = array<i32>} : memref<216x1920xf32, #tpu.memory_space<vmem>>, vector<8x1920xf32>,
    %c0_7 = arith.constant 0 : index
    %c0_8 = arith.constant 0 : index
    %c2 = arith.constant 2 : index
    %6 = vector.load %arg1[%c0_7, %c0_8, %c2] : memref<1x8x2176xf32, #tpu.memory_space<vmem>>, vector<1x8x1920xf32>
    %7 = vector.shape_cast %6 : vector<1x8x1920xf32> to vector<8x1920xf32>
    %c16 = arith.constant 16 : index
    %c0_9 = arith.constant 0 : index
    %8 = vector.load %arg7[%c16, %c0_9] : memref<216x1920xf32, #tpu.memory_space<vmem>>, vector<8x1920xf32>
    tpu.vector_store %arg7[%c16, %c0_9], %7 {strides = array<i32>} : memref<216x1920xf32, #tpu.memory_space<vmem>>, vector<8x1920xf32>,
    %c0_10 = arith.constant 0 : index
    %c0_11 = arith.constant 0 : index
    %c10 = arith.constant 10 : index
    %9 = vector.load %arg1[%c0_10, %c0_11, %c10] : memref<1x8x2176xf32, #tpu.memory_space<vmem>>, vector<1x8x1920xf32>
    %10 = vector.shape_cast %9 : vector<1x8x1920xf32> to vector<8x1920xf32>
    %c24 = arith.constant 24 : index
    %c0_12 = arith.constant 0 : index
    %11 = vector.load %arg7[%c24, %c0_12] : memref<216x1920xf32, #tpu.memory_space<vmem>>, vector<8x1920xf32>
    tpu.vector_store %arg7[%c24, %c0_12], %10 {strides = array<i32>} : memref<216x1920xf32, #tpu.memory_space<vmem>>, vector<8x1920xf32>,
    %c0_13 = arith.constant 0 : index
    %c0_14 = arith.constant 0 : index
    %c11 = arith.constant 11 : index
    %12 = vector.load %arg1[%c0_13, %c0_14, %c11] : memref<1x8x2176xf32, #tpu.memory_space<vmem>>, vector<1x8x1920xf32>
    %13 = vector.shape_cast %12 : vector<1x8x1920xf32> to vector<8x1920xf32>
    %c32 = arith.constant 32 : index
    %c0_15 = arith.constant 0 : index
    %14 = vector.load %arg7[%c32, %c0_15] : memref<216x1920xf32, #tpu.memory_space<vmem>>, vector<8x1920xf32>
    tpu.vector_store %arg7[%c32, %c0_15], %13 {strides = array<i32>} : memref<216x1920xf32, #tpu.memory_space<vmem>>, vector<8x1920xf32>,
    %c0_16 = arith.constant 0 : index
    %c0_17 = arith.constant 0 : index
    %c12 = arith.constant 12 : index
    %15 = vector.load %arg1[%c0_16, %c0_17, %c12] : memref<1x8x2176xf32, #tpu.memory_space<vmem>>, vector<1x8x1920xf32>
    %16 = vector.shape_cast %15 : vector<1x8x1920xf32> to vector<8x1920xf32>
    %c40 = arith.constant 40 : index
    %c0_18 = arith.constant 0 : index
    %17 = vector.load %arg7[%c40, %c0_18] : memref<216x1920xf32, #tpu.memory_space<vmem>>, vector<8x1920xf32>
    tpu.vector_store %arg7[%c40, %c0_18], %16 {strides = array<i32>} : memref<216x1920xf32, #tpu.memory_space<vmem>>, vector<8x1920xf32>,
    %c0_19 = arith.constant 0 : index
    %c0_20 = arith.constant 0 : index
    %c20 = arith.constant 20 : index
    %18 = vector.load %arg1[%c0_19, %c0_20, %c20] : memref<1x8x2176xf32, #tpu.memory_space<vmem>>, vector<1x8x1920xf32>
    %19 = vector.shape_cast %18 : vector<1x8x1920xf32> to vector<8x1920xf32>
    %c48 = arith.constant 48 : index
    %c0_21 = arith.constant 0 : index
    %20 = vector.load %arg7[%c48, %c0_21] : memref<216x1920xf32, #tpu.memory_space<vmem>>, vector<8x1920xf32>
    tpu.vector_store %arg7[%c48, %c0_21], %19 {strides = array<i32>} : memref<216x1920xf32, #tpu.memory_space<vmem>>, vector<8x1920xf32>,
    %c0_22 = arith.constant 0 : index
    %c0_23 = arith.constant 0 : index
    %c21 = arith.constant 21 : index
    %21 = vector.load %arg1[%c0_22, %c0_23, %c21] : memref<1x8x2176xf32, #tpu.memory_space<vmem>>, vector<1x8x1920xf32>
    %22 = vector.shape_cast %21 : vector<1x8x1920xf32> to vector<8x1920xf32>
    %c56 = arith.constant 56 : index
    %c0_24 = arith.constant 0 : index
    %23 = vector.load %arg7[%c56, %c0_24] : memref<216x1920xf32, #tpu.memory_space<vmem>>, vector<8x1920xf32>
    tpu.vector_store %arg7[%c56, %c0_24], %22 {strides = array<i32>} : memref<216x1920xf32, #tpu.memory_space<vmem>>, vector<8x1920xf32>,
    %c0_25 = arith.constant 0 : index
    %c0_26 = arith.constant 0 : index
    %c22 = arith.constant 22 : index
    %24 = vector.load %arg1[%c0_25, %c0_26, %c22] : memref<1x8x2176xf32, #tpu.memory_space<vmem>>, vector<1x8x1920xf32>
    %25 = vector.shape_cast %24 : vector<1x8x1920xf32> to vector<8x1920xf32>
    %c64 = arith.constant 64 : index
    %c0_27 = arith.constant 0 : index
    %26 = vector.load %arg7[%c64, %c0_27] : memref<216x1920xf32, #tpu.memory_space<vmem>>, vector<8x1920xf32>
    tpu.vector_store %arg7[%c64, %c0_27], %25 {strides = array<i32>} : memref<216x1920xf32, #tpu.memory_space<vmem>>, vector<8x1920xf32>,
    %c0_28 = arith.constant 0 : index
    %c0_29 = arith.constant 0 : index
    %c100 = arith.constant 100 : index
    %27 = vector.load %arg1[%c0_28, %c0_29, %c100] : memref<1x8x2176xf32, #tpu.memory_space<vmem>>, vector<1x8x1920xf32>
    %28 = vector.shape_cast %27 : vector<1x8x1920xf32> to vector<8x1920xf32>
    %c72 = arith.constant 72 : index
    %c0_30 = arith.constant 0 : index
    %29 = vector.load %arg7[%c72, %c0_30] : memref<216x1920xf32, #tpu.memory_space<vmem>>, vector<8x1920xf32>
    tpu.vector_store %arg7[%c72, %c0_30], %28 {strides = array<i32>} : memref<216x1920xf32, #tpu.memory_space<vmem>>, vector<8x1920xf32>,
    %c0_31 = arith.constant 0 : index
    %c0_32 = arith.constant 0 : index
    %c101 = arith.constant 101 : index
    %30 = vector.load %arg1[%c0_31, %c0_32, %c101] : memref<1x8x2176xf32, #tpu.memory_space<vmem>>, vector<1x8x1920xf32>
    %31 = vector.shape_cast %30 : vector<1x8x1920xf32> to vector<8x1920xf32>
    %c80 = arith.constant 80 : index
    %c0_33 = arith.constant 0 : index
    %32 = vector.load %arg7[%c80, %c0_33] : memref<216x1920xf32, #tpu.memory_space<vmem>>, vector<8x1920xf32>
    tpu.vector_store %arg7[%c80, %c0_33], %31 {strides = array<i32>} : memref<216x1920xf32, #tpu.memory_space<vmem>>, vector<8x1920xf32>,
    %c0_34 = arith.constant 0 : index
    %c0_35 = arith.constant 0 : index
    %c102 = arith.constant 102 : index
    %33 = vector.load %arg1[%c0_34, %c0_35, %c102] : memref<1x8x2176xf32, #tpu.memory_space<vmem>>, vector<1x8x1920xf32>
    %34 = vector.shape_cast %33 : vector<1x8x1920xf32> to vector<8x1920xf32>
    %c88 = arith.constant 88 : index
    %c0_36 = arith.constant 0 : index
    %35 = vector.load %arg7[%c88, %c0_36] : memref<216x1920xf32, #tpu.memory_space<vmem>>, vector<8x1920xf32>
    tpu.vector_store %arg7[%c88, %c0_36], %34 {strides = array<i32>} : memref<216x1920xf32, #tpu.memory_space<vmem>>, vector<8x1920xf32>,
    %c0_37 = arith.constant 0 : index
    %c0_38 = arith.constant 0 : index
    %c110 = arith.constant 110 : index
    %36 = vector.load %arg1[%c0_37, %c0_38, %c110] : memref<1x8x2176xf32, #tpu.memory_space<vmem>>, vector<1x8x1920xf32>
    %37 = vector.shape_cast %36 : vector<1x8x1920xf32> to vector<8x1920xf32>
    %c96 = arith.constant 96 : index
    %c0_39 = arith.constant 0 : index
    %38 = vector.load %arg7[%c96, %c0_39] : memref<216x1920xf32, #tpu.memory_space<vmem>>, vector<8x1920xf32>
    tpu.vector_store %arg7[%c96, %c0_39], %37 {strides = array<i32>} : memref<216x1920xf32, #tpu.memory_space<vmem>>, vector<8x1920xf32>,
    %c0_40 = arith.constant 0 : index
    %c0_41 = arith.constant 0 : index
    %c111 = arith.constant 111 : index
    %39 = vector.load %arg1[%c0_40, %c0_41, %c111] : memref<1x8x2176xf32, #tpu.memory_space<vmem>>, vector<1x8x1920xf32>
    %40 = vector.shape_cast %39 : vector<1x8x1920xf32> to vector<8x1920xf32>
    %c104 = arith.constant 104 : index
    %c0_42 = arith.constant 0 : index
    %41 = vector.load %arg7[%c104, %c0_42] : memref<216x1920xf32, #tpu.memory_space<vmem>>, vector<8x1920xf32>
    tpu.vector_store %arg7[%c104, %c0_42], %40 {strides = array<i32>} : memref<216x1920xf32, #tpu.memory_space<vmem>>, vector<8x1920xf32>,
    %c0_43 = arith.constant 0 : index
    %c0_44 = arith.constant 0 : index
    %c112 = arith.constant 112 : index
    %42 = vector.load %arg1[%c0_43, %c0_44, %c112] : memref<1x8x2176xf32, #tpu.memory_space<vmem>>, vector<1x8x1920xf32>
    %43 = vector.shape_cast %42 : vector<1x8x1920xf32> to vector<8x1920xf32>
    %c112_45 = arith.constant 112 : index
    %c0_46 = arith.constant 0 : index
    %44 = vector.load %arg7[%c112_45, %c0_46] : memref<216x1920xf32, #tpu.memory_space<vmem>>, vector<8x1920xf32>
    tpu.vector_store %arg7[%c112_45, %c0_46], %43 {strides = array<i32>} : memref<216x1920xf32, #tpu.memory_space<vmem>>, vector<8x1920xf32>,
    %c0_47 = arith.constant 0 : index
    %c0_48 = arith.constant 0 : index
    %c120 = arith.constant 120 : index
    %45 = vector.load %arg1[%c0_47, %c0_48, %c120] : memref<1x8x2176xf32, #tpu.memory_space<vmem>>, vector<1x8x1920xf32>
    %46 = vector.shape_cast %45 : vector<1x8x1920xf32> to vector<8x1920xf32>
    %c120_49 = arith.constant 120 : index
    %c0_50 = arith.constant 0 : index
    %47 = vector.load %arg7[%c120_49, %c0_50] : memref<216x1920xf32, #tpu.memory_space<vmem>>, vector<8x1920xf32>
    tpu.vector_store %arg7[%c120_49, %c0_50], %46 {strides = array<i32>} : memref<216x1920xf32, #tpu.memory_space<vmem>>, vector<8x1920xf32>,
    %c0_51 = arith.constant 0 : index
    %c0_52 = arith.constant 0 : index
    %c121 = arith.constant 121 : index
    %48 = vector.load %arg1[%c0_51, %c0_52, %c121] : memref<1x8x2176xf32, #tpu.memory_space<vmem>>, vector<1x8x1920xf32>
    %49 = vector.shape_cast %48 : vector<1x8x1920xf32> to vector<8x1920xf32>
    %c128 = arith.constant 128 : index
    %c0_53 = arith.constant 0 : index
    %50 = vector.load %arg7[%c128, %c0_53] : memref<216x1920xf32, #tpu.memory_space<vmem>>, vector<8x1920xf32>
    tpu.vector_store %arg7[%c128, %c0_53], %49 {strides = array<i32>} : memref<216x1920xf32, #tpu.memory_space<vmem>>, vector<8x1920xf32>,
    %c0_54 = arith.constant 0 : index
    %c0_55 = arith.constant 0 : index
    %c122 = arith.constant 122 : index
    %51 = vector.load %arg1[%c0_54, %c0_55, %c122] : memref<1x8x2176xf32, #tpu.memory_space<vmem>>, vector<1x8x1920xf32>
    %52 = vector.shape_cast %51 : vector<1x8x1920xf32> to vector<8x1920xf32>
    %c136 = arith.constant 136 : index
    %c0_56 = arith.constant 0 : index
    %53 = vector.load %arg7[%c136, %c0_56] : memref<216x1920xf32, #tpu.memory_space<vmem>>, vector<8x1920xf32>
    tpu.vector_store %arg7[%c136, %c0_56], %52 {strides = array<i32>} : memref<216x1920xf32, #tpu.memory_space<vmem>>, vector<8x1920xf32>,
    %c0_57 = arith.constant 0 : index
    %c0_58 = arith.constant 0 : index
    %c200 = arith.constant 200 : index
    %54 = vector.load %arg1[%c0_57, %c0_58, %c200] : memref<1x8x2176xf32, #tpu.memory_space<vmem>>, vector<1x8x1920xf32>
    %55 = vector.shape_cast %54 : vector<1x8x1920xf32> to vector<8x1920xf32>
    %c144 = arith.constant 144 : index
    %c0_59 = arith.constant 0 : index
    %56 = vector.load %arg7[%c144, %c0_59] : memref<216x1920xf32, #tpu.memory_space<vmem>>, vector<8x1920xf32>
    tpu.vector_store %arg7[%c144, %c0_59], %55 {strides = array<i32>} : memref<216x1920xf32, #tpu.memory_space<vmem>>, vector<8x1920xf32>,
    %c0_60 = arith.constant 0 : index
    %c0_61 = arith.constant 0 : index
    %c201 = arith.constant 201 : index
    %57 = vector.load %arg1[%c0_60, %c0_61, %c201] : memref<1x8x2176xf32, #tpu.memory_space<vmem>>, vector<1x8x1920xf32>
    %58 = vector.shape_cast %57 : vector<1x8x1920xf32> to vector<8x1920xf32>
    %c152 = arith.constant 152 : index
    %c0_62 = arith.constant 0 : index
    %59 = vector.load %arg7[%c152, %c0_62] : memref<216x1920xf32, #tpu.memory_space<vmem>>, vector<8x1920xf32>
    tpu.vector_store %arg7[%c152, %c0_62], %58 {strides = array<i32>} : memref<216x1920xf32, #tpu.memory_space<vmem>>, vector<8x1920xf32>,
    %c0_63 = arith.constant 0 : index
    %c0_64 = arith.constant 0 : index
    %c202 = arith.constant 202 : index
    %60 = vector.load %arg1[%c0_63, %c0_64, %c202] : memref<1x8x2176xf32, #tpu.memory_space<vmem>>, vector<1x8x1920xf32>
    %61 = vector.shape_cast %60 : vector<1x8x1920xf32> to vector<8x1920xf32>
    %c160 = arith.constant 160 : index
    %c0_65 = arith.constant 0 : index
    %62 = vector.load %arg7[%c160, %c0_65] : memref<216x1920xf32, #tpu.memory_space<vmem>>, vector<8x1920xf32>
    tpu.vector_store %arg7[%c160, %c0_65], %61 {strides = array<i32>} : memref<216x1920xf32, #tpu.memory_space<vmem>>, vector<8x1920xf32>,
    %c0_66 = arith.constant 0 : index
    %c0_67 = arith.constant 0 : index
    %c210 = arith.constant 210 : index
    %63 = vector.load %arg1[%c0_66, %c0_67, %c210] : memref<1x8x2176xf32, #tpu.memory_space<vmem>>, vector<1x8x1920xf32>
    %64 = vector.shape_cast %63 : vector<1x8x1920xf32> to vector<8x1920xf32>
    %c168 = arith.constant 168 : index
    %c0_68 = arith.constant 0 : index
    %65 = vector.load %arg7[%c168, %c0_68] : memref<216x1920xf32, #tpu.memory_space<vmem>>, vector<8x1920xf32>
    tpu.vector_store %arg7[%c168, %c0_68], %64 {strides = array<i32>} : memref<216x1920xf32, #tpu.memory_space<vmem>>, vector<8x1920xf32>,
    %c0_69 = arith.constant 0 : index
    %c0_70 = arith.constant 0 : index
    %c211 = arith.constant 211 : index
    %66 = vector.load %arg1[%c0_69, %c0_70, %c211] : memref<1x8x2176xf32, #tpu.memory_space<vmem>>, vector<1x8x1920xf32>
    %67 = vector.shape_cast %66 : vector<1x8x1920xf32> to vector<8x1920xf32>
    %c176 = arith.constant 176 : index
    %c0_71 = arith.constant 0 : index
    %68 = vector.load %arg7[%c176, %c0_71] : memref<216x1920xf32, #tpu.memory_space<vmem>>, vector<8x1920xf32>
    tpu.vector_store %arg7[%c176, %c0_71], %67 {strides = array<i32>} : memref<216x1920xf32, #tpu.memory_space<vmem>>, vector<8x1920xf32>,
    %c0_72 = arith.constant 0 : index
    %c0_73 = arith.constant 0 : index
    %c212 = arith.constant 212 : index
    %69 = vector.load %arg1[%c0_72, %c0_73, %c212] : memref<1x8x2176xf32, #tpu.memory_space<vmem>>, vector<1x8x1920xf32>
    %70 = vector.shape_cast %69 : vector<1x8x1920xf32> to vector<8x1920xf32>
    %c184 = arith.constant 184 : index
    %c0_74 = arith.constant 0 : index
    %71 = vector.load %arg7[%c184, %c0_74] : memref<216x1920xf32, #tpu.memory_space<vmem>>, vector<8x1920xf32>
    tpu.vector_store %arg7[%c184, %c0_74], %70 {strides = array<i32>} : memref<216x1920xf32, #tpu.memory_space<vmem>>, vector<8x1920xf32>,
    %c0_75 = arith.constant 0 : index
    %c0_76 = arith.constant 0 : index
    %c220 = arith.constant 220 : index
    %72 = vector.load %arg1[%c0_75, %c0_76, %c220] : memref<1x8x2176xf32, #tpu.memory_space<vmem>>, vector<1x8x1920xf32>
    %73 = vector.shape_cast %72 : vector<1x8x1920xf32> to vector<8x1920xf32>
    %c192 = arith.constant 192 : index
    %c0_77 = arith.constant 0 : index
    %74 = vector.load %arg7[%c192, %c0_77] : memref<216x1920xf32, #tpu.memory_space<vmem>>, vector<8x1920xf32>
    tpu.vector_store %arg7[%c192, %c0_77], %73 {strides = array<i32>} : memref<216x1920xf32, #tpu.memory_space<vmem>>, vector<8x1920xf32>,
    %c0_78 = arith.constant 0 : index
    %c0_79 = arith.constant 0 : index
    %c221 = arith.constant 221 : index
    %75 = vector.load %arg1[%c0_78, %c0_79, %c221] : memref<1x8x2176xf32, #tpu.memory_space<vmem>>, vector<1x8x1920xf32>
    %76 = vector.shape_cast %75 : vector<1x8x1920xf32> to vector<8x1920xf32>
    %c200_80 = arith.constant 200 : index
    %c0_81 = arith.constant 0 : index
    %77 = vector.load %arg7[%c200_80, %c0_81] : memref<216x1920xf32, #tpu.memory_space<vmem>>, vector<8x1920xf32>
    tpu.vector_store %arg7[%c200_80, %c0_81], %76 {strides = array<i32>} : memref<216x1920xf32, #tpu.memory_space<vmem>>, vector<8x1920xf32>,
    %c0_82 = arith.constant 0 : index
    %c0_83 = arith.constant 0 : index
    %c222 = arith.constant 222 : index
    %78 = vector.load %arg1[%c0_82, %c0_83, %c222] : memref<1x8x2176xf32, #tpu.memory_space<vmem>>, vector<1x8x1920xf32>
    %79 = vector.shape_cast %78 : vector<1x8x1920xf32> to vector<8x1920xf32>
    %c208 = arith.constant 208 : index
    %c0_84 = arith.constant 0 : index
    %80 = vector.load %arg7[%c208, %c0_84] : memref<216x1920xf32, #tpu.memory_space<vmem>>, vector<8x1920xf32>
    tpu.vector_store %arg7[%c208, %c0_84], %79 {strides = array<i32>} : memref<216x1920xf32, #tpu.memory_space<vmem>>, vector<8x1920xf32>,
    %c0_85 = arith.constant 0 : index
    %c0_86 = arith.constant 0 : index
    %81 = vector.load %arg2[%c0_85, %c0_86] : memref<8x216xf32, #tpu.memory_space<vmem>>, vector<8x216xf32>
    %c0_87 = arith.constant 0 : index
    %c0_88 = arith.constant 0 : index
    %82 = vector.load %arg7[%c0_87, %c0_88] : memref<216x1920xf32, #tpu.memory_space<vmem>>, vector<216x1920xf32>
    %cst = arith.constant dense<0.000000e+00> : vector<8x1920xf32>
    %83 = tpu.matmul %81, %82, %cst {dimension_numbers = #tpu.dot_dimension_numbers<[1], [0], [0], [1], [0, 0, 1, 1], [], []>} : vector<8x216xf32>, vector<216x1920xf32>, vector<8x1920xf32> -> vector<8x1920xf32>
    %c0_89 = arith.constant 0 : index
    %c0_90 = arith.constant 0 : index
    %84 = vector.load %arg8[%c0_89, %c0_90] : memref<8x1920xf32, #tpu.memory_space<vmem>>, vector<8x1920xf32>
    tpu.vector_store %arg8[%c0_89, %c0_90], %83 {strides = array<i32>} : memref<8x1920xf32, #tpu.memory_space<vmem>>, vector<8x1920xf32>,
    %c0_91 = arith.constant 0 : index
    %c0_92 = arith.constant 0 : index
    %85 = vector.load %arg4[%c0_91, %c0_92] : memref<8x1xf32, #tpu.memory_space<vmem>>, vector<8x1xf32>
    %c0_93 = arith.constant 0 : index
    %c0_94 = arith.constant 0 : index
    %86 = vector.load %arg5[%c0_93, %c0_94] : memref<8x1xf32, #tpu.memory_space<vmem>>, vector<8x1xf32>
    %c0_95 = arith.constant 0 : index
    %c0_96 = arith.constant 0 : index
    %87 = vector.load %arg8[%c0_95, %c0_96] : memref<8x1920xf32, #tpu.memory_space<vmem>>, vector<8x768xf32>
    %c0_97 = arith.constant 0 : index
    %c1_98 = arith.constant 1 : index
    %88 = vector.load %arg8[%c0_97, %c1_98] : memref<8x1920xf32, #tpu.memory_space<vmem>>, vector<8x768xf32>
    %89 = arith.maximumf %87, %88 : vector<8x768xf32>
    %c0_99 = arith.constant 0 : index
    %c10_100 = arith.constant 10 : index
    %90 = vector.load %arg8[%c0_99, %c10_100] : memref<8x1920xf32, #tpu.memory_space<vmem>>, vector<8x768xf32>
    %91 = arith.maximumf %89, %90 : vector<8x768xf32>
    %c0_101 = arith.constant 0 : index
    %c11_102 = arith.constant 11 : index
    %92 = vector.load %arg8[%c0_101, %c11_102] : memref<8x1920xf32, #tpu.memory_space<vmem>>, vector<8x768xf32>
    %93 = arith.maximumf %91, %92 : vector<8x768xf32>
    %c0_103 = arith.constant 0 : index
    %c100_104 = arith.constant 100 : index
    %94 = vector.load %arg8[%c0_103, %c100_104] : memref<8x1920xf32, #tpu.memory_space<vmem>>, vector<8x768xf32>
    %95 = arith.maximumf %93, %94 : vector<8x768xf32>
    %c0_105 = arith.constant 0 : index
    %c101_106 = arith.constant 101 : index
    %96 = vector.load %arg8[%c0_105, %c101_106] : memref<8x1920xf32, #tpu.memory_space<vmem>>, vector<8x768xf32>
    %97 = arith.maximumf %95, %96 : vector<8x768xf32>
    %c0_107 = arith.constant 0 : index
    %c110_108 = arith.constant 110 : index
    %98 = vector.load %arg8[%c0_107, %c110_108] : memref<8x1920xf32, #tpu.memory_space<vmem>>, vector<8x768xf32>
    %99 = arith.maximumf %97, %98 : vector<8x768xf32>
    %c0_109 = arith.constant 0 : index
    %c111_110 = arith.constant 111 : index
    %100 = vector.load %arg8[%c0_109, %c111_110] : memref<8x1920xf32, #tpu.memory_space<vmem>>, vector<8x768xf32>
    %101 = arith.maximumf %99, %100 : vector<8x768xf32>
    %c0_111 = arith.constant 0 : index
    %c0_112 = arith.constant 0 : index
    %102 = vector.load %arg3[%c0_111, %c0_112] : memref<768x128xf32, #tpu.memory_space<vmem>>, vector<768x128xf32>
    %cst_113 = arith.constant dense<0.000000e+00> : vector<8x128xf32>
    %103 = tpu.matmul %101, %102, %cst_113 {dimension_numbers = #tpu.dot_dimension_numbers<[1], [0], [0], [1], [0, 0, 1, 1], [], []>} : vector<8x768xf32>, vector<768x128xf32>, vector<8x128xf32> -> vector<8x128xf32>
    %104 = vector.broadcast %85 : vector<8x1xf32> to vector<8x128xf32>
    %105 = arith.mulf %103, %104 : vector<8x128xf32>
    %106 = vector.broadcast %86 : vector<8x1xf32> to vector<8x128xf32>
    %107 = arith.addf %105, %106 : vector<8x128xf32>
    %cst_114 = arith.constant 0.000000e+00 : f32
    %108 = vector.broadcast %cst_114 : f32 to vector<8x128xf32>
    %109 = arith.cmpf oge, %107, %108 : vector<8x128xf32>
    %cst_115 = arith.constant 0.00999999977 : f32
    %110 = vector.broadcast %cst_115 : f32 to vector<8x128xf32>
    %111 = arith.mulf %110, %107 : vector<8x128xf32>
    %112 = arith.select %109, %107, %111 : vector<8x128xi1>, vector<8x128xf32>
    %c0_116 = arith.constant 0 : index
    %c0_117 = arith.constant 0 : index
    %c0_118 = arith.constant 0 : index
    %113 = vector.load %arg6[%c0_116, %c0_117, %c0_118] : memref<2x8x128xf32, #tpu.memory_space<vmem>>, vector<1x8x128xf32>
    %114 = vector.shape_cast %113 : vector<1x8x128xf32> to vector<8x128xf32>
    %115 = vector.shape_cast %112 : vector<8x128xf32> to vector<1x8x128xf32>
    tpu.vector_store %arg6[%c0_116, %c0_117, %c0_118], %115 {strides = array<i32>} : memref<2x8x128xf32, #tpu.memory_space<vmem>>, vector<1x8x128xf32>,
    %c0_119 = arith.constant 0 : index
    %c1000 = arith.constant 1000 : index
    %116 = vector.load %arg8[%c0_119, %c1000] : memref<8x1920xf32, #tpu.memory_space<vmem>>, vector<8x768xf32>
    %c0_120 = arith.constant 0 : index
    %c1001 = arith.constant 1001 : index
    %117 = vector.load %arg8[%c0_120, %c1001] : memref<8x1920xf32, #tpu.memory_space<vmem>>, vector<8x768xf32>
    %118 = arith.maximumf %116, %117 : vector<8x768xf32>
    %c0_121 = arith.constant 0 : index
    %c1010 = arith.constant 1010 : index
    %119 = vector.load %arg8[%c0_121, %c1010] : memref<8x1920xf32, #tpu.memory_space<vmem>>, vector<8x768xf32>
    %120 = arith.maximumf %118, %119 : vector<8x768xf32>
    %c0_122 = arith.constant 0 : index
    %c1011 = arith.constant 1011 : index
    %121 = vector.load %arg8[%c0_122, %c1011] : memref<8x1920xf32, #tpu.memory_space<vmem>>, vector<8x768xf32>
    %122 = arith.maximumf %120, %121 : vector<8x768xf32>
    %c0_123 = arith.constant 0 : index
    %c1100 = arith.constant 1100 : index
    %123 = vector.load %arg8[%c0_123, %c1100] : memref<8x1920xf32, #tpu.memory_space<vmem>>, vector<8x768xf32>
    %124 = arith.maximumf %122, %123 : vector<8x768xf32>
    %c0_124 = arith.constant 0 : index
    %c1101 = arith.constant 1101 : index
    %125 = vector.load %arg8[%c0_124, %c1101] : memref<8x1920xf32, #tpu.memory_space<vmem>>, vector<8x768xf32>
    %126 = arith.maximumf %124, %125 : vector<8x768xf32>
    %c0_125 = arith.constant 0 : index
    %c1110 = arith.constant 1110 : index
    %127 = vector.load %arg8[%c0_125, %c1110] : memref<8x1920xf32, #tpu.memory_space<vmem>>, vector<8x768xf32>
    %128 = arith.maximumf %126, %127 : vector<8x768xf32>
    %c0_126 = arith.constant 0 : index
    %c1111 = arith.constant 1111 : index
    %129 = vector.load %arg8[%c0_126, %c1111] : memref<8x1920xf32, #tpu.memory_space<vmem>>, vector<8x768xf32>
    %130 = arith.maximumf %128, %129 : vector<8x768xf32>
    %c0_127 = arith.constant 0 : index
    %c0_128 = arith.constant 0 : index
    %131 = vector.load %arg3[%c0_127, %c0_128] : memref<768x128xf32, #tpu.memory_space<vmem>>, vector<768x128xf32>
    %cst_129 = arith.constant dense<0.000000e+00> : vector<8x128xf32>
    %132 = tpu.matmul %130, %131, %cst_129 {dimension_numbers = #tpu.dot_dimension_numbers<[1], [0], [0], [1], [0, 0, 1, 1], [], []>} : vector<8x768xf32>, vector<768x128xf32>, vector<8x128xf32> -> vector<8x128xf32>
    %133 = vector.broadcast %85 : vector<8x1xf32> to vector<8x128xf32>
    %134 = arith.mulf %132, %133 : vector<8x128xf32>
    %135 = vector.broadcast %86 : vector<8x1xf32> to vector<8x128xf32>
    %136 = arith.addf %134, %135 : vector<8x128xf32>
    %cst_130 = arith.constant 0.000000e+00 : f32
    %137 = vector.broadcast %cst_130 : f32 to vector<8x128xf32>
    %138 = arith.cmpf oge, %136, %137 : vector<8x128xf32>
    %cst_131 = arith.constant 0.00999999977 : f32
    %139 = vector.broadcast %cst_131 : f32 to vector<8x128xf32>
    %140 = arith.mulf %139, %136 : vector<8x128xf32>
    %141 = arith.select %138, %136, %140 : vector<8x128xi1>, vector<8x128xf32>
    %c1_132 = arith.constant 1 : index
    %c0_133 = arith.constant 0 : index
    %c0_134 = arith.constant 0 : index
    %142 = vector.load %arg6[%c1_132, %c0_133, %c0_134] : memref<2x8x128xf32, #tpu.memory_space<vmem>>, vector<1x8x128xf32>
    %143 = vector.shape_cast %142 : vector<1x8x128xf32> to vector<8x128xf32>
    %144 = vector.shape_cast %141 : vector<8x128xf32> to vector<1x8x128xf32>
    tpu.vector_store %arg6[%c1_132, %c0_133, %c0_134], %144 {strides = array<i32>} : memref<2x8x128xf32, #tpu.memory_space<vmem>>, vector<1x8x128xf32>,
    return
  }
  func.func @transform_0(%arg0: i32) -> (i32, i32, i32) {
    %c0_i32 = arith.constant 0 : i32
    %c0_i32_0 = arith.constant 0 : i32
    %c0_i32_1 = arith.constant 0 : i32
    return %arg0, %c0_i32, %c0_i32_0 : i32, i32, i32
  }
  func.func @transform_1(%arg0: i32) -> (i32, i32) {
    %c0_i32 = arith.constant 0 : i32
    %c0_i32_0 = arith.constant 0 : i32
    %c0_i32_1 = arith.constant 0 : i32
    return %c0_i32, %c0_i32_0 : i32, i32
  }
  func.func @transform_2(%arg0: i32) -> (i32, i32) {
    %c0_i32 = arith.constant 0 : i32
    %c0_i32_0 = arith.constant 0 : i32
    %c0_i32_1 = arith.constant 0 : i32
    return %c0_i32, %c0_i32_0 : i32, i32
  }
  func.func @transform_3(%arg0: i32) -> (i32, i32) {
    %c0_i32 = arith.constant 0 : i32
    %c0_i32_0 = arith.constant 0 : i32
    %c0_i32_1 = arith.constant 0 : i32
    return %c0_i32, %c0_i32_0 : i32, i32
  }
  func.func @transform_4(%arg0: i32) -> (i32, i32) {
    %c0_i32 = arith.constant 0 : i32
    %c0_i32_0 = arith.constant 0 : i32
    %c0_i32_1 = arith.constant 0 : i32
    return %c0_i32, %c0_i32_0 : i32, i32
  }
  func.func @transform_5(%arg0: i32) -> (i32, i32, i32) {
    %c0_i32 = arith.constant 0 : i32
    %c0_i32_0 = arith.constant 0 : i32
    %c0_i32_1 = arith.constant 0 : i32
    return %arg0, %c0_i32, %c0_i32_0 : i32, i32, i32
  }
}

</mosaic_0001>

<bundles_post_ra>
// kernel: forward.1
= control target key start
LH: loop header
LB: loop body
LE: loop exit
PB: predicated region body
PF: predicated region fallthrough
CT: control target
= control target key end

     0   :  { %s7146_s9 = smov 127   ;;  %s7147_s26 = smov 126   ;;  %vm114_vm0 = vcmask 1039360   ;;  %vm10852_vm1 = vcmask 1031168   ;;  %vm10851_vm2 = vcmask 965632   ;;  %vm444_vm3 = vcmask 957440   ;;  %s10717_s0 = inlined_call_operand.vmem [shape: f32[1,8,2176], index: 0, kind: input, shape index: {}]   ;;  %s10718_s1 = inlined_call_operand.vmem [shape: f32[8,216], index: 1, kind: input, shape index: {}]   ;;  %s10719_s2 = inlined_call_operand.vmem [shape: f32[768,128], index: 2, kind: input, shape index: {}]   ;;  %s10720_s3 = inlined_call_operand.vmem [shape: f32[8,1], index: 3, kind: input, shape index: {}]   ;;  %s10721_s4 = inlined_call_operand.vmem [shape: f32[8,1], index: 4, kind: input, shape index: {}]   ;;  %s10722_s5 = inlined_call_operand.vmem [shape: f32[2,8,128], index: 5, kind: output, shape index: {}]  }
   0x1   :  { %v7209_v0 = vld [vmem:[%s10717_s0 + $0x20] sm:$0xff]  ;;  %v55_v1 = vld [vmem:[%s10717_s0 + $0x28] sm:$0xff]  ;;  %v56_v5 = vld [vmem:[%s10717_s0 + $0x30] sm:$0xff]  ;;  %s10769_s27 = smov 118   ;;  %s10767_s28 = smov 117   ;;  %vm554_vm4 = vcmask 949248  }
   0x2   :  { %v7217_v2 = vld [vmem:[%s10717_s0] sm:$0xff]  ;;  %v7220_v3 = vpack.i.bf16 %v55_v1, %v7209_v0  ;;  %v7225_v4 = vld [vmem:[%s10717_s0 + $0x8] sm:$0xff]  ;;  %v57_v6 = vld [vmem:[%s10717_s0 + $0x38] sm:$0xff]  ;;  %s7150_s29 = smov 116   ;;  %s7151_s30 = smov 108   ;;  %vm10855_vm5 = vcmask 883712  }
   0x3   :  { %v7235_v7 = vpack.i.bf16 %v7225_v4, %v7217_v2  ;;  %v7240_v8 = vld [vmem:[%s10717_s0 + $0x10] sm:$0xff]  ;;  %v7245_v9 = vld [vmem:[%s10717_s0 + $0x18] sm:$0xff]  ;;  %v7249_v10 = vpack.i.bf16 %v57_v6, %v56_v5  ;;  %v58_v14 = vld [vmem:[%s10717_s0 + $0x40] sm:$0xff]  ;;  %s7152_s6 = smov 107   ;;  %s7153_s7 = smov 106   ;;  %vm3317_vm6 = vcmask 719872  }
   0x4   :  { %5937 = vrot.lane.b32.xlu1 %v7220_v3, %s7146_s9  ;;  %v7255_v11 = vpack.i.bf16 %v7245_v9, %v7240_v8  ;;  %v60_v12 = vld [vmem:[%s10717_s0 + $0x50] sm:$0xff]  ;;  %v61_v13 = vld [vmem:[%s10717_s0 + $0x58] sm:$0xff]  ;;  %v59_v15 = vld [vmem:[%s10717_s0 + $0x48] sm:$0xff]  ;;  %v7344_v24 = vpack.i.bf16 %v7240_v8, %v7225_v4  ;;  %v7352_v25 = vpack.i.bf16 %v7245_v9, %v7217_v2  ;;  %s7154_s8 = smov 28   ;;  %s7155_s10 = smov 27   ;;  %vm774_vm7 = vcmask 875520  }
   0x5   :  { %5927 = vrot.lane.b32.xlu0 %v7235_v7, %s7146_s9  ;;  %v5951_v16 = vpack.i.bf16 %v61_v13, %v60_v12  ;;  %v7273_v17 = vpack.i.bf16 %v59_v15, %v58_v14  ;;  %v64_v18 = vld [vmem:[%s10717_s0 + $0x70] sm:$0xff]  ;;  %v65_v19 = vld [vmem:[%s10717_s0 + $0x78] sm:$0xff]  ;;  %v62_v20 = vld [vmem:[%s10717_s0 + $0x60] sm:$0xff]  ;;  %s7156_s11 = smov 26   ;;  %s7157_s12 = smov 18   ;;  %vm10854_vm8 = vcmask 867328  }
   0x6   :  { %v63_v21 = vld [vmem:[%s10717_s0 + $0x68] sm:$0xff]  ;;  %v5961_v22 = vpack.i.bf16 %v65_v19, %v64_v18  ;;  %s7158_s13 = smov 17   ;;  %s7159_s14 = smov 16   ;;  %vm10853_vm9 = vcmask 228352   ;;  %vm10804_vm10 = vcmask 220160   ;;  %vm10805_vm11 = vcmask 211968  }
   0x7   :  { %v5956_v23 = vpack.i.bf16 %v63_v21, %v62_v20  ;;  %s7160_s15 = smov 8   ;;  %s7161_s16 = smov 7   ;;  %vm10813_vm12 = vcmask 146432   ;;  %vm10814_vm13 = vcmask 138240   ;;  %vm10820_vm14 = vcmask 130048  }
   0x8   :  { %5942 = vrot.lane.b32.xlu1 %v7249_v10, %s7146_s9  ;;  %s7162_s17 = smov 6   ;;  %s7163_s18 = smov 56   ;;  %vm10821_vm15 = vcmask 64512  }
   0x9   :  { %5932 = vrot.lane.b32.xlu0 %v7255_v11, %s7146_s9  ;;  %s7164_s21 = smov 55   ;;  %s7165_s20 = smov 54  }
   0xa   :  { %s7166_s24 = smov 46   ;;  %s7167_s25 = smov 45  }
   0xb   :  { %s7171_s23 = smov 34  }
   0xc   :  { %5952 = vrot.lane.b32.xlu1 %v5951_v16, %s7146_s9 }
   0xd   :  { %5947 = vrot.lane.b32.xlu0 %v7273_v17, %s7146_s9 }
  0x10   :  { %5962 = vrot.lane.b32.xlu1 %v5961_v22, %s7146_s9 }
  0x11   :  { %5957 = vrot.lane.b32.xlu0 %v5956_v23, %s7146_s9 }
  0x14   :  { %5972 = vrot.lane.b32.xlu1 %v7255_v11, %s7147_s26 }
  0x15   :  { %5967 = vrot.lane.b32.xlu0 %v7235_v7, %s7147_s26 }
  0x18   :  { %5982 = vrot.lane.b32.xlu1 %v7249_v10, %s7147_s26 }
  0x19   :  { %5977 = vrot.lane.b32.xlu0 %v7220_v3, %s7147_s26 }
  0x1c   :  { %5992 = vrot.lane.b32.xlu1 %v5951_v16, %s7147_s26 }
  0x1d   :  { %5987 = vrot.lane.b32.xlu0 %v7273_v17, %s7147_s26 }
  0x20   :  { %6002 = vrot.lane.b32.xlu1 %v5961_v22, %s7147_s26 }
  0x21   :  { %5997 = vrot.lane.b32.xlu0 %v5956_v23, %s7147_s26  ;;  %s7168_s26 = smov 44  }
  0x24   :  { %6012 = vrot.lane.b32.xlu1 %v7255_v11, %s10769_s27 }
  0x25   :  { %6007 = vrot.lane.b32.xlu0 %v7235_v7, %s10769_s27 }
  0x28   :  { %6022 = vrot.lane.b32.xlu1 %v7249_v10, %s10769_s27 }
  0x29   :  { %6017 = vrot.lane.b32.xlu0 %v7220_v3, %s10769_s27 }
  0x2c   :  { %6032 = vrot.lane.b32.xlu1 %v5951_v16, %s10769_s27 }
  0x2d   :  { %6027 = vrot.lane.b32.xlu0 %v7273_v17, %s10769_s27 }
  0x30   :  { %6042 = vrot.lane.b32.xlu1 %v5961_v22, %s10769_s27 }
  0x31   :  { %6037 = vrot.lane.b32.xlu0 %v5956_v23, %s10769_s27 }
  0x34   :  { %6052 = vrot.lane.b32.xlu1 %v7255_v11, %s10767_s28 }
  0x35   :  { %6047 = vrot.lane.b32.xlu0 %v7235_v7, %s10767_s28 }
  0x38   :  { %6062 = vrot.lane.b32.xlu1 %v7249_v10, %s10767_s28 }
  0x39   :  { %6057 = vrot.lane.b32.xlu0 %v7220_v3, %s10767_s28 }
  0x3c   :  { %6072 = vrot.lane.b32.xlu1 %v5951_v16, %s10767_s28 }
  0x3d   :  { %6067 = vrot.lane.b32.xlu0 %v7273_v17, %s10767_s28 }
  0x40   :  { %6082 = vrot.lane.b32.xlu1 %v5961_v22, %s10767_s28 }
  0x41   :  { %6077 = vrot.lane.b32.xlu0 %v5956_v23, %s10767_s28 }
  0x44   :  { %6092 = vrot.lane.b32.xlu1 %v7255_v11, %s7150_s29 }
  0x45   :  { %6087 = vrot.lane.b32.xlu0 %v7235_v7, %s7150_s29 }
  0x48   :  { %6102 = vrot.lane.b32.xlu1 %v7249_v10, %s7150_s29 }
  0x49   :  { %6097 = vrot.lane.b32.xlu0 %v7220_v3, %s7150_s29 }
  0x4c   :  { %6112 = vrot.lane.b32.xlu1 %v5951_v16, %s7150_s29 }
  0x4d   :  { %6107 = vrot.lane.b32.xlu0 %v7273_v17, %s7150_s29 }
  0x50   :  { %6122 = vrot.lane.b32.xlu1 %v5961_v22, %s7150_s29 }
  0x51   :  { %6117 = vrot.lane.b32.xlu0 %v5956_v23, %s7150_s29  ;;  %s7169_s29 = smov 36  }
  0x54   :  { %6132 = vrot.lane.b32.xlu1 %v7255_v11, %s7151_s30 }
  0x55   :  { %6127 = vrot.lane.b32.xlu0 %v7235_v7, %s7151_s30 }
  0x58   :  { %6142 = vrot.lane.b32.xlu1 %v7249_v10, %s7151_s30 }
  0x59   :  { %6137 = vrot.lane.b32.xlu0 %v7220_v3, %s7151_s30 }
  0x5c   :  { %6152 = vrot.lane.b32.xlu1 %v5951_v16, %s7151_s30 }
  0x5d   :  { %6147 = vrot.lane.b32.xlu0 %v7273_v17, %s7151_s30 }
  0x60   :  { %6162 = vrot.lane.b32.xlu1 %v5961_v22, %s7151_s30 }
  0x61   :  { %6157 = vrot.lane.b32.xlu0 %v5956_v23, %s7151_s30  ;;  %s7170_s30 = smov 35  }
  0x64   :  { %6172 = vrot.lane.b32.xlu1 %v7255_v11, %s7152_s6 }
  0x65   :  { %6167 = vrot.lane.b32.xlu0 %v7235_v7, %s7152_s6 }
  0x68   :  { %6182 = vrot.lane.b32.xlu1 %v7249_v10, %s7152_s6 }
  0x69   :  { %6177 = vrot.lane.b32.xlu0 %v7220_v3, %s7152_s6 }
  0x6c   :  { %6192 = vrot.lane.b32.xlu1 %v5951_v16, %s7152_s6 }
  0x6d   :  { %6187 = vrot.lane.b32.xlu0 %v7273_v17, %s7152_s6 }
  0x70   :  { %6202 = vrot.lane.b32.xlu1 %v7344_v24, %s7153_s7 }
  0x71   :  { %6197 = vrot.lane.b32.xlu0 %v5956_v23, %s7152_s6 }
  0x74   :  { %6212 = vrot.lane.b32.xlu1 %v7352_v25, %s7153_s7 }
  0x75   :  { %6207 = vrot.lane.b32.xlu0 %v7344_v24, %s7154_s8 }
  0x76   :  { %v7359_v26 = vpop.permute.xlu1 %5937 }
  0x77   :  { %v5928_v27 = vpop.permute.xlu0 %5927  ;;  %v10744_v32 = vunpack.i.l.bf16 %v7359_v26 }
  0x78   :  { %6222 = vrot.lane.b32.xlu1 %v7344_v24, %s7155_s10  ;;  %v5930_v28 = vunpack.i.h.bf16 %v5928_v27  ;;  %v5929_v29 = vunpack.i.l.bf16 %v5928_v27 }
  0x79   :  { %6217 = vrot.lane.b32.xlu0 %v7352_v25, %s7154_s8 }
  0x7a   :  { %v7365_v30 = vpop.permute.xlu1 %5942  ;;  %v115_v35 = vsel %vm114_vm0, %v5929_v29, %v5930_v28 }
  0x7b   :  { %v5933_v31 = vpop.permute.xlu0 %5932  ;;  %v5303_v43 = vpack.c.bf16 %v115_v35, %v7217_v2 }
  0x7c   :  { %v5935_v33 = vunpack.i.h.bf16 %v5933_v31  ;;  %v5934_v34 = vunpack.i.l.bf16 %v5933_v31  ;;  %6232 = vrot.lane.b32.xlu1 %v7352_v25, %s7155_s10 }
  0x7d   :  { %6227 = vrot.lane.b32.xlu0 %v7344_v24, %s7156_s11 }
  0x7e   :  { %v7373_v36 = vpop.permute.xlu1 %5952  ;;  %v116_v37 = vsel %vm114_vm0, %v5930_v28, %v5934_v34  ;;  %v118_v38 = vsel %vm114_vm0, %v5935_v33, %v10744_v32  ;;  %v117_v39 = vsel %vm114_vm0, %v5934_v34, %v5935_v33 }
  0x7f   :  { %10927 = vst [vmem:[#allocation4_spill] sm:$0xff] %v7373_v36  ;;  %v7380_v40 = vpop.permute.xlu0 %5947  ;;  %v5301_v41 = vpack.c.bf16 %v116_v37, %v7225_v4  ;;  %v5353_v42 = vpack.c.bf16 %v118_v38, %v7245_v9  ;;  %v5355_v44 = vpack.c.bf16 %v117_v39, %v7240_v8 }
  0x80   :  { %6242 = vrot.lane.b32.xlu1 %v7220_v3, %s7153_s7 }
  0x81   :  { %6237 = vrot.lane.b32.xlu0 %v7352_v25, %s7156_s11  ;;  %5302 = vmatprep.subr.bf16.mxu0 %v5301_v41 }
  0x82   :  { %5354 = vmatprep.subr.bf16.mxu1 %v5353_v42  ;;  %5304 = vmatpush1.bf16.msra.mxu0 %v5303_v43  ;;  %v7390_v45 = vpop.permute.xlu1 %5962 }
  0x83   :  { %10928 = vst [vmem:[#allocation5_spill] sm:$0xff] %v7390_v45  ;;  %5356 = vmatpush1.bf16.msra.mxu1 %v5355_v44  ;;  %v7392_v46 = vpop.permute.xlu0 %5957 }
  0x84   :  { %10929 = vst [vmem:[#allocation6_spill] sm:$0xff] %v7392_v46  ;;  %6252 = vrot.lane.b32.xlu1 %v7344_v24, %s7157_s12 }
  0x85   :  { %6247 = vrot.lane.b32.xlu0 %v7220_v3, %s7154_s8 }
  0x86   :  { %v7398_v47 = vpop.permute.xlu1 %5972 }
  0x87   :  { %v5968_v48 = vpop.permute.xlu0 %5967  ;;  %v5974_v63 = vunpack.i.l.bf16 %v7398_v47  ;;  %v5975_v18 = vunpack.i.h.bf16 %v7398_v47 }
  0x88   :  { %6262 = vrot.lane.b32.xlu1 %v7352_v25, %s7157_s12  ;;  %v5970_v1 = vunpack.i.h.bf16 %v5968_v48  ;;  %v5969_v2 = vunpack.i.l.bf16 %v5968_v48 }
  0x89   :  { %6257 = vrot.lane.b32.xlu0 %v7344_v24, %s7158_s13  ;;  %v227_v37 = vsel %vm10852_vm1, %v5974_v63, %v5975_v18 }
  0x8a   :  { %v7404_v49 = vpop.permute.xlu1 %5982  ;;  %v226_v14 = vsel %vm10852_vm1, %v5970_v1, %v5974_v63  ;;  %v225_v16 = vsel %vm10852_vm1, %v5969_v2, %v5970_v1 }
  0x8b   :  { %v7406_v50 = vpop.permute.xlu0 %5977 }
  0x8c   :  { %v10741_v51 = vunpack.i.h.bf16 %v7406_v50  ;;  %v5979_v52 = vunpack.i.l.bf16 %v7406_v50  ;;  %6272 = vrot.lane.b32.xlu1 %v7220_v3, %s7155_s10 }
  0x8d   :  { %6267 = vrot.lane.b32.xlu0 %v7352_v25, %s7158_s13 }
  0x8e   :  { %v7417_v53 = vsel %vm10852_vm1, %v5979_v52, %v10741_v51  ;;  %v7419_v54 = vpop.permute.xlu1 %5992  ;;  %v228_v31 = vsel %vm10852_vm1, %v5975_v18, %v5979_v52 }
  0x8f   :  { %10930 = vst [vmem:[#allocation7_spill] sm:$0xff] %v7419_v54  ;;  %v7421_v55 = vpop.permute.xlu0 %5987 }
  0x90   :  { %v10727_v56 = vunpack.i.h.bf16 %v7421_v55  ;;  %v10729_v57 = vunpack.i.l.bf16 %v7421_v55  ;;  %6282 = vrot.lane.b32.xlu1 %v7344_v24, %s7159_s14 }
  0x91   :  { %6277 = vrot.lane.b32.xlu0 %v7220_v3, %s7156_s11 }
  0x92   :  { %v7434_v58 = vsel %vm10852_vm1, %v10729_v57, %v10727_v56  ;;  %v7436_v59 = vpop.permute.xlu1 %6002 }
  0x93   :  { %10931 = vst [vmem:[#allocation8_spill] sm:$0xff] %v7434_v58  ;;  %10932 = vst [vmem:[#allocation9_spill] sm:$0xff] %v7436_v59  ;;  %v7438_v60 = vpop.permute.xlu0 %5997 }
  0x94   :  { %10933 = vst [vmem:[#allocation10_spill] sm:$0xff] %v7438_v60  ;;  %v10723_v61 = vunpack.i.h.bf16 %v7438_v60  ;;  %v10725_v62 = vunpack.i.l.bf16 %v7438_v60  ;;  %6292 = vrot.lane.b32.xlu1 %v7352_v25, %s7159_s14 }
  0x95   :  { %6287 = vrot.lane.b32.xlu0 %v7344_v24, %s7160_s15 }
  0x96   :  { %v7452_v5 = vsel %vm10852_vm1, %v10725_v62, %v10723_v61  ;;  %v6013_v6 = vpop.permute.xlu1 %6012 }
  0x97   :  { %10934 = vst [vmem:[#allocation11_spill] sm:$0xff] %v7452_v5  ;;  %v6014_v7 = vunpack.i.l.bf16 %v6013_v6  ;;  %v6008_v8 = vpop.permute.xlu0 %6007  ;;  %v6015_v12 = vunpack.i.h.bf16 %v6013_v6  ;;  %v6351_v6 = vpack.i.bf16 %v7209_v0, %v7225_v4 }
  0x98   :  { %v6010_v9 = vunpack.i.h.bf16 %v6008_v8  ;;  %v6009_v10 = vunpack.i.l.bf16 %v6008_v8  ;;  %6302 = vrot.lane.b32.xlu1 %v7220_v3, %s7157_s12  ;;  %v7535_v8 = vld [vmem:[%s10717_s0 + $0x20] sm:$0xff] }
  0x99   :  { %6297 = vrot.lane.b32.xlu0 %v7352_v25, %s7160_s15  ;;  %v337_v27 = vsel %vm10851_vm2, %v6014_v7, %v6015_v12  ;;  %v6356_v0 = vpack.i.bf16 %v7535_v8, %v7225_v4 }
  0x9a   :  { %v7458_v13 = vpop.permute.xlu1 %6022  ;;  %v336_v15 = vsel %vm10851_vm2, %v6010_v9, %v6014_v7  ;;  %v335_v17 = vsel %vm10851_vm2, %v6009_v10, %v6010_v9  ;;  %v5359_v41 = vpack.c.bf16 %v337_v27, %v227_v37  ;;  %v7547_v10 = vld [vmem:[%s10717_s0 + $0x10] sm:$0xff] }
  0x9b   :  { %v7465_v19 = vpop.permute.xlu0 %6017  ;;  %v5305_v20 = vpack.c.bf16 %v336_v15, %v226_v14  ;;  %v5307_v21 = vpack.c.bf16 %v335_v17, %v225_v16  ;;  %v7559_v15 = vld [vmem:[%s10717_s0 + $0x28] sm:$0xff]  ;;  %v7592_v27 = vld [vmem:[%s10717_s0 + $0x30] sm:$0xff] }
  0x9c   :  { %v10743_v22 = vunpack.i.h.bf16 %v7465_v19  ;;  %v6019_v23 = vunpack.i.l.bf16 %v7465_v19  ;;  %6312 = vrot.lane.b32.xlu1 %v7344_v24, %s7161_s16  ;;  %v6366_v16 = vpack.i.bf16 %v7559_v15, %v7535_v8  ;;  %v7575_v17 = vld [vmem:[%s10717_s0 + $0x8] sm:$0xff] }
  0x9d   :  { %6307 = vrot.lane.b32.xlu0 %v7220_v3, %s7158_s13  ;;  %5306 = vmatprep.subr.bf16.mxu0 %v5305_v20 }
  0x9e   :  { %v7477_v28 = vsel %vm10851_vm2, %v6019_v23, %v10743_v22  ;;  %5308 = vmatpush1.bf16.msra.mxu0 %v5307_v21  ;;  %v7479_v29 = vpop.permute.xlu1 %6032  ;;  %v338_v33 = vsel %vm10851_vm2, %v6015_v12, %v6019_v23  ;;  %v7552_v12 = vld [vmem:[%s10717_s0 + $0x18] sm:$0xff] }
  0x9f   :  { %10935 = vst [vmem:[#allocation12_spill] sm:$0xff] %v7479_v29  ;;  %v7483_v34 = vpop.permute.xlu0 %6027  ;;  %v5357_v35 = vpack.c.bf16 %v338_v33, %v228_v31  ;;  %v7567_v4 = vpack.i.bf16 %v7552_v12, %v7547_v10 }
  0xa0   :  { %v10728_v38 = vunpack.i.h.bf16 %v7483_v34  ;;  %v10730_v39 = vunpack.i.l.bf16 %v7483_v34  ;;  %6322 = vrot.lane.b32.xlu1 %v7352_v25, %s7161_s16 }
  0xa1   :  { %6317 = vrot.lane.b32.xlu0 %v7344_v24, %s7162_s17  ;;  %5358 = vmatprep.subr.bf16.mxu1 %v5357_v35 }
  0xa2   :  { %v7499_v43 = vsel %vm10851_vm2, %v10730_v39, %v10728_v38  ;;  %5360 = vmatpush1.bf16.msra.mxu1 %v5359_v41  ;;  %v7501_v44 = vpop.permute.xlu1 %6042 }
  0xa3   :  { %10936 = vst [vmem:[#allocation13_spill] sm:$0xff] %v7499_v43  ;;  %10937 = vst [vmem:[#allocation14_spill] sm:$0xff] %v7501_v44  ;;  %v7503_v47 = vpop.permute.xlu0 %6037 }
  0xa4   :  { %10938 = vst [vmem:[#allocation15_spill] sm:$0xff] %v7503_v47  ;;  %v10724_v48 = vunpack.i.h.bf16 %v7503_v47  ;;  %v10726_v52 = vunpack.i.l.bf16 %v7503_v47  ;;  %6332 = vrot.lane.b32.xlu1 %v7220_v3, %s7159_s14 }
  0xa5   :  { %6327 = vrot.lane.b32.xlu0 %v7352_v25, %s7162_s17 }
  0xa6   :  { %v7518_v63 = vsel %vm10851_vm2, %v10726_v52, %v10724_v48  ;;  %v7520_v1 = vpop.permute.xlu1 %6052 }
  0xa7   :  { %10939 = vst [vmem:[#allocation16_spill] sm:$0xff] %v7518_v63  ;;  %v6048_v2 = vpop.permute.xlu0 %6047  ;;  %v6054_v21 = vunpack.i.l.bf16 %v7520_v1 }
  0xa8   :  { %6342 = vrot.lane.b32.xlu1 %v7255_v11, %s7163_s18  ;;  %v6050_v23 = vunpack.i.h.bf16 %v6048_v2  ;;  %v6049_v31 = vunpack.i.l.bf16 %v6048_v2 }
  0xa9   :  { %6337 = vrot.lane.b32.xlu0 %v7220_v3, %s7160_s15 }
  0xaa   :  { %v7530_v7 = vpop.permute.xlu1 %6062  ;;  %v446_v2 = vsel %vm444_vm3, %v6050_v23, %v6054_v21  ;;  %v445_v62 = vsel %vm444_vm3, %v6049_v31, %v6050_v23 }
  0xab   :  { %v7537_v9 = vpop.permute.xlu0 %6057 }
  0xac   :  { %6352 = vrot.lane.b32.xlu1 %v6351_v6, %s7163_s18  ;;  %v6059_v61 = vunpack.i.l.bf16 %v7537_v9  ;;  %v10737_v24 = vunpack.i.h.bf16 %v7537_v9 }
  0xad   :  { %6347 = vrot.lane.b32.xlu0 %v7255_v11, %s7164_s21 }
  0xae   :  { %v7554_v14 = vpop.permute.xlu1 %6072 }
  0xaf   :  { %10940 = vst [vmem:[#allocation17_spill] sm:$0xff] %v7554_v14  ;;  %v7561_v11 = vpop.permute.xlu0 %6067 }
  0xb0   :  { %6362 = vrot.lane.b32.xlu1 %v7220_v3, %s7161_s16  ;;  %v7585_v3 = vpack.i.bf16 %v7535_v8, %v7575_v17 }
  0xb1   :  { %6357 = vrot.lane.b32.xlu0 %v6356_v0, %s7164_s21  ;;  %v7598_v0 = vpack.i.bf16 %v7592_v27, %v7559_v15 }
  0xb2   :  { %v7577_v18 = vpop.permute.xlu1 %6082 }
  0xb3   :  { %10941 = vst [vmem:[#allocation18_spill] sm:$0xff] %v7577_v18  ;;  %v7579_v20 = vpop.permute.xlu0 %6077 }
  0xb4   :  { %10942 = vst [vmem:[#allocation19_spill] sm:$0xff] %v7579_v20  ;;  %6372 = vrot.lane.b32.xlu1 %v7567_v4, %s7165_s20 }
  0xb5   :  { %6367 = vrot.lane.b32.xlu0 %v6366_v16, %s7162_s17  ;;  %v6055_v16 = vunpack.i.h.bf16 %v7520_v1 }
  0xb6   :  { %v6093_v33 = vpop.permute.xlu1 %6092 }
  0xb7   :  { %v6094_v35 = vunpack.i.l.bf16 %v6093_v33  ;;  %v6088_v37 = vpop.permute.xlu0 %6087  ;;  %v6095_v25 = vunpack.i.h.bf16 %v6093_v33 }
  0xb8   :  { %v6090_v41 = vunpack.i.h.bf16 %v6088_v37  ;;  %v6089_v6 = vunpack.i.l.bf16 %v6088_v37  ;;  %6382 = vrot.lane.b32.xlu1 %v7585_v3, %s7165_s20 }
  0xb9   :  { %6377 = vrot.lane.b32.xlu0 %v7567_v4, %s7166_s24  ;;  %v557_v23 = vsel %vm554_vm4, %v6094_v35, %v6095_v25 }
  0xba   :  { %v7605_v48 = vpop.permute.xlu1 %6102  ;;  %v556_v37 = vsel %vm554_vm4, %v6090_v41, %v6094_v35  ;;  %v555_v52 = vsel %vm554_vm4, %v6089_v6, %v6090_v41  ;;  %v447_v6 = vsel %vm444_vm3, %v6054_v21, %v6055_v16  ;;  %v10731_v35 = vunpack.i.h.bf16 %v7561_v11 }
  0xbb   :  { %v7611_v1 = vpop.permute.xlu0 %6097  ;;  %v5309_v33 = vpack.c.bf16 %v556_v37, %v446_v2  ;;  %v5311_v56 = vpack.c.bf16 %v555_v52, %v445_v62  ;;  %v448_v52 = vsel %vm444_vm3, %v6055_v16, %v6059_v61  ;;  %v7633_v2 = vsel %vm444_vm3, %v6059_v61, %v10737_v24 }
  0xbc   :  { %v10740_v38 = vunpack.i.h.bf16 %v7611_v1  ;;  %v6099_v57 = vunpack.i.l.bf16 %v7611_v1  ;;  %6392 = vrot.lane.b32.xlu1 %v7598_v0, %s7163_s18  ;;  %v10733_v37 = vunpack.i.l.bf16 %v7561_v11 }
  0xbd   :  { %6387 = vrot.lane.b32.xlu0 %v7585_v3, %s7166_s24  ;;  %5310 = vmatprep.subr.bf16.mxu0 %v5309_v33 }
  0xbe   :  { %v7623_v31 = vsel %vm554_vm4, %v6099_v57, %v10740_v38  ;;  %5312 = vmatpush1.bf16.msra.mxu0 %v5311_v56  ;;  %v7625_v62 = vpop.permute.xlu1 %6112  ;;  %v558_v41 = vsel %vm554_vm4, %v6095_v25, %v6099_v57  ;;  %v5363_v57 = vpack.c.bf16 %v557_v23, %v447_v6  ;;  %v7661_v16 = vsel %vm444_vm3, %v10733_v37, %v10731_v35 }
  0xbf   :  { %10943 = vst [vmem:[#allocation20_spill] sm:$0xff] %v7625_v62  ;;  %v7637_v33 = vpop.permute.xlu0 %6107  ;;  %v5361_v56 = vpack.c.bf16 %v558_v41, %v448_v52  ;;  %10946 = vst [vmem:[#allocation23_spill] sm:$0xff] %v7661_v16  ;;  %v10738_v23 = vunpack.i.h.bf16 %v7579_v20  ;;  %v10739_v52 = vunpack.i.l.bf16 %v7579_v20 }
  0xc0   :  { %v10732_v39 = vunpack.i.h.bf16 %v7637_v33  ;;  %v10734_v42 = vunpack.i.l.bf16 %v7637_v33  ;;  %6402 = vrot.lane.b32.xlu1 %v7567_v4, %s7167_s25 }
  0xc1   :  { %6397 = vrot.lane.b32.xlu0 %v7598_v0, %s7164_s21  ;;  %5362 = vmatprep.subr.bf16.mxu1 %v5361_v56  ;;  %v7689_v37 = vsel %vm444_vm3, %v10739_v52, %v10738_v23 }
  0xc2   :  { %v7652_v25 = vsel %vm554_vm4, %v10734_v42, %v10732_v39  ;;  %5364 = vmatpush1.bf16.msra.mxu1 %v5363_v57  ;;  %v7654_v21 = vpop.permute.xlu1 %6122  ;;  %10949 = vst [vmem:[#allocation26_spill] sm:$0xff] %v7689_v37  ;;  %v7736_v37 = vld [vmem:[%s10718_s1 + $0x8] sm:$0xff] }
  0xc3   :  { %10944 = vst [vmem:[#allocation21_spill] sm:$0xff] %v7652_v25  ;;  %10945 = vst [vmem:[#allocation22_spill] sm:$0xff] %v7654_v21  ;;  %v7665_v41 = vpop.permute.xlu0 %6117  ;;  %5082 = vmatprep.mubr.msk.f32.mxu0 %vm3317_vm6, %v7736_v37  ;;  %5083 = vmatprep.mubr.msk.f32.mxu1 %vm3317_vm6, %v7736_v37 }
  0xc4   :  { %10947 = vst [vmem:[#allocation24_spill] sm:$0xff] %v7665_v41  ;;  %v10735_v6 = vunpack.i.h.bf16 %v7665_v41  ;;  %v10736_v56 = vunpack.i.l.bf16 %v7665_v41  ;;  %6412 = vrot.lane.b32.xlu1 %v7585_v3, %s7167_s25 }
  0xc5   :  { %6407 = vrot.lane.b32.xlu0 %v7567_v4, %s7168_s26 }
  0xc6   :  { %v7680_v35 = vsel %vm554_vm4, %v10736_v56, %v10735_v6  ;;  %v7682_v39 = vpop.permute.xlu1 %6132 }
  0xc7   :  { %10948 = vst [vmem:[#allocation25_spill] sm:$0xff] %v7680_v35  ;;  %v6128_v57 = vpop.permute.xlu0 %6127 }
  0xc8   :  { %6422 = vrot.lane.b32.xlu1 %v7598_v0, %s7165_s20 }
  0xc9   :  { %6417 = vrot.lane.b32.xlu0 %v7585_v3, %s7168_s26 }
  0xca   :  { %v7697_v6 = vpop.permute.xlu1 %6142 }
  0xcb   :  { %v7699_v56 = vpop.permute.xlu0 %6137 }
  0xcc   :  { %v10742_v61 = vunpack.i.h.bf16 %v7699_v56  ;;  %v6139_v24 = vunpack.i.l.bf16 %v7699_v56  ;;  %6432 = vrot.lane.b32.xlu1 %v7567_v4, %s7169_s29 }
  0xcd   :  { %6427 = vrot.lane.b32.xlu0 %v7598_v0, %s7166_s24 }
  0xce   :  { %v7710_v42 = vsel %vm10855_vm5, %v6139_v24, %v10742_v61  ;;  %v7712_v23 = vpop.permute.xlu1 %6152 }
  0xcf   :  { %10950 = vst [vmem:[#allocation27_spill] sm:$0xff] %v7712_v23  ;;  %v7714_v52 = vpop.permute.xlu0 %6147 }
  0xd0   :  { %v10747_v38 = vunpack.i.h.bf16 %v7714_v52  ;;  %v10748_v51 = vunpack.i.l.bf16 %v7714_v52  ;;  %6442 = vrot.lane.b32.xlu1 %v7585_v3, %s7169_s29 }
  0xd1   :  { %6437 = vrot.lane.b32.xlu0 %v7567_v4, %s7170_s30 }
  0xd2   :  { %v7727_v61 = vsel %vm10855_vm5, %v10748_v51, %v10747_v38  ;;  %v7729_v22 = vpop.permute.xlu1 %6162  ;;  %v6134_v38 = vunpack.i.l.bf16 %v7682_v39  ;;  %v6130_v51 = vunpack.i.h.bf16 %v6128_v57 }
  0xd3   :  { %10951 = vst [vmem:[#allocation28_spill] sm:$0xff] %v7727_v61  ;;  %10952 = vst [vmem:[#allocation29_spill] sm:$0xff] %v7729_v22  ;;  %v7731_v32 = vpop.permute.xlu0 %6157  ;;  %v6129_v22 = vunpack.i.l.bf16 %v6128_v57 }
  0xd4   :  { %10953 = vst [vmem:[#allocation30_spill] sm:$0xff] %v7731_v32  ;;  %v10757_v35 = vunpack.i.h.bf16 %v7731_v32  ;;  %v10758_v4 = vunpack.i.l.bf16 %v7731_v32  ;;  %6452 = vrot.lane.b32.xlu1 %v7598_v0, %s7167_s25  ;;  %v666_v45 = vsel %vm10855_vm5, %v6130_v51, %v6134_v38 }
  0xd5   :  { %6447 = vrot.lane.b32.xlu0 %v7585_v3, %s7170_s30 }
  0xd6   :  { %v7754_v5 = vsel %vm10855_vm5, %v10758_v4, %v10757_v35  ;;  %v6173_v63 = vpop.permute.xlu1 %6172  ;;  %v665_v4 = vsel %vm10855_vm5, %v6129_v22, %v6130_v51 }
  0xd7   :  { %10954 = vst [vmem:[#allocation31_spill] sm:$0xff] %v7754_v5  ;;  %v6174_v18 = vunpack.i.l.bf16 %v6173_v63  ;;  %v6168_v21 = vpop.permute.xlu0 %6167  ;;  %v6175_v44 = vunpack.i.h.bf16 %v6173_v63 }
  0xd8   :  { %v6170_v59 = vunpack.i.h.bf16 %v6168_v21  ;;  %v6169_v3 = vunpack.i.l.bf16 %v6168_v21  ;;  %2834 = vrot.lane.b32.xlu1 %v7547_v10, %s7171_s23  ;;  %v6135_v21 = vunpack.i.h.bf16 %v7682_v39 }
  0xd9   :  { %6457 = vrot.lane.b32.xlu0 %v7598_v0, %s7168_s26  ;;  %v777_v51 = vsel %vm774_vm7, %v6174_v18, %v6175_v44 }
  0xda   :  { %v7760_v57 = vpop.permute.xlu1 %6182  ;;  %v776_v35 = vsel %vm774_vm7, %v6170_v59, %v6174_v18  ;;  %v775_v32 = vsel %vm774_vm7, %v6169_v3, %v6170_v59 }
  0xdb   :  { %v7767_v20 = vpop.permute.xlu0 %6177  ;;  %v5313_v41 = vpack.c.bf16 %v776_v35, %v666_v45  ;;  %v5315_v10 = vpack.c.bf16 %v775_v32, %v665_v4  ;;  %v668_v45 = vsel %vm10855_vm5, %v6135_v21, %v6139_v24 }
  0xdc   :  { %v10775_v63 = vunpack.i.h.bf16 %v7767_v20  ;;  %v6179_v60 = vunpack.i.l.bf16 %v7767_v20  ;;  %2832 = vrot.lane.b32.xlu1 %v7575_v17, %s7171_s23 }
  0xdd   :  { %2836 = vrot.lane.b32.xlu0 %v7552_v12, %s7171_s23  ;;  %5314 = vmatprep.subr.bf16.mxu0 %v5313_v41  ;;  %v667_v12 = vsel %vm10855_vm5, %v6134_v38, %v6135_v21 }
  0xde   :  { %v7779_v59 = vsel %vm774_vm7, %v6179_v60, %v10775_v63  ;;  %5316 = vmatpush1.bf16.msra.mxu0 %v5315_v10  ;;  %v7781_v32 = vpop.permute.xlu1 %6192  ;;  %v778_v22 = vsel %vm774_vm7, %v6175_v44, %v6179_v60  ;;  %v5367_v41 = vpack.c.bf16 %v777_v51, %v667_v12  ;;  %v7799_v60 = vld [vmem:[%s10717_s0 + $0x38] sm:$0xff] }
  0xdf   :  { %10955 = vst [vmem:[#allocation32_spill] sm:$0xff] %v7781_v32  ;;  %v7785_v39 = vpop.permute.xlu0 %6187  ;;  %v5365_v17 = vpack.c.bf16 %v778_v22, %v668_v45  ;;  %v7818_v21 = vpack.i.bf16 %v7799_v60, %v7592_v27 }
  0xe0   :  { %v10773_v35 = vunpack.i.h.bf16 %v7785_v39  ;;  %v10774_v18 = vunpack.i.l.bf16 %v7785_v39  ;;  %6467 = vrot.lane.b32.xlu1 %v7598_v0, %s7170_s30 }
  0xe1   :  { %6462 = vrot.lane.b32.xlu0 %v7598_v0, %s7169_s29  ;;  %5366 = vmatprep.subr.bf16.mxu1 %v5365_v17 }
  0xe2   :  { %v7806_v38 = vsel %vm774_vm7, %v10774_v18, %v10773_v35  ;;  %5368 = vmatpush1.bf16.msra.mxu1 %v5367_v41  ;;  %v7808_v44 = vpop.permute.xlu1 %6202  ;;  %v7848_v41 = vld [vmem:[%s10717_s0 + $0x40] sm:$0xff] }
  0xe3   :  { %10956 = vst [vmem:[#allocation33_spill] sm:$0xff] %v7806_v38  ;;  %v7810_v24 = vpop.permute.xlu0 %6197  ;;  %v10777_v51 = vunpack.i.h.bf16 %v7808_v44  ;;  %v6204_v45 = vunpack.i.l.bf16 %v7808_v44 }
  0xe4   :  { %10957 = vst [vmem:[#allocation34_spill] sm:$0xff] %v7810_v24  ;;  %v10771_v0 = vunpack.i.h.bf16 %v7810_v24  ;;  %v10772_v3 = vunpack.i.l.bf16 %v7810_v24  ;;  %2840 = vrot.lane.b32.xlu1 %v7559_v15, %s7171_s23 }
  0xe5   :  { %2838 = vrot.lane.b32.xlu0 %v7535_v8, %s7171_s23 }
  0xe6   :  { %v7831_v15 = vsel %vm774_vm7, %v10772_v3, %v10771_v0  ;;  %v7833_v22 = vpop.permute.xlu1 %6212  ;;  %v7853_v0 = vld [vmem:[%s10717_s0 + $0x48] sm:$0xff] }
  0xe7   :  { %10958 = vst [vmem:[#allocation35_spill] sm:$0xff] %v7831_v15  ;;  %v7835_v27 = vpop.permute.xlu0 %6207  ;;  %v6214_v8 = vunpack.i.l.bf16 %v7833_v22  ;;  %v7866_v63 = vpack.i.bf16 %v7853_v0, %v7848_v41 }
  0xe8   :  { %v6210_v17 = vunpack.i.h.bf16 %v7835_v27  ;;  %v6209_v12 = vunpack.i.l.bf16 %v7835_v27  ;;  %6477 = vrot.lane.b32.xlu1 %v7818_v21, %s7154_s8  ;;  %v886_v27 = vsel %vm10854_vm8, %v6204_v45, %v10777_v51 }
  0xe9   :  { %6472 = vrot.lane.b32.xlu0 %v7818_v21, %s7153_s7 }
  0xea   :  { %v7856_v3 = vpop.permute.xlu1 %6222  ;;  %v996_v10 = vsel %vm10853_vm9, %v6209_v12, %v6210_v17 }
  0xeb   :  { %v6218_v35 = vpop.permute.xlu0 %6217  ;;  %v5317_v18 = vpack.c.bf16 %v996_v10, %v886_v27  ;;  %v10787_v5 = vunpack.i.h.bf16 %v7856_v3  ;;  %v6224_v51 = vunpack.i.l.bf16 %v7856_v3  ;;  %v885_v10 = vsel %vm10854_vm8, %v6214_v8, %v6204_v45 }
  0xec   :  { %v6219_v4 = vunpack.i.l.bf16 %v6218_v35  ;;  %6487 = vrot.lane.b32.xlu1 %v7818_v21, %s7156_s11 }
  0xed   :  { %6482 = vrot.lane.b32.xlu0 %v7818_v21, %s7155_s10  ;;  %5318 = vmatprep.subr.bf16.mxu0 %v5317_v18 }
  0xee   :  { %v7872_v15 = vpop.permute.xlu1 %6232  ;;  %v995_v27 = vsel %vm10853_vm9, %v6219_v4, %v6209_v12  ;;  %v1106_v4 = vsel %vm10804_vm10, %v6224_v51, %v10787_v5 }
  0xef   :  { %v7876_v24 = vpop.permute.xlu0 %6227  ;;  %v5319_v61 = vpack.c.bf16 %v995_v27, %v885_v10  ;;  %v6234_v18 = vunpack.i.l.bf16 %v7872_v15 }
  0xf0   :  { %v10788_v38 = vunpack.i.h.bf16 %v7876_v24  ;;  %v6229_v47 = vunpack.i.l.bf16 %v7876_v24  ;;  %6497 = vrot.lane.b32.xlu1 %v7866_v63, %s7154_s8 }
  0xf1   :  { %6492 = vrot.lane.b32.xlu0 %v7866_v63, %s7153_s7  ;;  %5320 = vmatpush1.bf16.msra.mxu0 %v5319_v61  ;;  %v6220_v61 = vunpack.i.h.bf16 %v6218_v35 }
  0xf2   :  { %v7885_v45 = vpop.permute.xlu1 %6242  ;;  %v1216_v8 = vsel %vm10805_vm11, %v6229_v47, %v10788_v38  ;;  %v1105_v38 = vsel %vm10804_vm10, %v6234_v18, %v6224_v51 }
  0xf3   :  { %v7893_v12 = vpop.permute.xlu0 %6237  ;;  %v5321_v10 = vpack.c.bf16 %v1216_v8, %v1106_v4  ;;  %v6244_v25 = vunpack.i.l.bf16 %v7885_v45  ;;  %v6215_v8 = vunpack.i.h.bf16 %v7833_v22 }
  0xf4   :  { %v6239_v27 = vunpack.i.l.bf16 %v7893_v12  ;;  %6507 = vrot.lane.b32.xlu1 %v7818_v21, %s7158_s13 }
  0xf5   :  { %6502 = vrot.lane.b32.xlu0 %v7818_v21, %s7157_s12  ;;  %5322 = vmatprep.subr.bf16.mxu0 %v5321_v10  ;;  %v10959_v10 = vunpack.i.h.bf16 %v7885_v45 }
  0xf6   :  { %v7902_v5 = vpop.permute.xlu1 %6252  ;;  %v1215_v4 = vsel %vm10805_vm11, %v6239_v27, %v6229_v47  ;;  %v888_v47 = vsel %vm10854_vm8, %v6215_v8, %v6244_v25 }
  0xf7   :  { %v7907_v58 = vpop.permute.xlu0 %6247  ;;  %v5323_v43 = vpack.c.bf16 %v1215_v4, %v1105_v38  ;;  %v7916_v23 = vsel %vm10854_vm8, %v6244_v25, %v10959_v10  ;;  %v997_v38 = vsel %vm10853_vm9, %v6210_v17, %v6220_v61  ;;  %v6254_v22 = vunpack.i.l.bf16 %v7902_v5 }
  0xf8   :  { %v10793_v35 = vunpack.i.h.bf16 %v7907_v58  ;;  %v6249_v16 = vunpack.i.l.bf16 %v7907_v58  ;;  %6517 = vrot.lane.b32.xlu1 %v7866_v63, %s7156_s11  ;;  %v10960_v25 = vunpack.i.h.bf16 %v7808_v44 }
  0xf9   :  { %6512 = vrot.lane.b32.xlu0 %v7866_v63, %s7155_s10  ;;  %5324 = vmatpush1.bf16.msra.mxu0 %v5323_v43 }
  0xfa   :  { %v7927_v18 = vsel %vm10853_vm9, %v6249_v16, %v10793_v35  ;;  %v7929_v27 = vpop.permute.xlu1 %6262  ;;  %v998_v4 = vsel %vm10853_vm9, %v6220_v61, %v6249_v16  ;;  %v887_v17 = vsel %vm10854_vm8, %v10960_v25, %v6215_v8  ;;  %v10961_v61 = vunpack.i.h.bf16 %v7902_v5 }
  0xfb   :  { %v7932_v10 = vpop.permute.xlu0 %6257  ;;  %v5369_v43 = vpack.c.bf16 %v998_v4, %v888_v47  ;;  %v5371_v46 = vpack.c.bf16 %v997_v38, %v887_v17  ;;  %v6264_v16 = vunpack.i.l.bf16 %v7929_v27 }
  0xfc   :  { %v10795_v32 = vunpack.i.h.bf16 %v7932_v10  ;;  %v6259_v35 = vunpack.i.l.bf16 %v7932_v10  ;;  %6527 = vrot.lane.b32.xlu1 %v7818_v21, %s7160_s15  ;;  %v1326_v8 = vsel %vm10813_vm12, %v6254_v22, %v10961_v61 }
  0xfd   :  { %6522 = vrot.lane.b32.xlu0 %v7818_v21, %s7159_s14  ;;  %5370 = vmatprep.subr.bf16.mxu1 %v5369_v43  ;;  %v1325_v51 = vsel %vm10813_vm12, %v6264_v16, %v6254_v22 }
  0xfe   :  { %5372 = vmatpush1.bf16.msra.mxu1 %v5371_v46  ;;  %v7946_v44 = vpop.permute.xlu1 %6272  ;;  %v1436_v47 = vsel %vm10814_vm13, %v6259_v35, %v10795_v32  ;;  %v6240_v46 = vunpack.i.h.bf16 %v7893_v12 }
  0xff   :  { %v7954_v4 = vpop.permute.xlu0 %6267  ;;  %v5325_v38 = vpack.c.bf16 %v1436_v47, %v1326_v8  ;;  %v6274_v17 = vunpack.i.l.bf16 %v7946_v44  ;;  %v6235_v47 = vunpack.i.h.bf16 %v7872_v15 }
 0x100   :  { %v6269_v25 = vunpack.i.l.bf16 %v7954_v4  ;;  %6537 = vrot.lane.b32.xlu1 %v7866_v63, %s7158_s13 }
 0x101   :  { %6532 = vrot.lane.b32.xlu0 %v7866_v63, %s7157_s12  ;;  %5326 = vmatprep.subr.bf16.mxu0 %v5325_v38  ;;  %v10962_v38 = vunpack.i.h.bf16 %v7946_v44  ;;  %v1108_v15 = vsel %vm10804_vm10, %v6235_v47, %v6274_v17 }
 0x102   :  { %v7964_v61 = vpop.permute.xlu1 %6282  ;;  %v1435_v8 = vsel %vm10814_vm13, %v6269_v25, %v6259_v35  ;;  %v10964_v35 = vunpack.i.h.bf16 %v7876_v24  ;;  %v10966_v24 = vunpack.i.h.bf16 %v7856_v3 }
 0x103   :  { %v7969_v32 = vpop.permute.xlu0 %6277  ;;  %v5327_v14 = vpack.c.bf16 %v1435_v8, %v1325_v51  ;;  %v7978_v62 = vsel %vm10804_vm10, %v6274_v17, %v10962_v38  ;;  %v6284_v16 = vunpack.i.l.bf16 %v7964_v61 }
 0x104   :  { %v10798_v12 = vunpack.i.h.bf16 %v7969_v32  ;;  %v6279_v43 = vunpack.i.l.bf16 %v7969_v32  ;;  %6547 = vrot.lane.b32.xlu1 %v7818_v21, %s7162_s17  ;;  %10963 = vst [vmem:[#allocation36_spill] sm:$0xff] %v7978_v62  ;;  %v1217_v51 = vsel %vm10805_vm11, %v10964_v35, %v6240_v46  ;;  %v1107_v38 = vsel %vm10804_vm10, %v10966_v24, %v6235_v47 }
 0x105   :  { %6542 = vrot.lane.b32.xlu0 %v7818_v21, %s7161_s16  ;;  %5328 = vmatpush1.bf16.msra.mxu0 %v5327_v14  ;;  %v5375_v54 = vpack.c.bf16 %v1217_v51, %v1107_v38  ;;  %v10968_v47 = vunpack.i.h.bf16 %v7964_v61  ;;  %vm10827_vm10 = vcmask 56320  }
 0x106   :  { %v7991_v25 = vsel %vm10805_vm11, %v6279_v43, %v10798_v12  ;;  %v7993_v8 = vpop.permute.xlu1 %6292  ;;  %v1218_v14 = vsel %vm10805_vm11, %v6240_v46, %v6279_v43  ;;  %v8009_v46 = vpack.i.bf16 %v7848_v41, %v7799_v60  ;;  %vm10828_vm11 = vcmask 48128  }
 0x107   :  { %10965 = vst [vmem:[#allocation37_spill] sm:$0xff] %v7991_v25  ;;  %v7996_v21 = vpop.permute.xlu0 %6287  ;;  %v5373_v17 = vpack.c.bf16 %v1218_v14, %v1108_v15  ;;  %v6294_v3 = vunpack.i.l.bf16 %v7993_v8  ;;  %v1546_v15 = vsel %vm10820_vm14, %v6284_v16, %v10968_v47 }
 0x108   :  { %v10800_v22 = vunpack.i.h.bf16 %v7996_v21  ;;  %v6289_v12 = vunpack.i.l.bf16 %v7996_v21  ;;  %6557 = vrot.lane.b32.xlu1 %v7866_v63, %s7160_s15 }
 0x109   :  { %6552 = vrot.lane.b32.xlu0 %v7866_v63, %s7159_s14  ;;  %5374 = vmatprep.subr.bf16.mxu1 %v5373_v17 }
 0x10a   :  { %5376 = vmatpush1.bf16.msra.mxu1 %v5375_v54  ;;  %v8014_v43 = vpop.permute.xlu1 %6302  ;;  %v1656_v51 = vsel %vm10821_vm15, %v6289_v12, %v10800_v22  ;;  %v6270_v54 = vunpack.i.h.bf16 %v7954_v4  ;;  %v1545_v22 = vsel %vm10820_vm14, %v6294_v3, %v6284_v16  ;;  %v8057_v16 = vld [vmem:[%s10717_s0 + $0x50] sm:$0xff] }
 0x10b   :  { %10967 = vst [vmem:[#allocation38_spill] sm:$0xff] %v8014_v43  ;;  %v8022_v14 = vpop.permute.xlu0 %6297  ;;  %v5329_v24 = vpack.c.bf16 %v1656_v51, %v1546_v15  ;;  %v6304_v35 = vunpack.i.l.bf16 %v8014_v43  ;;  %v6265_v51 = vunpack.i.h.bf16 %v7929_v27 }
 0x10c   :  { %v6299_v38 = vunpack.i.l.bf16 %v8022_v14  ;;  %6567 = vrot.lane.b32.xlu1 %v8009_v46, %s7164_s21 }
 0x10d   :  { %6562 = vrot.lane.b32.xlu0 %v8009_v46, %s7163_s18  ;;  %5330 = vmatprep.subr.bf16.mxu0 %v5329_v24  ;;  %v10970_v24 = vunpack.i.h.bf16 %v8014_v43  ;;  %v1328_v27 = vsel %vm10813_vm12, %v6265_v51, %v6304_v35 }
 0x10e   :  { %v8032_v47 = vpop.permute.xlu1 %6312  ;;  %v1655_v15 = vsel %vm10821_vm15, %v6299_v38, %v6289_v12  ;;  %v10972_v12 = vunpack.i.h.bf16 %v7932_v10 }
 0x10f   :  { %v8037_v29 = vpop.permute.xlu0 %6307  ;;  %v5331_v36 = vpack.c.bf16 %v1655_v15, %v1545_v22  ;;  %v8046_v62 = vsel %vm10813_vm12, %v6304_v35, %v10970_v24  ;;  %v6314_v38 = vunpack.i.l.bf16 %v8032_v47  ;;  %v10974_v24 = vunpack.i.h.bf16 %v7902_v5 }
 0x110   :  { %10969 = vst [vmem:[#allocation39_spill] sm:$0xff] %v8037_v29  ;;  %v10807_v4 = vunpack.i.h.bf16 %v8037_v29  ;;  %v6309_v17 = vunpack.i.l.bf16 %v8037_v29  ;;  %6577 = vrot.lane.b32.xlu1 %v7866_v63, %s7162_s17  ;;  %10971 = vst [vmem:[#allocation40_spill] sm:$0xff] %v8046_v62  ;;  %v1437_v22 = vsel %vm10814_vm13, %v10972_v12, %v6270_v54 }
 0x111   :  { %6572 = vrot.lane.b32.xlu0 %v7866_v63, %s7161_s16  ;;  %5332 = vmatpush1.bf16.msra.mxu0 %v5331_v36  ;;  %v1327_v12 = vsel %vm10813_vm12, %v10974_v24, %v6265_v51  ;;  %v10976_v51 = vunpack.i.h.bf16 %v8032_v47  ;;  %vm10837_vm12 = vcmask 457728  }
 0x112   :  { %v8064_v36 = vsel %vm10814_vm13, %v6309_v17, %v10807_v4  ;;  %v8066_v63 = vpop.permute.xlu1 %6322  ;;  %v1438_v10 = vsel %vm10814_vm13, %v6270_v54, %v6309_v17  ;;  %v5379_v29 = vpack.c.bf16 %v1437_v22, %v1327_v12  ;;  %v8082_v54 = vpack.i.bf16 %v8057_v16, %v7853_v0 }
 0x113   :  { %10973 = vst [vmem:[#allocation41_spill] sm:$0xff] %v8064_v36  ;;  %v8069_v35 = vpop.permute.xlu0 %6317  ;;  %v5377_v15 = vpack.c.bf16 %v1438_v10, %v1328_v27  ;;  %v6324_v5 = vunpack.i.l.bf16 %v8066_v63  ;;  %v1766_v27 = vsel %vm10827_vm10, %v6314_v38, %v10976_v51  ;;  %vm10838_vm13 = vcmask 449536  }
 0x114   :  { %v10809_v43 = vunpack.i.h.bf16 %v8069_v35  ;;  %v6319_v4 = vunpack.i.l.bf16 %v8069_v35  ;;  %6587 = vrot.lane.b32.xlu1 %v8009_v46, %s7166_s24 }
 0x115   :  { %6582 = vrot.lane.b32.xlu0 %v8009_v46, %s7165_s20  ;;  %5378 = vmatprep.subr.bf16.mxu1 %v5377_v15 }
 0x116   :  { %5380 = vmatpush1.bf16.msra.mxu1 %v5379_v29  ;;  %v8087_v17 = vpop.permute.xlu1 %6332  ;;  %v1876_v22 = vsel %vm10828_vm11, %v6319_v4, %v10809_v43  ;;  %v6300_v29 = vunpack.i.h.bf16 %v8022_v14  ;;  %v1765_v43 = vsel %vm10827_vm10, %v6324_v5, %v6314_v38 }
 0x117   :  { %10975 = vst [vmem:[#allocation42_spill] sm:$0xff] %v8087_v17  ;;  %v8095_v10 = vpop.permute.xlu0 %6327  ;;  %v5333_v24 = vpack.c.bf16 %v1876_v22, %v1766_v27  ;;  %v6334_v3 = vunpack.i.l.bf16 %v8087_v17  ;;  %v6295_v22 = vunpack.i.h.bf16 %v7993_v8 }
 0x118   :  { %v6329_v12 = vunpack.i.l.bf16 %v8095_v10  ;;  %6597 = vrot.lane.b32.xlu1 %v8082_v54, %s7164_s21 }
 0x119   :  { %6592 = vrot.lane.b32.xlu0 %v8082_v54, %s7163_s18  ;;  %5334 = vmatprep.subr.bf16.mxu0 %v5333_v24  ;;  %v10978_v24 = vunpack.i.h.bf16 %v8087_v17  ;;  %v1548_v8 = vsel %vm10820_vm14, %v6295_v22, %v6334_v3 }
 0x11a   :  { %v8105_v51 = vpop.permute.xlu1 %6342  ;;  %v1875_v27 = vsel %vm10828_vm11, %v6329_v12, %v6319_v4 }
 0x11b   :  { %v8110_v62 = vpop.permute.xlu0 %6337  ;;  %v5335_v36 = vpack.c.bf16 %v1875_v27, %v1765_v43  ;;  %v8119_v25 = vsel %vm10820_vm14, %v6334_v3, %v10978_v24  ;;  %v10980_v43 = vunpack.i.h.bf16 %v7996_v21  ;;  %v6344_v5 = vunpack.i.l.bf16 %v8105_v51 }
 0x11c   :  { %10977 = vst [vmem:[#allocation43_spill] sm:$0xff] %v8110_v62  ;;  %v10816_v14 = vunpack.i.h.bf16 %v8110_v62  ;;  %v6339_v15 = vunpack.i.l.bf16 %v8110_v62  ;;  %6607 = vrot.lane.b32.xlu1 %v8009_v46, %s7168_s26  ;;  %10979 = vst [vmem:[#allocation44_spill] sm:$0xff] %v8119_v25  ;;  %v10982_v21 = vunpack.i.h.bf16 %v7964_v61 }
 0x11d   :  { %6602 = vrot.lane.b32.xlu0 %v8009_v46, %s7167_s25  ;;  %5336 = vmatpush1.bf16.msra.mxu0 %v5335_v36  ;;  %v1657_v4 = vsel %vm10821_vm15, %v10980_v43, %v6300_v29 }
 0x11e   :  { %v8132_v12 = vsel %vm10821_vm15, %v6339_v15, %v10816_v14  ;;  %v8134_v27 = vpop.permute.xlu1 %6352  ;;  %v1658_v36 = vsel %vm10821_vm15, %v6300_v29, %v6339_v15  ;;  %v1547_v43 = vsel %vm10820_vm14, %v10982_v21, %v6295_v22  ;;  %v10984_v15 = vunpack.i.h.bf16 %v8105_v51 }
 0x11f   :  { %10981 = vst [vmem:[#allocation45_spill] sm:$0xff] %v8132_v12  ;;  %v8137_v24 = vpop.permute.xlu0 %6347  ;;  %v5381_v3 = vpack.c.bf16 %v1658_v36, %v1548_v8  ;;  %v5383_v62 = vpack.c.bf16 %v1657_v4, %v1547_v43  ;;  %v6354_v61 = vunpack.i.l.bf16 %v8134_v27  ;;  %vm10847_vm14 = vcmask 441344  }
 0x120   :  { %v10818_v17 = vunpack.i.h.bf16 %v8137_v24  ;;  %v6349_v14 = vunpack.i.l.bf16 %v8137_v24  ;;  %6617 = vrot.lane.b32.xlu1 %v8082_v54, %s7166_s24  ;;  %v1986_v22 = vsel %vm10837_vm12, %v6344_v5, %v10984_v15  ;;  %vm2314_vm15 = vcmask 375808  }
 0x121   :  { %6612 = vrot.lane.b32.xlu0 %v8082_v54, %s7165_s20  ;;  %5382 = vmatprep.subr.bf16.mxu1 %v5381_v3  ;;  %v1985_v38 = vsel %vm10837_vm12, %v6354_v61, %v6344_v5 }
 0x122   :  { %5384 = vmatpush1.bf16.msra.mxu1 %v5383_v62  ;;  %v8151_v29 = vpop.permute.xlu1 %6362  ;;  %v2096_v8 = vsel %vm10838_vm13, %v6349_v14, %v10818_v17  ;;  %v6330_v62 = vunpack.i.h.bf16 %v8095_v10 }
 0x123   :  { %10983 = vst [vmem:[#allocation46_spill] sm:$0xff] %v8151_v29  ;;  %v8159_v36 = vpop.permute.xlu0 %6357  ;;  %v5337_v4 = vpack.c.bf16 %v2096_v8, %v1986_v22  ;;  %v6364_v43 = vunpack.i.l.bf16 %v8151_v29  ;;  %v6325_v8 = vunpack.i.h.bf16 %v8066_v63 }
 0x124   :  { %v6359_v21 = vunpack.i.l.bf16 %v8159_v36  ;;  %6627 = vrot.lane.b32.xlu1 %v8009_v46, %s7170_s30 }
 0x125   :  { %6622 = vrot.lane.b32.xlu0 %v8009_v46, %s7169_s29  ;;  %5338 = vmatprep.subr.bf16.mxu0 %v5337_v4  ;;  %v10986_v46 = vunpack.i.h.bf16 %v8151_v29  ;;  %v1768_v63 = vsel %vm10827_vm10, %v6325_v8, %v6364_v43 }
 0x126   :  { %v8169_v15 = vpop.permute.xlu1 %6372  ;;  %v2095_v22 = vsel %vm10838_vm13, %v6359_v21, %v6349_v14  ;;  %v10988_v14 = vunpack.i.h.bf16 %v8069_v35  ;;  %v10990_v35 = vunpack.i.h.bf16 %v8032_v47 }
 0x127   :  { %v8174_v17 = vpop.permute.xlu0 %6367  ;;  %v5339_v25 = vpack.c.bf16 %v2095_v22, %v1985_v38  ;;  %v8183_v4 = vsel %vm10827_vm10, %v6364_v43, %v10986_v46  ;;  %v6374_v61 = vunpack.i.l.bf16 %v8169_v15 }
 0x128   :  { %10985 = vst [vmem:[#allocation47_spill] sm:$0xff] %v8174_v17  ;;  %v10823_v10 = vunpack.i.h.bf16 %v8174_v17  ;;  %v6369_v3 = vunpack.i.l.bf16 %v8174_v17  ;;  %6637 = vrot.lane.b32.xlu1 %v8082_v54, %s7168_s26  ;;  %10987 = vst [vmem:[#allocation48_spill] sm:$0xff] %v8183_v4  ;;  %v1877_v38 = vsel %vm10828_vm11, %v10988_v14, %v6330_v62  ;;  %v1767_v14 = vsel %vm10827_vm10, %v10990_v35, %v6325_v8 }
 0x129   :  { %6632 = vrot.lane.b32.xlu0 %v8082_v54, %s7167_s25  ;;  %5340 = vmatpush1.bf16.msra.mxu0 %v5339_v25  ;;  %vm2424_vm10 = vcmask 367616  }
 0x12a   :  { %v8196_v21 = vsel %vm10828_vm11, %v6369_v3, %v10823_v10  ;;  %v8198_v22 = vpop.permute.xlu1 %6382  ;;  %v1878_v25 = vsel %vm10828_vm11, %v6330_v62, %v6369_v3  ;;  %v8215_v62 = vld [vmem:[%s10717_s0 + $0x30] sm:$0xff]  ;;  %v5387_v3 = vpack.c.bf16 %v1877_v38, %v1767_v14  ;;  %vm2534_vm11 = vcmask 359424  }
 0x12b   :  { %10989 = vst [vmem:[#allocation49_spill] sm:$0xff] %v8196_v21  ;;  %v8201_v46 = vpop.permute.xlu0 %6377  ;;  %v5385_v43 = vpack.c.bf16 %v1878_v25, %v1768_v63  ;;  %v6384_v47 = vunpack.i.l.bf16 %v8198_v22  ;;  %v10992_v63 = vunpack.i.h.bf16 %v8169_v15 }
 0x12c   :  { %v10824_v29 = vunpack.i.h.bf16 %v8201_v46  ;;  %v6379_v10 = vunpack.i.l.bf16 %v8201_v46  ;;  %2844 = vrot.lane.b32.xlu1 %v7799_v60, %s7171_s23 }
 0x12d   :  { %2842 = vrot.lane.b32.xlu0 %v8215_v62, %s7171_s23  ;;  %5386 = vmatprep.subr.bf16.mxu1 %v5385_v43  ;;  %v2206_v25 = vsel %vm10847_vm14, %v6374_v61, %v10992_v63  ;;  %v6360_v43 = vunpack.i.h.bf16 %v8159_v36  ;;  %v8241_v63 = vld [vmem:[%s10717_s0 + $0x58] sm:$0xff]  ;;  %v6355_v36 = vunpack.i.h.bf16 %v8134_v27 }
 0x12e   :  { %5388 = vmatpush1.bf16.msra.mxu1 %v5387_v3  ;;  %v8220_v8 = vpop.permute.xlu1 %6392  ;;  %v2316_v60 = vsel %vm2314_vm15, %v6379_v10, %v10824_v29 }
 0x12f   :  { %10991 = vst [vmem:[#allocation50_spill] sm:$0xff] %v8220_v8  ;;  %v8228_v35 = vpop.permute.xlu0 %6387  ;;  %v5341_v38 = vpack.c.bf16 %v2316_v60, %v2206_v25  ;;  %v6394_v5 = vunpack.i.l.bf16 %v8220_v8  ;;  %v2205_v60 = vsel %vm10847_vm14, %v6384_v47, %v6374_v61  ;;  %v10994_v61 = vunpack.i.h.bf16 %v8220_v8 }
 0x130   :  { %v6389_v14 = vunpack.i.l.bf16 %v8228_v35  ;;  %6647 = vrot.lane.b32.xlu1 %v8082_v54, %s7170_s30 }
 0x131   :  { %6642 = vrot.lane.b32.xlu0 %v8082_v54, %s7169_s29  ;;  %5342 = vmatprep.subr.bf16.mxu0 %v5341_v38  ;;  %v8256_v38 = vpack.i.bf16 %v8241_v63, %v8057_v16  ;;  %v1988_v27 = vsel %vm10837_vm12, %v6355_v36, %v6394_v5 }
 0x132   :  { %v8243_v25 = vpop.permute.xlu1 %6402  ;;  %v2315_v29 = vsel %vm2314_vm15, %v6389_v14, %v6379_v10  ;;  %v8261_v10 = vsel %vm10837_vm12, %v6394_v5, %v10994_v61 }
 0x133   :  { %v8248_v3 = vpop.permute.xlu0 %6397  ;;  %v5343_v4 = vpack.c.bf16 %v2315_v29, %v2205_v60  ;;  %10995 = vst [vmem:[#allocation52_spill] sm:$0xff] %v8261_v10  ;;  %v10996_v29 = vunpack.i.h.bf16 %v8137_v24  ;;  %v6404_v16 = vunpack.i.l.bf16 %v8243_v25  ;;  %v10998_v24 = vunpack.i.h.bf16 %v8105_v51  ;;  %v8295_v51 = vld [vmem:[%s10717_s0 + $0x60] sm:$0xff] }
 0x134   :  { %10993 = vst [vmem:[#allocation51_spill] sm:$0xff] %v8248_v3  ;;  %v10829_v21 = vunpack.i.h.bf16 %v8248_v3  ;;  %v6399_v54 = vunpack.i.l.bf16 %v8248_v3  ;;  %2848 = vrot.lane.b32.xlu1 %v7853_v0, %s7171_s23 }
 0x135   :  { %2846 = vrot.lane.b32.xlu0 %v7848_v41, %s7171_s23  ;;  %5344 = vmatpush1.bf16.msra.mxu0 %v5343_v4  ;;  %v2097_v47 = vsel %vm10838_vm13, %v10996_v29, %v6360_v43  ;;  %v1987_v61 = vsel %vm10837_vm12, %v10998_v24, %v6355_v36  ;;  %v6390_v29 = vunpack.i.h.bf16 %v8228_v35  ;;  %vm2644_vm12 = vcmask 293888  }
 0x136   :  { %v8274_v14 = vsel %vm10838_vm13, %v6399_v54, %v10829_v21  ;;  %v8276_v60 = vpop.permute.xlu1 %6412  ;;  %v2098_v41 = vsel %vm10838_vm13, %v6360_v43, %v6399_v54  ;;  %v5391_v8 = vpack.c.bf16 %v2097_v47, %v1987_v61  ;;  %v8300_v43 = vld [vmem:[%s10717_s0 + $0x68] sm:$0xff]  ;;  %vm2754_vm13 = vcmask 285696  }
 0x137   :  { %10997 = vst [vmem:[#allocation53_spill] sm:$0xff] %v8274_v14  ;;  %v8279_v4 = vpop.permute.xlu0 %6407  ;;  %v5389_v5 = vpack.c.bf16 %v2098_v41, %v1988_v27  ;;  %10999 = vst [vmem:[#allocation54_spill] sm:$0xff] %v8300_v43  ;;  %v6414_v36 = vunpack.i.l.bf16 %v8276_v60  ;;  %v11001_v27 = vunpack.i.h.bf16 %v8243_v25  ;;  %v6385_v14 = vunpack.i.h.bf16 %v8198_v22 }
 0x138   :  { %v10832_v0 = vunpack.i.h.bf16 %v8279_v4  ;;  %v6409_v21 = vunpack.i.l.bf16 %v8279_v4  ;;  %6657 = vrot.lane.b32.xlu1 %v8256_v38, %s7154_s8  ;;  %v11005_v22 = vunpack.i.h.bf16 %v8201_v46  ;;  %v11007_v46 = vunpack.i.h.bf16 %v8169_v15 }
 0x139   :  { %6652 = vrot.lane.b32.xlu0 %v8256_v38, %s7153_s7  ;;  %5390 = vmatprep.subr.bf16.mxu1 %v5389_v5  ;;  %v2426_v47 = vsel %vm2424_vm10, %v6404_v16, %v11001_v27 }
 0x13a   :  { %5392 = vmatpush1.bf16.msra.mxu1 %v5391_v8  ;;  %v8303_v54 = vpop.permute.xlu1 %6422  ;;  %v2536_v41 = vsel %vm2534_vm11, %v6409_v21, %v10832_v0  ;;  %v8318_v8 = vpack.i.bf16 %v8300_v43, %v8295_v51 }
 0x13b   :  { %11000 = vst [vmem:[#allocation55_spill] sm:$0xff] %v8303_v54  ;;  %v8311_v5 = vpop.permute.xlu0 %6417  ;;  %v5345_v24 = vpack.c.bf16 %v2536_v41, %v2426_v47  ;;  %v6424_v10 = vunpack.i.l.bf16 %v8303_v54  ;;  %v2425_v41 = vsel %vm2424_vm10, %v6414_v36, %v6404_v16 }
 0x13c   :  { %v6419_v61 = vunpack.i.l.bf16 %v8311_v5  ;;  %6667 = vrot.lane.b32.xlu1 %v8256_v38, %s7156_s11 }
 0x13d   :  { %6662 = vrot.lane.b32.xlu0 %v8256_v38, %s7155_s10  ;;  %5346 = vmatprep.subr.bf16.mxu0 %v5345_v24  ;;  %v11003_v24 = vunpack.i.h.bf16 %v8303_v54 }
 0x13e   :  { %v8325_v47 = vpop.permute.xlu1 %6432  ;;  %v2535_v0 = vsel %vm2534_vm11, %v6419_v61, %v6409_v21  ;;  %v2208_v21 = vsel %vm10847_vm14, %v6385_v14, %v6424_v10 }
 0x13f   :  { %v8330_v3 = vpop.permute.xlu0 %6427  ;;  %v5347_v17 = vpack.c.bf16 %v2535_v0, %v2425_v41  ;;  %v8339_v12 = vsel %vm10847_vm14, %v6424_v10, %v11003_v24  ;;  %v2317_v0 = vsel %vm2314_vm15, %v11005_v22, %v6390_v29  ;;  %v6434_v36 = vunpack.i.l.bf16 %v8325_v47 }
 0x140   :  { %11002 = vst [vmem:[#allocation56_spill] sm:$0xff] %v8330_v3  ;;  %v10840_v35 = vunpack.i.h.bf16 %v8330_v3  ;;  %v6429_v27 = vunpack.i.l.bf16 %v8330_v3  ;;  %6677 = vrot.lane.b32.xlu1 %v8318_v8, %s7154_s8  ;;  %11004 = vst [vmem:[#allocation57_spill] sm:$0xff] %v8339_v12  ;;  %v2207_v22 = vsel %vm10847_vm14, %v11007_v46, %v6385_v14  ;;  %vm2864_vm14 = vcmask 277504  }
 0x141   :  { %6672 = vrot.lane.b32.xlu0 %v8318_v8, %s7153_s7  ;;  %5348 = vmatpush1.bf16.msra.mxu0 %v5347_v17  ;;  %v5395_v3 = vpack.c.bf16 %v2317_v0, %v2207_v22  ;;  %v6420_v22 = vunpack.i.h.bf16 %v8311_v5 }
 0x142   :  { %v8352_v61 = vsel %vm2314_vm15, %v6429_v27, %v10840_v35  ;;  %v8354_v41 = vpop.permute.xlu1 %6442  ;;  %v2318_v17 = vsel %vm2314_vm15, %v6390_v29, %v6429_v27  ;;  %v11008_v29 = vunpack.i.h.bf16 %v8325_v47 }
 0x143   :  { %11006 = vst [vmem:[#allocation58_spill] sm:$0xff] %v8352_v61  ;;  %v8357_v24 = vpop.permute.xlu0 %6437  ;;  %v5393_v10 = vpack.c.bf16 %v2318_v17, %v2208_v21  ;;  %v6444_v15 = vunpack.i.l.bf16 %v8354_v41 }
 0x144   :  { %v10842_v54 = vunpack.i.h.bf16 %v8357_v24  ;;  %v6439_v35 = vunpack.i.l.bf16 %v8357_v24  ;;  %6687 = vrot.lane.b32.xlu1 %v8256_v38, %s7158_s13  ;;  %v2646_v27 = vsel %vm2644_vm12, %v6434_v36, %v11008_v29 }
 0x145   :  { %6682 = vrot.lane.b32.xlu0 %v8256_v38, %s7157_s12  ;;  %5394 = vmatprep.subr.bf16.mxu1 %v5393_v10  ;;  %v6415_v10 = vunpack.i.h.bf16 %v8276_v60  ;;  %v11010_v60 = vunpack.i.h.bf16 %v8279_v4 }
 0x146   :  { %5396 = vmatpush1.bf16.msra.mxu1 %v5395_v3  ;;  %v8371_v14 = vpop.permute.xlu1 %6452  ;;  %v2756_v21 = vsel %vm2754_vm13, %v6439_v35, %v10842_v54  ;;  %v5940_v3 = vunpack.i.h.bf16 %v7359_v26 }
 0x147   :  { %v8379_v17 = vpop.permute.xlu0 %6447  ;;  %v5349_v0 = vpack.c.bf16 %v2756_v21, %v2646_v27  ;;  %v6454_v16 = vunpack.i.l.bf16 %v8371_v14  ;;  %v2645_v21 = vsel %vm2644_vm12, %v6444_v15, %v6434_v36 }
 0x148   :  { %v6449_v46 = vunpack.i.l.bf16 %v8379_v17  ;;  %6697 = vrot.lane.b32.xlu1 %v8318_v8, %s7156_s11 }
 0x149   :  { %6692 = vrot.lane.b32.xlu0 %v8318_v8, %s7155_s10  ;;  %5350 = vmatprep.subr.bf16.mxu0 %v5349_v0  ;;  %v11009_v0 = vunpack.i.l.bf16 %v7359_v26 }
 0x14a   :  { %v2835_v27 = vpop.permute.xlu1 %2834  ;;  %v2755_v54 = vsel %vm2754_vm13, %v6449_v46, %v6439_v35  ;;  %v11011_v35 = vunpack.i.l.bf16 %v7365_v30  ;;  %v11012_v46 = vunpack.i.h.bf16 %v8371_v14 }
 0x14b   :  { %v8393_v12 = vpop.permute.xlu0 %6457  ;;  %v5351_v61 = vpack.c.bf16 %v2755_v54, %v2645_v21  ;;  %v119_v29 = vsel %vm114_vm0, %v11009_v0, %v5940_v3  ;;  %v2537_v54 = vsel %vm2534_vm11, %v11010_v60, %v6420_v22  ;;  %v25_v60 = vld [vmem:[%s10717_s0 + $0x28] sm:$0xff] }
 0x14c   :  { %v10848_v5 = vunpack.i.h.bf16 %v8393_v12  ;;  %v6459_v43 = vunpack.i.l.bf16 %v8393_v12  ;;  %6707 = vrot.lane.b32.xlu1 %v8256_v38, %s7160_s15  ;;  %v120_v15 = vsel %vm114_vm0, %v5940_v3, %v11011_v35  ;;  %v8415_v26 = vsel %vm2424_vm10, %v6454_v16, %v11012_v46 }
 0x14d   :  { %6702 = vrot.lane.b32.xlu0 %v8256_v38, %s7159_s14  ;;  %5352 = vmatpush1.bf16.msra.mxu0 %v5351_v61  ;;  %11013 = vst [vmem:[#allocation59_spill] sm:$0xff] %v8415_v26  ;;  %v2428_v61 = vsel %vm2424_vm10, %v6415_v10, %v6454_v16  ;;  %v8449_v16 = vld [vmem:[%s10718_s1] sm:$0xff]  ;;  %v11015_v26 = vunpack.i.l.bf16 %v7458_v13 }
 0x14e   :  { %v8420_v21 = vsel %vm2534_vm11, %v6459_v43, %v10848_v5  ;;  %v2833_v0 = vpop.permute.xlu1 %2832  ;;  %v2538_v4 = vsel %vm2534_vm11, %v6420_v22, %v6459_v43  ;;  %v24_v5 = vld [vmem:[%s10717_s0 + $0x20] sm:$0xff]  ;;  %v11014_v22 = vunpack.i.h.bf16 %v8243_v25 }
 0x14f   :  { %v8428_v35 = vpop.permute.xlu0 %2836  ;;  %v5397_v46 = vpack.c.bf16 %v2538_v4, %v2428_v61  ;;  %v2865_v36 = vsel %vm2864_vm14, %v2833_v0, %v2835_v27  ;;  %v6104_v61 = vunpack.i.l.bf16 %v7605_v48  ;;  %v5405_v4 = vpack.c.bf16 %v120_v15, %v25_v60 }
 0x150   :  { %6717 = vrot.lane.b32.xlu1 %v8318_v8, %s7158_s13  ;;  %v2866_v43 = vsel %vm2864_vm14, %v2835_v27, %v8428_v35  ;;  %v2427_v3 = vsel %vm2424_vm10, %v11014_v22, %v6415_v10  ;;  %v11016_v27 = vunpack.i.h.bf16 %v7465_v19  ;;  %v6450_v10 = vunpack.i.h.bf16 %v8379_v17 }
 0x151   :  { %6712 = vrot.lane.b32.xlu0 %v8318_v8, %s7157_s12  ;;  %3373 = vmatprep.subr.mxu0 %v2866_v43  ;;  %v5399_v0 = vpack.c.bf16 %v2537_v54, %v2427_v3  ;;  %v5407_v43 = vpack.c.bf16 %v119_v29, %v24_v5  ;;  %v6064_v54 = vunpack.i.l.bf16 %v7530_v7  ;;  %v11017_v19 = vunpack.i.l.bf16 %v7404_v49 }
 0x152   :  { %v340_v25 = vsel %vm10851_vm2, %v11016_v27, %v11015_v26  ;;  %5398 = vmatprep.subr.bf16.mxu1 %v5397_v46  ;;  %3374 = vmatpush1.msra.mxu0 %v2865_v36  ;;  %v8457_v22 = vpop.permute.xlu1 %6467  ;;  %v11018_v26 = vunpack.i.h.bf16 %v7406_v50  ;;  %v6445_v36 = vunpack.i.h.bf16 %v8354_v41 }
 0x153   :  { %5400 = vmatpush1.bf16.msra.mxu1 %v5399_v0  ;;  %v10867_v15 = vunpack.i.h.bf16 %v8457_v22  ;;  %v6469_v60 = vunpack.i.l.bf16 %v8457_v22  ;;  %v8462_v3 = vpop.permute.xlu0 %6462  ;;  %5406 = vmatprep.subr.bf16.mxu0 %v5405_v4  ;;  %v6184_v0 = vunpack.i.l.bf16 %v7760_v57  ;;  %v11019_v4 = vunpack.i.h.bf16 %v7611_v1 }
 0x154   :  { %v230_v17 = vsel %vm10852_vm1, %v11018_v26, %v11017_v19  ;;  %v10850_v29 = vunpack.i.h.bf16 %v8462_v3  ;;  %v6464_v5 = vunpack.i.l.bf16 %v8462_v3  ;;  %3386 = vmatmul.mubr.f32.vlgmr.msra.gmra.mrb[0].mxu0 %v8449_v16  ;;  %6727 = vrot.lane.b32.xlu1 %v8256_v38, %s7162_s17  ;;  %v6144_v1 = vunpack.i.l.bf16 %v7697_v6 }
 0x155   :  { %v5409_v46 = vpack.c.bf16 %v340_v25, %v230_v17  ;;  %v8479_v50 = vsel %vm2754_vm13, %v6469_v60, %v10867_v15  ;;  %5408 = vmatpush1.bf16.msra.mxu0 %v5407_v43  ;;  %6722 = vrot.lane.b32.xlu0 %v8256_v38, %s7161_s16  ;;  %v2758_v41 = vsel %vm2754_vm13, %v6450_v10, %v6469_v60  ;;  %v10866_v25 = vunpack.i.l.bf16 %v7380_v40 }
 0x156   :  { %v560_v27 = vsel %vm554_vm4, %v11019_v4, %v6104_v61  ;;  %v8493_v19 = vsel %vm2644_vm12, %v6464_v5, %v10850_v29  ;;  %v8495_v43 = vpop.permute.xlu1 %2840  ;;  %v2648_v38 = vsel %vm2644_vm12, %v6445_v36, %v6464_v5  ;;  %v11020_v60 = vunpack.i.h.bf16 %v8357_v24  ;;  %5084 = vmatprep.mubr.msk.f32.mxu0 %vm3317_vm6, %v7736_v37 }
 0x157   :  { %5410 = vmatprep.subr.bf16.mxu0 %v5409_v46  ;;  %v2839_v17 = vpop.permute.xlu0 %2838  ;;  %v5401_v4 = vpack.c.bf16 %v2758_v41, %v2648_v38  ;;  %v11021_v29 = vunpack.i.h.bf16 %v7537_v9  ;;  %v5945_v24 = vunpack.i.h.bf16 %v7365_v30  ;;  %v11022_v37 = vunpack.i.h.bf16 %v8325_v47 }
 0x158   :  { %v2757_v26 = vsel %vm2754_vm13, %v11020_v60, %v6450_v10  ;;  %6737 = vrot.lane.b32.xlu1 %v8318_v8, %s7160_s15  ;;  %v8519_v41 = vpack.i.bf16 %v8295_v51, %v8241_v63  ;;  %v11023_v9 = vpack.c.bf16 %v7477_v28, %v7417_v53  ;;  %v6025_v53 = vunpack.i.h.bf16 %v7458_v13 }
 0x159   :  { %v450_v46 = vsel %vm444_vm3, %v11021_v29, %v6064_v54  ;;  %v2647_v60 = vsel %vm2644_vm12, %v11022_v37, %v6445_v36  ;;  %6732 = vrot.lane.b32.xlu0 %v8318_v8, %s7159_s14  ;;  %5402 = vmatprep.subr.bf16.mxu1 %v5401_v4  ;;  %v122_v38 = vsel %vm114_vm0, %v5945_v24, %v10866_v25  ;;  %v11025_v4 = vunpack.i.h.bf16 %v7699_v56  ;;  %v11109_v25 = vld [vmem:[#allocation56_spill] sm:$0xff] }
 0x15a   :  { %v5413_v10 = vpack.c.bf16 %v560_v27, %v450_v46  ;;  %5412 = vmatpush1.bf16.msra.mxu0 %v11023_v9  ;;  %v5403_v29 = vpack.c.bf16 %v2757_v26, %v2647_v60  ;;  %v11024_v27 = vunpack.i.h.bf16 %v7767_v20  ;;  %v8531_v36 = vpop.permute.xlu1 %6477  ;;  %v2868_v20 = vsel %vm2864_vm14, %v2839_v17, %v8495_v43 }
 0x15b   :  { %v6479_v28 = vunpack.i.l.bf16 %v8531_v36  ;;  %v8538_v26 = vpop.permute.xlu0 %6472  ;;  %v670_v46 = vsel %vm10855_vm5, %v11025_v4, %v6144_v1  ;;  %v11026_v37 = vunpack.i.l.bf16 %v7365_v30  ;;  %v11027_v56 = vpack.c.bf16 %v7623_v31, %v7633_v2 }
 0x15c   :  { %v780_v47 = vsel %vm774_vm7, %v11024_v27, %v6184_v0  ;;  %5414 = vmatprep.subr.bf16.mxu0 %v5413_v10  ;;  %5404 = vmatpush1.bf16.msra.mxu1 %v5403_v29  ;;  %v27_v10 = vld [vmem:[%s10717_s0 + $0x38] sm:$0xff]  ;;  %v6474_v9 = vunpack.i.l.bf16 %v8538_v26  ;;  %v5985_v27 = vunpack.i.h.bf16 %v7404_v49  ;;  %v11028_v30 = vunpack.i.h.bf16 %v7907_v58 }
 0x15d   :  { %v121_v60 = vsel %vm114_vm0, %v11026_v37, %v5945_v24  ;;  %3444 = vmatprep.subr.mxu1 %v2868_v20  ;;  %6747 = vrot.lane.b32.xlu1 %v8519_v41, %s7164_s21  ;;  %v5417_v29 = vpack.c.bf16 %v780_v47, %v670_v46  ;;  %v2867_v20 = vsel %vm2864_vm14, %v8428_v35, %v2839_v17  ;;  %v11029_v31 = vunpack.i.h.bf16 %v7885_v45 }
 0x15e   :  { %5416 = vmatpush1.bf16.msra.mxu0 %v11027_v56  ;;  %6742 = vrot.lane.b32.xlu0 %v8519_v41, %s7163_s18  ;;  %v1000_v24 = vsel %vm10853_vm9, %v11028_v30, %v6479_v28  ;;  %v8569_v47 = vpop.permute.xlu1 %6487  ;;  %v5457_v4 = vpack.c.bf16 %v122_v38, %v27_v10  ;;  %v11030_v46 = vunpack.i.l.bf16 %v7483_v34  ;;  %v11031_v58 = vunpack.i.l.bf16 %v7458_v13 }
 0x15f   :  { %5418 = vmatprep.subr.bf16.mxu0 %v5417_v29  ;;  %v890_v2 = vsel %vm10854_vm8, %v11029_v31, %v6474_v9  ;;  %v6489_v35 = vunpack.i.l.bf16 %v8569_v47  ;;  %v8583_v17 = vpop.permute.xlu0 %6482  ;;  %v5459_v38 = vpack.c.bf16 %v121_v60, %v8215_v62  ;;  %v6105_v45 = vunpack.i.h.bf16 %v7605_v48 }
 0x160   :  { %v342_v37 = vsel %vm10851_vm2, %v6025_v53, %v11030_v46  ;;  %v341_v29 = vsel %vm10851_vm2, %v11031_v58, %v6025_v53  ;;  %3445 = vmatpush1.msra.mxu1 %v2867_v20  ;;  %v5421_v10 = vpack.c.bf16 %v1000_v24, %v890_v2  ;;  %v6484_v56 = vunpack.i.l.bf16 %v8583_v17 }
 0x161   :  { %3457 = vmatmul.mubr.f32.vlgmr.msra.gmra.mrb[0].mxu1 %v8449_v16  ;;  %5458 = vmatprep.subr.bf16.mxu1 %v5457_v4  ;;  %v11032_v30 = vunpack.i.l.bf16 %v7421_v55  ;;  %v11033_v53 = vunpack.i.l.bf16 %v7404_v49  ;;  %v6185_v31 = vunpack.i.h.bf16 %v7760_v57  ;;  %v11034_v62 = vpack.c.bf16 %v7779_v59, %v7710_v42 }
 0x162   :  { %5460 = vmatpush1.bf16.msra.mxu1 %v5459_v38  ;;  %v11035_v24 = vunpack.i.h.bf16 %v7969_v32  ;;  %vm11036_vm2 = vcmask 211968   ;;  %v6065_v2 = vunpack.i.h.bf16 %v7530_v7  ;;  %1866 = vrot.lane.b32.xlu1 %v8295_v51, %s7162_s17  ;;  %v8609_v49 = vpop.permute.xlu1 %6497  ;;  %v11037_v59 = vunpack.i.h.bf16 %v7946_v44 }
 0x163   :  { %v232_v13 = vsel %vm10852_vm1, %v5985_v27, %v11032_v30  ;;  %v231_v20 = vsel %vm10852_vm1, %v11033_v53, %v5985_v27  ;;  %5420 = vmatpush1.bf16.msra.mxu0 %v11034_v62  ;;  %6752 = vrot.lane.b32.xlu0 %v8318_v8, %s7161_s16  ;;  %vm11038_vm1 = vcmask 220160   ;;  %v11039_v32 = vunpack.i.l.bf16 %v7637_v33  ;;  %v8622_v38 = vpop.permute.xlu0 %6492 }
 0x164   :  { %v5461_v60 = vpack.c.bf16 %v342_v37, %v232_v13  ;;  %v1220_v4 = vsel %vm11036_vm2, %v11035_v24, %v6489_v35  ;;  %v5463_v42 = vpack.c.bf16 %v341_v29, %v231_v20  ;;  %v1110_v27 = vsel %vm11038_vm1, %v11037_v59, %v6484_v56  ;;  %5422 = vmatprep.subr.bf16.mxu0 %v5421_v10  ;;  %v8635_v20 = vld [vmem:[%s10718_s1 + $0x8] sm:$0xff] }
 0x165   :  { %v562_v46 = vsel %vm554_vm4, %v6105_v45, %v11039_v32  ;;  %v6145_v37 = vunpack.i.h.bf16 %v7697_v6  ;;  %v10864_v58 = vunpack.i.h.bf16 %v8609_v49  ;;  %v6499_v8 = vunpack.i.l.bf16 %v8609_v49  ;;  %5085 = vmatprep.mubr.msk.f32.mxu1 %vm3317_vm6, %v8635_v20 }
 0x166   :  { %5462 = vmatprep.subr.bf16.mxu1 %v5461_v60  ;;  %v5425_v29 = vpack.c.bf16 %v1220_v4, %v1110_v27  ;;  %v561_v44 = vsel %vm554_vm4, %v6104_v61, %v6105_v45  ;;  %v10863_v30 = vunpack.i.h.bf16 %v8622_v38  ;;  %v6494_v13 = vunpack.i.l.bf16 %v8622_v38  ;;  %6762 = vrot.lane.b32.xlu1 %v8519_v41, %s7166_s24 }
 0x167   :  { %v11040_v53 = vunpack.i.l.bf16 %v7561_v11  ;;  %v781_v48 = vsel %vm774_vm7, %v6184_v0, %v6185_v31  ;;  %v6480_v61 = vunpack.i.h.bf16 %v8531_v36  ;;  %v8646_v45 = vsel %vm10853_vm9, %v6499_v8, %v10864_v58  ;;  %5464 = vmatpush1.bf16.msra.mxu1 %v5463_v42  ;;  %6757 = vrot.lane.b32.xlu0 %v8519_v41, %s7165_s20  ;;  %v8663_v0 = vpop.permute.xlu1 %6507  ;;  %v8672_v4 = vpop.permute.xlu0 %6502 }
 0x168   :  { %v11041_v62 = vpack.c.bf16 %v7927_v18, %v7916_v23  ;;  %v451_v24 = vsel %vm444_vm3, %v6064_v54, %v6065_v2  ;;  %v8657_v57 = vsel %vm10854_vm8, %v6494_v13, %v10863_v30  ;;  %v11042_v23 = vunpack.i.l.bf16 %v7785_v39  ;;  %v11107_v30 = vld [vmem:[#allocation52_spill] sm:$0xff] }
 0x169   :  { %v452_v10 = vsel %vm444_vm3, %v6065_v2, %v11040_v53  ;;  %v671_v7 = vsel %vm10855_vm5, %v6144_v1, %v6145_v37  ;;  %v6509_v54 = vunpack.i.l.bf16 %v8663_v0  ;;  %v5467_v2 = vpack.c.bf16 %v561_v44, %v451_v24  ;;  %v11050_v24 = vld [vmem:[#allocation54_spill] sm:$0xff] }
 0x16a   :  { %5424 = vmatpush1.bf16.msra.mxu0 %v11041_v62  ;;  %v5465_v60 = vpack.c.bf16 %v562_v46, %v452_v10  ;;  %v782_v18 = vsel %vm774_vm7, %v6185_v31, %v11042_v23  ;;  %v6475_v59 = vunpack.i.h.bf16 %v8538_v26  ;;  %v6504_v27 = vunpack.i.l.bf16 %v8672_v4  ;;  %v11044_v46 = vld [vmem:[#allocation37_spill] sm:$0xff]  ;;  %v11047_v10 = vld [vmem:[#allocation39_spill] sm:$0xff]  ;;  %2086 = vrot.lane.b32.xlu1 %v11050_v24, %s7164_s21 }
 0x16b   :  { %5426 = vmatprep.subr.bf16.mxu0 %v5425_v29  ;;  %v11043_v31 = vunpack.i.l.bf16 %v7714_v52  ;;  %v5471_v32 = vpack.c.bf16 %v781_v48, %v671_v7  ;;  %v1001_v1 = vsel %vm10853_vm9, %v6479_v28, %v6480_v61  ;;  %v11045_v29 = vld [vmem:[#allocation36_spill] sm:$0xff]  ;;  %v11048_v62 = vunpack.i.h.bf16 %v11047_v10  ;;  %1976 = vrot.lane.b32.xlu0 %v11050_v24, %s7163_s18  ;;  %v8696_v36 = vpop.permute.xlu1 %6517  ;;  %v11051_v28 = vld [vmem:[#allocation38_spill] sm:$0xff] }
 0x16c   :  { %5466 = vmatprep.subr.bf16.mxu1 %v5465_v60  ;;  %v11046_v53 = vpack.c.bf16 %v11044_v46, %v11045_v29  ;;  %vm11049_vm1 = vcmask 138240   ;;  %vm11053_vm2 = vcmask 146432   ;;  %v892_v23 = vsel %vm10854_vm8, %v6475_v59, %v6494_v13 }
 0x16d   :  { %v672_v6 = vsel %vm10855_vm5, %v6145_v37, %v11043_v31  ;;  %5468 = vmatpush1.bf16.msra.mxu1 %v5467_v2  ;;  %v1440_v60 = vsel %vm11049_vm1, %v11048_v62, %v6509_v54  ;;  %v11052_v37 = vunpack.i.h.bf16 %v11051_v28  ;;  %v6490_v7 = vunpack.i.h.bf16 %v8569_v47  ;;  %v11059_v62 = vld [vmem:[#allocation40_spill] sm:$0xff] }
 0x16e   :  { %5428 = vmatpush1.bf16.msra.mxu0 %v11046_v53  ;;  %v5469_v44 = vpack.c.bf16 %v782_v18, %v672_v6  ;;  %v1002_v18 = vsel %vm10853_vm9, %v6480_v61, %v6499_v8  ;;  %v10861_v2 = vunpack.i.h.bf16 %v8696_v36  ;;  %v6519_v31 = vunpack.i.l.bf16 %v8696_v36  ;;  %v8708_v6 = vpop.permute.xlu0 %6512  ;;  %6772 = vrot.lane.b32.xlu1 %v8519_v41, %s7168_s26 }
 0x16f   :  { %v1330_v48 = vsel %vm11053_vm2, %v11052_v37, %v6504_v27  ;;  %v891_v29 = vsel %vm10854_vm8, %v6474_v9, %v6475_v59  ;;  %v6485_v53 = vunpack.i.h.bf16 %v8583_v17  ;;  %v10860_v13 = vunpack.i.h.bf16 %v8708_v6  ;;  %6767 = vrot.lane.b32.xlu0 %v8519_v41, %s7167_s25  ;;  %v8731_v9 = vpop.permute.xlu1 %6527 }
 0x170   :  { %5470 = vmatprep.subr.bf16.mxu1 %v5469_v44  ;;  %v5429_v46 = vpack.c.bf16 %v1440_v60, %v1330_v48  ;;  %v6514_v8 = vunpack.i.l.bf16 %v8708_v6  ;;  %vm11054_vm1 = vcmask 211968   ;;  %v5473_v44 = vpack.c.bf16 %v1002_v18, %v892_v23 }
 0x171   :  { %v8719_v61 = vsel %vm11054_vm1, %v6519_v31, %v10861_v2  ;;  %5472 = vmatpush1.bf16.msra.mxu1 %v5471_v32  ;;  %vm11055_vm2 = vmmov %vm11054_vm1  ;;  %vm11056_vm9 = vcmask 220160   ;;  %v11058_v32 = vld [vmem:[#allocation41_spill] sm:$0xff]  ;;  %v6529_v28 = vunpack.i.l.bf16 %v8731_v9  ;;  %v5475_v48 = vpack.c.bf16 %v1001_v1, %v891_v29 }
 0x172   :  { %5430 = vmatprep.subr.bf16.mxu0 %v5429_v46  ;;  %v1222_v10 = vsel %vm11055_vm2, %v6490_v7, %v6519_v31  ;;  %v8725_v26 = vsel %vm11056_vm9, %v6514_v8, %v10860_v13  ;;  %vm11057_vm1 = vmmov %vm11056_vm9  ;;  %5474 = vmatprep.subr.bf16.mxu1 %v5473_v44  ;;  %v11060_v60 = vpack.c.bf16 %v11058_v32, %v11059_v62  ;;  %v8738_v37 = vpop.permute.xlu0 %6522  ;;  %v6510_v44 = vunpack.i.h.bf16 %v8663_v0  ;;  %v11063_v32 = vld [vmem:[#allocation43_spill] sm:$0xff] }
 0x173   :  { %v1112_v59 = vsel %vm11057_vm1, %v6485_v53, %v6514_v8  ;;  %vm11061_vm9 = vmmov %vm11055_vm2  ;;  %v6524_v8 = vunpack.i.l.bf16 %v8738_v37  ;;  %v11064_v62 = vunpack.i.h.bf16 %v11063_v32  ;;  %v6505_v29 = vunpack.i.h.bf16 %v8672_v4  ;;  %2306 = vrot.lane.b32.xlu1 %v11050_v24, %s7166_s24  ;;  %2196 = vrot.lane.b32.xlu0 %v11050_v24, %s7165_s20  ;;  %v8758_v47 = vpop.permute.xlu1 %6537  ;;  %v11093_v13 = vld [vmem:[#allocation51_spill] sm:$0xff] }
 0x174   :  { %5432 = vmatpush1.bf16.msra.mxu0 %v11060_v60  ;;  %v5477_v23 = vpack.c.bf16 %v1222_v10, %v1112_v59  ;;  %v1221_v31 = vsel %vm11061_vm9, %v6489_v35, %v6490_v7  ;;  %vm11062_vm2 = vmmov %vm11057_vm1  ;;  %vm11065_vm1 = vcmask 64512   ;;  %v11066_v35 = vld [vmem:[#allocation42_spill] sm:$0xff]  ;;  %vm11068_vm9 = vcmask 130048  }
 0x175   :  { %v1111_v46 = vsel %vm11062_vm2, %v6484_v56, %v6485_v53  ;;  %5476 = vmatpush1.bf16.msra.mxu1 %v5475_v48  ;;  %v1660_v1 = vsel %vm11065_vm1, %v11064_v62, %v6529_v28  ;;  %v11067_v17 = vunpack.i.h.bf16 %v11066_v35  ;;  %v10859_v7 = vunpack.i.h.bf16 %v8758_v47 }
 0x176   :  { %5478 = vmatprep.subr.bf16.mxu1 %v5477_v23  ;;  %v6539_v53 = vunpack.i.l.bf16 %v8758_v47  ;;  %v8765_v10 = vpop.permute.xlu0 %6532  ;;  %v5479_v59 = vpack.c.bf16 %v1221_v31, %v1111_v46  ;;  %vm11069_vm2 = vcmask 138240   ;;  %vm11072_vm8 = vcmask 146432  }
 0x177   :  { %v1550_v56 = vsel %vm11068_vm9, %v11067_v17, %v6524_v8  ;;  %v10856_v48 = vunpack.i.h.bf16 %v8765_v10  ;;  %v6534_v32 = vunpack.i.l.bf16 %v8765_v10  ;;  %v1441_v62 = vsel %vm11069_vm2, %v6509_v54, %v6510_v44  ;;  %vm11070_vm1 = vmmov %vm11069_vm2  ;;  %6782 = vrot.lane.b32.xlu1 %v8519_v41, %s7170_s30  ;;  %6777 = vrot.lane.b32.xlu0 %v8519_v41, %s7169_s29  ;;  %v8790_v0 = vpop.permute.xlu1 %6547 }
 0x178   :  { %v5433_v60 = vpack.c.bf16 %v1660_v1, %v1550_v56  ;;  %v8775_v23 = vsel %vm11070_vm1, %v6539_v53, %v10859_v7  ;;  %vm11071_vm9 = vmmov %vm11070_vm1  ;;  %v1331_v31 = vsel %vm11072_vm8, %v6504_v27, %v6505_v29  ;;  %v11076_v1 = vld [vmem:[#allocation44_spill] sm:$0xff]  ;;  %v6549_v27 = vunpack.i.l.bf16 %v8790_v0 }
 0x179   :  { %5480 = vmatpush1.bf16.msra.mxu1 %v5479_v59  ;;  %v1442_v35 = vsel %vm11071_vm9, %v6510_v44, %v6539_v53  ;;  %vm11073_vm5 = vmmov %vm11072_vm8  ;;  %v11075_v44 = vld [vmem:[#allocation45_spill] sm:$0xff]  ;;  %v6530_v41 = vunpack.i.h.bf16 %v8731_v9  ;;  %vm11083_vm8 = vcmask 56320   ;;  %vm11084_vm1 = vcmask 64512   ;;  %v11091_v53 = vld [vmem:[#allocation48_spill] sm:$0xff] }
 0x17a   :  { %5434 = vmatprep.subr.bf16.mxu0 %v5433_v60  ;;  %v8784_v46 = vsel %vm11073_vm5, %v6534_v32, %v10856_v48  ;;  %vm11074_vm2 = vmmov %vm11073_vm5  ;;  %v11077_v4 = vpack.c.bf16 %v11075_v44, %v11076_v1  ;;  %v8797_v17 = vpop.permute.xlu0 %6542  ;;  %v5483_v60 = vpack.c.bf16 %v1441_v62, %v1331_v31  ;;  %v11078_v48 = vld [vmem:[#allocation47_spill] sm:$0xff]  ;;  %vm11080_vm5 = vcmask 48128  }
 0x17b   :  { %v1332_v54 = vsel %vm11074_vm2, %v6505_v29, %v6534_v32  ;;  %v6544_v59 = vunpack.i.l.bf16 %v8797_v17  ;;  %v11079_v29 = vunpack.i.h.bf16 %v11078_v48  ;;  %v6525_v44 = vunpack.i.h.bf16 %v8738_v37  ;;  %2526 = vrot.lane.b32.xlu1 %v11050_v24, %s7168_s26  ;;  %2416 = vrot.lane.b32.xlu0 %v11050_v24, %s7167_s25  ;;  %vm11085_vm9 = vmmov %vm11084_vm1 }
 0x17c   :  { %5436 = vmatpush1.bf16.msra.mxu0 %v11077_v4  ;;  %v5481_v56 = vpack.c.bf16 %v1442_v35, %v1332_v54  ;;  %v8811_v35 = vpop.permute.xlu1 %6557  ;;  %v11081_v54 = vld [vmem:[#allocation46_spill] sm:$0xff]  ;;  %vm11086_vm2 = vmmov %vm11084_vm1  ;;  %v6550_v18 = vunpack.i.h.bf16 %v8790_v0  ;;  %v11110_v15 = vunpack.i.h.bf16 %v11109_v25 }
 0x17d   :  { %v1880_v32 = vsel %vm11080_vm5, %v11079_v29, %v6549_v27  ;;  %v11082_v1 = vunpack.i.h.bf16 %v11081_v54  ;;  %v10857_v62 = vunpack.i.h.bf16 %v8811_v35  ;;  %v6559_v48 = vunpack.i.l.bf16 %v8811_v35 }
 0x17e   :  { %5482 = vmatprep.subr.bf16.mxu1 %v5481_v56  ;;  %v8818_v31 = vpop.permute.xlu0 %6552  ;;  %v1661_v29 = vsel %vm11084_vm1, %v6529_v28, %v6530_v41  ;;  %vm11087_vm5 = vcmask 130048  }
 0x17f   :  { %v1770_v9 = vsel %vm11083_vm8, %v11082_v1, %v6544_v59  ;;  %5484 = vmatpush1.bf16.msra.mxu1 %v5483_v60  ;;  %v10858_v4 = vunpack.i.h.bf16 %v8818_v31  ;;  %v6554_v56 = vunpack.i.l.bf16 %v8818_v31  ;;  %v8826_v54 = vsel %vm11085_vm9, %v6559_v48, %v10857_v62  ;;  %v8831_v60 = vld [vmem:[%s10717_s0 + $0x50] sm:$0xff]  ;;  %vm11088_vm8 = vmmov %vm11087_vm5  ;;  %2852 = vrot.lane.b32.xlu1 %v8241_v63, %s7171_s23 }
 0x180   :  { %v5437_v37 = vpack.c.bf16 %v1880_v32, %v1770_v9  ;;  %v1662_v1 = vsel %vm11086_vm2, %v6530_v41, %v6559_v48  ;;  %v1551_v32 = vsel %vm11087_vm5, %v6524_v8, %v6525_v44  ;;  %2850 = vrot.lane.b32.xlu0 %v8831_v60, %s7171_s23  ;;  %v8844_v28 = vpop.permute.xlu1 %6567  ;;  %vm11089_vm1 = vmmov %vm11087_vm5  ;;  %vm11095_vm9 = vcmask 449536  }
 0x181   :  { %v8838_v9 = vsel %vm11088_vm8, %v6554_v56, %v10858_v4  ;;  %v1552_v62 = vsel %vm11089_vm1, %v6525_v44, %v6554_v56  ;;  %v6569_v8 = vunpack.i.l.bf16 %v8844_v28  ;;  %v5487_v42 = vpack.c.bf16 %v1661_v29, %v1551_v32 }
 0x182   :  { %5438 = vmatprep.subr.bf16.mxu0 %v5437_v37  ;;  %v11090_v37 = vld [vmem:[#allocation49_spill] sm:$0xff]  ;;  %v8851_v48 = vpop.permute.xlu0 %6562  ;;  %v5485_v4 = vpack.c.bf16 %v1662_v1, %v1552_v62  ;;  %v11094_v44 = vunpack.i.h.bf16 %v11093_v13  ;;  %v11096_v1 = vld [vmem:[#allocation50_spill] sm:$0xff]  ;;  %vm11098_vm2 = vcmask 457728   ;;  %vm11099_vm5 = vcmask 48128  }
 0x183   :  { %v11092_v41 = vpack.c.bf16 %v11090_v37, %v11091_v53  ;;  %v6564_v63 = vunpack.i.l.bf16 %v8851_v48  ;;  %v6545_v53 = vunpack.i.h.bf16 %v8797_v17  ;;  %2746 = vrot.lane.b32.xlu1 %v11050_v24, %s7170_s30  ;;  %v11097_v37 = vunpack.i.h.bf16 %v11096_v1  ;;  %v8873_v13 = vld [vmem:[%s10717_s0 + $0x70] sm:$0xff]  ;;  %v8878_v17 = vld [vmem:[%s10717_s0 + $0x78] sm:$0xff]  ;;  %vm11100_vm8 = vmmov %vm11099_vm5 }
 0x184   :  { %5486 = vmatprep.subr.bf16.mxu1 %v5485_v4  ;;  %v2100_v56 = vsel %vm11095_vm9, %v11094_v44, %v6569_v8  ;;  %2636 = vrot.lane.b32.xlu0 %v11050_v24, %s7169_s29  ;;  %v8865_v62 = vpop.permute.xlu1 %6577  ;;  %vm11101_vm1 = vmmov %vm11099_vm5  ;;  %vm11102_vm9 = vcmask 56320  }
 0x185   :  { %5440 = vmatpush1.bf16.msra.mxu0 %v11092_v41  ;;  %v1990_v0 = vsel %vm11098_vm2, %v11097_v37, %v6564_v63  ;;  %5488 = vmatpush1.bf16.msra.mxu1 %v5487_v42  ;;  %v10862_v4 = vunpack.i.h.bf16 %v8865_v62  ;;  %v6579_v29 = vunpack.i.l.bf16 %v8865_v62  ;;  %v1881_v37 = vsel %vm11099_vm5, %v6549_v27, %v6550_v18  ;;  %vm11103_vm2 = vmmov %vm11102_vm9 }
 0x186   :  { %v8882_v32 = vpop.permute.xlu0 %6572  ;;  %v5441_v41 = vpack.c.bf16 %v2100_v56, %v1990_v0  ;;  %v8894_v42 = vpack.i.bf16 %v8878_v17, %v8873_v13  ;;  %v1771_v56 = vsel %vm11102_vm9, %v6544_v59, %v6545_v53  ;;  %vm11105_vm5 = vmmov %vm11103_vm2 }
 0x187   :  { %v10865_v44 = vunpack.i.h.bf16 %v8882_v32  ;;  %v6574_v1 = vunpack.i.l.bf16 %v8882_v32  ;;  %v8890_v7 = vsel %vm11100_vm8, %v6579_v29, %v10862_v4  ;;  %v1882_v2 = vsel %vm11101_vm1, %v6550_v18, %v6579_v29  ;;  %2856 = vrot.lane.b32.xlu1 %v11050_v24, %s7171_s23  ;;  %v11106_v4 = vld [vmem:[#allocation53_spill] sm:$0xff] }
 0x188   :  { %5442 = vmatprep.subr.bf16.mxu0 %v5441_v41  ;;  %2854 = vrot.lane.b32.xlu0 %v8295_v51, %s7171_s23  ;;  %v6588_v27 = vpop.permute.xlu1 %6587  ;;  %v11108_v58 = vpack.c.bf16 %v11106_v4, %v11107_v30  ;;  %v6570_v24 = vunpack.i.h.bf16 %v8844_v28  ;;  %v5491_v51 = vpack.c.bf16 %v1881_v37, %v1771_v56  ;;  %v6565_v30 = vunpack.i.h.bf16 %v8851_v48 }
 0x189   :  { %v8901_v0 = vsel %vm11103_vm2, %v6574_v1, %v10865_v44  ;;  %v1772_v41 = vsel %vm11105_vm5, %v6545_v53, %v6574_v1  ;;  %v6589_v18 = vunpack.i.l.bf16 %v6588_v27  ;;  %vm11114_vm8 = vcmask 441344  }
 0x18a   :  { %11104 = vst [vmem:[#allocation37_spill] sm:$0xff] %v8901_v0  ;;  %5444 = vmatpush1.bf16.msra.mxu0 %v11108_v58  ;;  %v8911_v59 = vpop.permute.xlu0 %6582  ;;  %v5489_v29 = vpack.c.bf16 %v1882_v2, %v1772_v41  ;;  %v11112_v2 = vld [vmem:[#allocation55_spill] sm:$0xff]  ;;  %vm11116_vm1 = vcmask 449536   ;;  %vm11119_vm5 = vcmask 457728   ;;  %v11125_v0 = vunpack.i.h.bf16 %v8393_v12 }
 0x18b   :  { %v6584_v5 = vunpack.i.l.bf16 %v8911_v59  ;;  %v2320_v53 = vsel %vm2314_vm15, %v11110_v15, %v6589_v18  ;;  %6792 = vrot.lane.b32.xlu1 %v8894_v42, %s7153_s7  ;;  %v11113_v4 = vunpack.i.h.bf16 %v11112_v2  ;;  %v2101_v41 = vsel %vm11116_vm1, %v6569_v8, %v6570_v24  ;;  %vm11117_vm9 = vmmov %vm11116_vm1 }
 0x18c   :  { %5490 = vmatprep.subr.bf16.mxu1 %v5489_v29  ;;  %6787 = vrot.lane.b32.xlu0 %v8894_v42, %s7152_s6  ;;  %v8925_v58 = vpop.permute.xlu1 %6597  ;;  %vm11118_vm2 = vmmov %vm11116_vm1  ;;  %v1991_v2 = vsel %vm11119_vm5, %v6564_v63, %v6565_v30 }
 0x18d   :  { %11111 = vst [vmem:[#allocation36_spill] sm:$0xff] %v8925_v58  ;;  %v2210_v28 = vsel %vm11114_vm8, %v11113_v4, %v6584_v5  ;;  %5492 = vmatpush1.bf16.msra.mxu1 %v5491_v51  ;;  %v10869_v1 = vunpack.i.h.bf16 %v8925_v58  ;;  %v6599_v25 = vunpack.i.l.bf16 %v8925_v58  ;;  %vm11120_vm8 = vmmov %vm11119_vm5  ;;  %v5495_v58 = vpack.c.bf16 %v2101_v41, %v1991_v2 }
 0x18e   :  { %v8932_v15 = vpop.permute.xlu0 %6592  ;;  %v5445_v48 = vpack.c.bf16 %v2320_v53, %v2210_v28  ;;  %vm11121_vm1 = vmmov %vm11119_vm5  ;;  %v11122_v28 = vld [vmem:[#allocation58_spill] sm:$0xff] }
 0x18f   :  { %11115 = vst [vmem:[#allocation39_spill] sm:$0xff] %v8932_v15  ;;  %v10868_v37 = vunpack.i.h.bf16 %v8932_v15  ;;  %v6594_v56 = vunpack.i.l.bf16 %v8932_v15  ;;  %v8940_v29 = vsel %vm11117_vm9, %v6599_v25, %v10869_v1  ;;  %v2102_v51 = vsel %vm11118_vm2, %v6570_v24, %v6599_v25  ;;  %6802 = vrot.lane.b32.xlu1 %v8894_v42, %s7155_s10 }
 0x190   :  { %5446 = vmatprep.subr.bf16.mxu0 %v5445_v48  ;;  %6797 = vrot.lane.b32.xlu0 %v8894_v42, %s7154_s8  ;;  %v8953_v8 = vpop.permute.xlu1 %6607  ;;  %v11123_v48 = vld [vmem:[#allocation57_spill] sm:$0xff]  ;;  %v6590_v15 = vunpack.i.h.bf16 %v6588_v27  ;;  %vm11128_vm9 = vcmask 441344  }
 0x191   :  { %v8947_v53 = vsel %vm11120_vm8, %v6594_v56, %v10868_v37  ;;  %v1992_v4 = vsel %vm11121_vm1, %v6565_v30, %v6594_v56  ;;  %v11124_v24 = vpack.c.bf16 %v11122_v28, %v11123_v48  ;;  %v6609_v63 = vunpack.i.l.bf16 %v8953_v8  ;;  %vm11129_vm2 = vmmov %vm11128_vm9 }
 0x192   :  { %v8960_v25 = vpop.permute.xlu0 %6602  ;;  %v5493_v37 = vpack.c.bf16 %v2102_v51, %v1992_v4  ;;  %v6585_v56 = vunpack.i.h.bf16 %v8911_v59  ;;  %v11126_v4 = vunpack.i.h.bf16 %v8371_v14  ;;  %v2321_v28 = vsel %vm2314_vm15, %v6589_v18, %v6590_v15  ;;  %vm11131_vm5 = vmmov %vm11129_vm2 }
 0x193   :  { %5448 = vmatpush1.bf16.msra.mxu0 %v11124_v24  ;;  %v6604_v44 = vunpack.i.l.bf16 %v8960_v25  ;;  %v2540_v30 = vsel %vm2534_vm11, %v11125_v0, %v6609_v63  ;;  %6812 = vrot.lane.b32.xlu1 %v8894_v42, %s7157_s12  ;;  %vm11149_vm8 = vcmask 965632   ;;  %vm11153_vm1 = vcmask 1031168  }
 0x194   :  { %5494 = vmatprep.subr.bf16.mxu1 %v5493_v37  ;;  %6807 = vrot.lane.b32.xlu0 %v8894_v42, %s7156_s11  ;;  %v8973_v51 = vpop.permute.xlu1 %6617  ;;  %v2211_v48 = vsel %vm11128_vm9, %v6584_v5, %v6585_v56  ;;  %vm11173_vm9 = vcmask 883712  }
 0x195   :  { %v2430_v27 = vsel %vm2424_vm10, %v11126_v4, %v6604_v44  ;;  %5496 = vmatpush1.bf16.msra.mxu1 %v5495_v58  ;;  %v10873_v37 = vunpack.i.h.bf16 %v8973_v51  ;;  %v6619_v12 = vunpack.i.l.bf16 %v8973_v51  ;;  %v11132_v4 = vld [vmem:[#allocation59_spill] sm:$0xff]  ;;  %v5499_v1 = vpack.c.bf16 %v2321_v28, %v2211_v48 }
 0x196   :  { %v8980_v0 = vpop.permute.xlu0 %6612  ;;  %v5449_v59 = vpack.c.bf16 %v2540_v30, %v2430_v27 }
 0x197   :  { %v10874_v41 = vunpack.i.h.bf16 %v8980_v0  ;;  %v6614_v2 = vunpack.i.l.bf16 %v8980_v0  ;;  %v8988_v14 = vsel %vm2314_vm15, %v6619_v12, %v10873_v37  ;;  %v2322_v58 = vsel %vm2314_vm15, %v6590_v15, %v6619_v12  ;;  %6822 = vrot.lane.b32.xlu1 %v8894_v42, %s7159_s14 }
 0x198   :  { %11127 = vst [vmem:[#allocation54_spill] sm:$0xff] %v8988_v14  ;;  %5450 = vmatprep.subr.bf16.mxu0 %v5449_v59  ;;  %6817 = vrot.lane.b32.xlu0 %v8894_v42, %s7158_s13  ;;  %v9001_v18 = vpop.permute.xlu1 %6627  ;;  %v11133_v15 = vpack.c.bf16 %v8420_v21, %v11132_v4  ;;  %v11135_v21 = vunpack.i.h.bf16 %v8457_v22  ;;  %v6605_v4 = vunpack.i.h.bf16 %v8960_v25  ;;  %v11138_v22 = vunpack.i.h.bf16 %v8462_v3  ;;  %v29_v14 = vld [vmem:[%s10717_s0 + $0x48] sm:$0xff] }
 0x199   :  { %v8995_v24 = vsel %vm11129_vm2, %v6614_v2, %v10874_v41  ;;  %v2212_v30 = vsel %vm11131_vm5, %v6585_v56, %v6614_v2  ;;  %v10875_v5 = vunpack.i.l.bf16 %v9001_v18  ;;  %v6610_v41 = vunpack.i.h.bf16 %v8953_v8  ;;  %v9017_v56 = vld [vmem:[%s10717_s0 + $0x68] sm:$0xff] }
 0x19a   :  { %11130 = vst [vmem:[#allocation38_spill] sm:$0xff] %v8995_v24  ;;  %5452 = vmatpush1.bf16.msra.mxu0 %v11133_v15  ;;  %v9008_v27 = vpop.permute.xlu0 %6622  ;;  %v5497_v12 = vpack.c.bf16 %v2322_v58, %v2212_v30  ;;  %11134 = vst [vmem:[#allocation41_spill] sm:$0xff] %v9017_v56  ;;  %v11136_v58 = vld [vmem:[#allocation4_spill] sm:$0xff]  ;;  %v6836_v28 = vpack.i.bf16 %v8873_v13, %v9017_v56  ;;  %v5950_v15 = vunpack.i.h.bf16 %v7380_v40  ;;  %vm11179_vm2 = vcmask 228352  }
 0x19b   :  { %v10878_v37 = vunpack.i.l.bf16 %v9008_v27  ;;  %v2760_v2 = vsel %vm2754_vm13, %v11135_v21, %v10875_v5  ;;  %6832 = vrot.lane.b32.xlu1 %v8894_v42, %s7161_s16  ;;  %v11139_v5 = vld [vmem:[#allocation12_spill] sm:$0xff]  ;;  %v2541_v3 = vsel %vm2534_vm11, %v6609_v63, %v6610_v41  ;;  %vm11181_vm5 = vcmask 867328  }
 0x19c   :  { %5498 = vmatprep.subr.bf16.mxu1 %v5497_v12  ;;  %6827 = vrot.lane.b32.xlu0 %v8894_v42, %s7160_s15  ;;  %v9030_v8 = vpop.permute.xlu1 %6637 }
 0x19d   :  { %11137 = vst [vmem:[#allocation40_spill] sm:$0xff] %v9030_v8  ;;  %v2650_v48 = vsel %vm2644_vm12, %v11138_v22, %v10878_v37  ;;  %5500 = vmatpush1.bf16.msra.mxu1 %v5499_v1  ;;  %v10880_v25 = vunpack.i.h.bf16 %v9030_v8  ;;  %v6639_v12 = vunpack.i.l.bf16 %v9030_v8  ;;  %v11141_v37 = vld [vmem:[#allocation7_spill] sm:$0xff] }
 0x19e   :  { %v9042_v21 = vpop.permute.xlu0 %6632  ;;  %v5453_v59 = vpack.c.bf16 %v2760_v2, %v2650_v48  ;;  %v2431_v2 = vsel %vm2424_vm10, %v6604_v44, %v6605_v4  ;;  %v11144_v44 = vpack.c.bf16 %v8479_v50, %v8493_v19  ;;  %v28_v19 = vld [vmem:[%s10717_s0 + $0x40] sm:$0xff] }
 0x19f   :  { %v10881_v56 = vunpack.i.h.bf16 %v9042_v21  ;;  %v6634_v24 = vunpack.i.l.bf16 %v9042_v21  ;;  %v9051_v22 = vsel %vm2534_vm11, %v6639_v12, %v10880_v25  ;;  %v2542_v1 = vsel %vm2534_vm11, %v6610_v41, %v6639_v12  ;;  %6842 = vrot.lane.b32.xlu1 %v8894_v42, %s7163_s18 }
 0x1a0   :  { %11140 = vst [vmem:[#allocation43_spill] sm:$0xff] %v9051_v22  ;;  %5454 = vmatprep.subr.bf16.mxu0 %v5453_v59  ;;  %6837 = vrot.lane.b32.xlu0 %v6836_v28, %s7162_s17  ;;  %v9064_v63 = vpop.permute.xlu1 %2844  ;;  %v11143_v41 = vunpack.i.l.bf16 %v7380_v40  ;;  %v11145_v28 = vunpack.i.l.bf16 %v11136_v58  ;;  %v11146_v40 = vld [vmem:[#allocation20_spill] sm:$0xff] }
 0x1a1   :  { %v9059_v48 = vsel %vm2424_vm10, %v6634_v24, %v10881_v56  ;;  %v2432_v59 = vsel %vm2424_vm10, %v6605_v4, %v6634_v24  ;;  %5456 = vmatpush1.bf16.msra.mxu0 %v11144_v44  ;;  %v6630_v44 = vunpack.i.h.bf16 %v9001_v18  ;;  %v6625_v24 = vunpack.i.h.bf16 %v9008_v27 }
 0x1a2   :  { %11142 = vst [vmem:[#allocation42_spill] sm:$0xff] %v9059_v48  ;;  %v123_v12 = vsel %vm114_vm0, %v11143_v41, %v5950_v15  ;;  %v2843_v25 = vpop.permute.xlu0 %2842  ;;  %v5501_v56 = vpack.c.bf16 %v2542_v1, %v2432_v59  ;;  %v124_v30 = vsel %vm114_vm0, %v5950_v15, %v11145_v28  ;;  %v11147_v1 = vunpack.i.l.bf16 %v11139_v5  ;;  %v11155_v48 = vld [vmem:[#allocation17_spill] sm:$0xff] }
 0x1a3   :  { %v2870_v41 = vsel %vm2864_vm14, %v2843_v25, %v9064_v63  ;;  %v2869_v50 = vsel %vm2864_vm14, %v8495_v43, %v2843_v25  ;;  %v11148_v59 = vunpack.i.h.bf16 %v7483_v34  ;;  %v5503_v28 = vpack.c.bf16 %v2541_v3, %v2431_v2  ;;  %6852 = vrot.lane.b32.xlu1 %v8894_v42, %s7165_s20 }
 0x1a4   :  { %3515 = vmatprep.subr.mxu0 %v2870_v41  ;;  %5502 = vmatprep.subr.bf16.mxu1 %v5501_v56  ;;  %v9100_v43 = vpop.permute.xlu1 %6647  ;;  %v5509_v25 = vpack.c.bf16 %v124_v30, %v29_v14  ;;  %v11151_v34 = vunpack.i.l.bf16 %v11141_v37  ;;  %v5511_v41 = vpack.c.bf16 %v123_v12, %v28_v19  ;;  %v10889_v22 = vunpack.i.l.bf16 %v11155_v48 }
 0x1a5   :  { %v344_v15 = vsel %vm11149_vm8, %v11148_v59, %v11147_v1  ;;  %6847 = vrot.lane.b32.xlu0 %v8894_v42, %s7164_s21  ;;  %11150 = vst [vmem:[#allocation45_spill] sm:$0xff] %v9100_v43  ;;  %v11152_v1 = vunpack.i.h.bf16 %v7421_v55  ;;  %3516 = vmatpush1.msra.mxu0 %v2869_v50  ;;  %v10884_v56 = vunpack.i.h.bf16 %v9100_v43  ;;  %v6649_v3 = vunpack.i.l.bf16 %v9100_v43  ;;  %v11165_v43 = vld [vmem:[#allocation13_spill] sm:$0xff] }
 0x1a6   :  { %5504 = vmatpush1.bf16.msra.mxu1 %v5503_v28  ;;  %v9109_v2 = vpop.permute.xlu0 %6642  ;;  %3528 = vmatmul.mubr.f32.vlgmr.msra.gmra.mrb[2].mxu0 %v8449_v16  ;;  %v11156_v55 = vunpack.i.l.bf16 %v11146_v40  ;;  %v11157_v50 = vunpack.i.h.bf16 %v7637_v33  ;;  %v11159_v12 = vunpack.i.l.bf16 %v9001_v18  ;;  %v11160_v33 = vld [vmem:[#allocation32_spill] sm:$0xff] }
 0x1a7   :  { %v234_v59 = vsel %vm11153_vm1, %v11152_v1, %v11151_v34  ;;  %11154 = vst [vmem:[#allocation44_spill] sm:$0xff] %v9109_v2  ;;  %v10885_v14 = vunpack.i.h.bf16 %v9109_v2  ;;  %v6644_v30 = vunpack.i.l.bf16 %v9109_v2  ;;  %5510 = vmatprep.subr.bf16.mxu0 %v5509_v25  ;;  %v11158_v34 = vld [vmem:[#allocation6_spill] sm:$0xff]  ;;  %v2762_v25 = vsel %vm2754_vm13, %v6630_v44, %v6649_v3  ;;  %5086 = vmatprep.mubr.msk.f32.mxu0 %vm3317_vm6, %v8635_v20  ;;  %v11166_v2 = vld [vmem:[#allocation8_spill] sm:$0xff]  ;;  %vm11185_vm1 = vmmov %vm11149_vm8 }
 0x1a8   :  { %v5513_v4 = vpack.c.bf16 %v344_v15, %v234_v59  ;;  %v564_v28 = vsel %vm554_vm4, %v11157_v50, %v11156_v55  ;;  %v2761_v19 = vsel %vm2754_vm13, %v11159_v12, %v6630_v44  ;;  %v9127_v15 = vsel %vm2754_vm13, %v6649_v3, %v10884_v56  ;;  %5512 = vmatpush1.bf16.msra.mxu0 %v5511_v41  ;;  %v9145_v44 = vpop.permute.xlu1 %2848  ;;  %v11163_v56 = vld [vmem:[#allocation27_spill] sm:$0xff] }
 0x1a9   :  { %v11161_v55 = vunpack.i.l.bf16 %v9008_v27  ;;  %v9139_v18 = vsel %vm2644_vm12, %v6644_v30, %v10885_v14  ;;  %1872 = vrot.lane.b32.xlu1 %v8878_v17, %s7162_s17  ;;  %6857 = vrot.lane.b32.xlu0 %v8894_v42, %s7166_s24  ;;  %11162 = vst [vmem:[#allocation47_spill] sm:$0xff] %v9145_v44  ;;  %v2652_v3 = vsel %vm2644_vm12, %v6625_v24, %v6644_v30  ;;  %v6154_v14 = vunpack.i.l.bf16 %v11163_v56  ;;  %v11175_v12 = vld [vmem:[#allocation23_spill] sm:$0xff] }
 0x1aa   :  { %5514 = vmatprep.subr.bf16.mxu0 %v5513_v4  ;;  %v2847_v41 = vpop.permute.xlu0 %2846  ;;  %v5505_v27 = vpack.c.bf16 %v2762_v25, %v2652_v3  ;;  %v11164_v1 = vunpack.i.h.bf16 %v7561_v11  ;;  %v11167_v8 = vpack.c.bf16 %v11165_v43, %v11166_v2  ;;  %v11168_v25 = vunpack.i.l.bf16 %v11160_v33 }
 0x1ab   :  { %v2651_v50 = vsel %vm2644_vm12, %v11161_v55, %v6625_v24  ;;  %v5955_v55 = vunpack.i.h.bf16 %v11136_v58  ;;  %v11169_v11 = vunpack.i.h.bf16 %v7785_v39  ;;  %v11170_v43 = vunpack.i.l.bf16 %v11158_v34 }
 0x1ac   :  { %v454_v59 = vsel %vm444_vm3, %v11164_v1, %v10889_v22  ;;  %5516 = vmatpush1.bf16.msra.mxu0 %v11167_v8  ;;  %5506 = vmatprep.subr.bf16.mxu1 %v5505_v27  ;;  %v5507_v4 = vpack.c.bf16 %v2761_v19, %v2651_v50  ;;  %v9164_v30 = vpop.permute.xlu1 %6657  ;;  %v31_v8 = vld [vmem:[%s10717_s0 + $0x58] sm:$0xff]  ;;  %v2872_v39 = vsel %vm2864_vm14, %v2847_v41, %v9145_v44  ;;  %v9186_v50 = vld [vmem:[%s10717_s0 + $0x80] sm:$0xff]  ;;  %v11171_v3 = vunpack.i.l.bf16 %v11136_v58 }
 0x1ad   :  { %v5517_v24 = vpack.c.bf16 %v564_v28, %v454_v59  ;;  %6867 = vrot.lane.b32.xlu1 %v8894_v42, %s7168_s26  ;;  %6862 = vrot.lane.b32.xlu0 %v8894_v42, %s7167_s25  ;;  %v784_v1 = vsel %vm774_vm7, %v11169_v11, %v11168_v25  ;;  %v126_v2 = vsel %vm114_vm0, %v5955_v55, %v11170_v43  ;;  %v6035_v28 = vunpack.i.h.bf16 %v11139_v5  ;;  %v11174_v43 = vld [vmem:[#allocation21_spill] sm:$0xff] }
 0x1ae   :  { %5508 = vmatpush1.bf16.msra.mxu1 %v5507_v4  ;;  %v9179_v59 = vpop.permute.xlu0 %6652  ;;  %v125_v27 = vsel %vm114_vm0, %v11171_v3, %v5955_v55  ;;  %v5995_v11 = vunpack.i.h.bf16 %v11141_v37  ;;  %v11176_v22 = vpack.c.bf16 %v11174_v43, %v11175_v12  ;;  %v5561_v44 = vpack.c.bf16 %v126_v2, %v31_v8 }
 0x1af   :  { %5518 = vmatprep.subr.bf16.mxu0 %v5517_v24  ;;  %v6654_v25 = vunpack.i.l.bf16 %v9179_v59  ;;  %3586 = vmatprep.subr.mxu1 %v2872_v39  ;;  %v11172_v24 = vunpack.i.h.bf16 %v7714_v52  ;;  %v11177_v58 = vunpack.i.l.bf16 %v9164_v30  ;;  %v11178_v55 = vunpack.i.h.bf16 %v8609_v49  ;;  %v11182_v49 = vld [vmem:[#allocation15_spill] sm:$0xff] }
 0x1b0   :  { %5520 = vmatpush1.bf16.msra.mxu0 %v11176_v22  ;;  %v2871_v52 = vsel %vm2864_vm14, %v9064_v63, %v2847_v41  ;;  %v9212_v3 = vpop.permute.xlu1 %6667  ;;  %v11180_v22 = vunpack.i.h.bf16 %v8622_v38  ;;  %v11184_v2 = vunpack.i.l.bf16 %v11139_v5  ;;  %v6115_v38 = vunpack.i.h.bf16 %v11146_v40 }
 0x1b1   :  { %v674_v4 = vsel %vm11173_vm9, %v11172_v24, %v6154_v14  ;;  %v1004_v39 = vsel %vm11179_vm2, %v11178_v55, %v11177_v58  ;;  %2092 = vrot.lane.b32.xlu1 %v9186_v50, %s7164_s21  ;;  %1982 = vrot.lane.b32.xlu0 %v9186_v50, %s7163_s18  ;;  %v6669_v63 = vunpack.i.l.bf16 %v9212_v3  ;;  %v11186_v55 = vld [vmem:[#allocation10_spill] sm:$0xff]  ;;  %vm11188_vm9 = vcmask 1031168  }
 0x1b2   :  { %v5521_v19 = vpack.c.bf16 %v784_v1, %v674_v4  ;;  %v894_v12 = vsel %vm11181_vm5, %v11180_v22, %v6654_v25  ;;  %v11183_v1 = vunpack.i.l.bf16 %v11182_v49  ;;  %v345_v24 = vsel %vm11185_vm1, %v11184_v2, %v6035_v28  ;;  %3587 = vmatpush1.msra.mxu1 %v2871_v52  ;;  %v9226_v41 = vpop.permute.xlu0 %6662  ;;  %vm11190_vm2 = vmmov %vm11188_vm9 }
 0x1b3   :  { %v5563_v4 = vpack.c.bf16 %v125_v27, %v8831_v60  ;;  %v5525_v43 = vpack.c.bf16 %v1004_v39, %v894_v12  ;;  %v6664_v58 = vunpack.i.l.bf16 %v9226_v41  ;;  %5562 = vmatprep.subr.bf16.mxu1 %v5561_v44  ;;  %3599 = vmatmul.mubr.f32.vlgmr.msra.gmra.mrb[2].mxu1 %v8449_v16  ;;  %v11187_v5 = vunpack.i.l.bf16 %v11186_v55  ;;  %v11192_v60 = vld [vmem:[#allocation28_spill] sm:$0xff] }
 0x1b4   :  { %v346_v8 = vsel %vm11149_vm8, %v6035_v28, %v11183_v1  ;;  %5522 = vmatprep.subr.bf16.mxu0 %v5521_v19  ;;  %v11189_v19 = vunpack.i.l.bf16 %v11141_v37  ;;  %v6195_v22 = vunpack.i.h.bf16 %v11160_v33  ;;  %v11191_v1 = vld [vmem:[#allocation33_spill] sm:$0xff]  ;;  %v11194_v16 = vunpack.i.h.bf16 %v8696_v36  ;;  %v9252_v37 = vpop.permute.xlu1 %6677  ;;  %v11198_v36 = vld [vmem:[#allocation24_spill] sm:$0xff]  ;;  %5087 = vmatprep.mubr.msk.f32.mxu1 %vm3317_vm6, %v8635_v20 }
 0x1b5   :  { %v236_v28 = vsel %vm11188_vm9, %v5995_v11, %v11187_v5  ;;  %v11193_v27 = vpack.c.bf16 %v11191_v1, %v11192_v60  ;;  %5564 = vmatpush1.bf16.msra.mxu1 %v5563_v4  ;;  %vm11195_vm5 = vcmask 211968   ;;  %v6075_v12 = vunpack.i.h.bf16 %v11155_v48  ;;  %6877 = vrot.lane.b32.xlu1 %v8894_v42, %s7170_s30 }
 0x1b6   :  { %v235_v52 = vsel %vm11190_vm2, %v11189_v19, %v5995_v11  ;;  %v5565_v39 = vpack.c.bf16 %v346_v8, %v236_v28  ;;  %v1224_v44 = vsel %vm11195_vm5, %v11194_v16, %v6669_v63  ;;  %6872 = vrot.lane.b32.xlu0 %v8894_v42, %s7169_s29  ;;  %v11196_v8 = vunpack.i.h.bf16 %v8708_v6  ;;  %v9265_v1 = vpop.permute.xlu0 %6672  ;;  %v11201_v16 = vld [vmem:[#allocation19_spill] sm:$0xff] }
 0x1b7   :  { %5524 = vmatpush1.bf16.msra.mxu0 %v11193_v27  ;;  %v5567_v11 = vpack.c.bf16 %v345_v24, %v235_v52  ;;  %vm11197_vm8 = vcmask 220160   ;;  %v11199_v4 = vunpack.i.l.bf16 %v11198_v36  ;;  %v6155_v28 = vunpack.i.h.bf16 %v11163_v56 }
 0x1b8   :  { %v1114_v2 = vsel %vm11197_vm8, %v11196_v8, %v6664_v58  ;;  %5526 = vmatprep.subr.bf16.mxu0 %v5525_v43  ;;  %5566 = vmatprep.subr.bf16.mxu1 %v5565_v39  ;;  %v10891_v19 = vunpack.i.h.bf16 %v9252_v37  ;;  %v6679_v42 = vunpack.i.l.bf16 %v9252_v37  ;;  %v11200_v52 = vunpack.i.l.bf16 %v11146_v40 }
 0x1b9   :  { %v566_v5 = vsel %vm554_vm4, %v6115_v38, %v11199_v4  ;;  %v5529_v24 = vpack.c.bf16 %v1224_v44, %v1114_v2  ;;  %v6675_v60 = vunpack.i.h.bf16 %v9265_v1  ;;  %v6674_v27 = vunpack.i.l.bf16 %v9265_v1  ;;  %5568 = vmatpush1.bf16.msra.mxu1 %v5567_v11  ;;  %2312 = vrot.lane.b32.xlu1 %v9186_v50, %s7166_s24 }
 0x1ba   :  { %v565_v6 = vsel %vm554_vm4, %v11200_v52, %v6115_v38  ;;  %v11202_v8 = vunpack.i.l.bf16 %v11201_v16  ;;  %v11203_v39 = vunpack.i.l.bf16 %v11160_v33  ;;  %v6660_v44 = vunpack.i.h.bf16 %v9164_v30  ;;  %2202 = vrot.lane.b32.xlu0 %v9186_v50, %s7165_s20 }
 0x1bb   :  { %vm11204_vm1 = vcmask 228352   ;;  %v11205_v38 = vpack.c.bf16 %v8646_v45, %v8657_v57  ;;  %v11206_v52 = vunpack.i.l.bf16 %v11155_v48  ;;  %vm11207_vm9 = vcmask 867328   ;;  %v11208_v45 = vld [vmem:[#allocation34_spill] sm:$0xff] }
 0x1bc   :  { %v456_v43 = vsel %vm444_vm3, %v6075_v12, %v11202_v8  ;;  %v785_v4 = vsel %vm774_vm7, %v11203_v39, %v6195_v22  ;;  %v9284_v40 = vsel %vm11204_vm1, %v6679_v42, %v10891_v19  ;;  %v9295_v33 = vsel %vm11207_vm9, %v6674_v27, %v6675_v60  ;;  %v9301_v8 = vpop.permute.xlu1 %6687  ;;  %v11211_v19 = vld [vmem:[#allocation30_spill] sm:$0xff]  ;;  %vm11215_vm8 = vmmov %vm11204_vm1 }
 0x1bd   :  { %5528 = vmatpush1.bf16.msra.mxu0 %v11205_v38  ;;  %v5569_v2 = vpack.c.bf16 %v566_v5, %v456_v43  ;;  %v455_v20 = vsel %vm444_vm3, %v11206_v52, %v6075_v12  ;;  %v11209_v57 = vunpack.i.l.bf16 %v11208_v45  ;;  %vm11210_vm2 = vcmask 883712   ;;  %v9310_v5 = vpop.permute.xlu0 %6682  ;;  %2532 = vrot.lane.b32.xlu1 %v9186_v50, %s7168_s26 }
 0x1be   :  { %v675_v48 = vsel %vm11210_vm2, %v6154_v14, %v6155_v28  ;;  %5530 = vmatprep.subr.bf16.mxu0 %v5529_v24  ;;  %v6689_v12 = vunpack.i.l.bf16 %v9301_v8  ;;  %v5571_v43 = vpack.c.bf16 %v565_v6, %v455_v20  ;;  %v6655_v38 = vunpack.i.h.bf16 %v9179_v59  ;;  %vm11213_vm5 = vmmov %vm11210_vm2  ;;  %2422 = vrot.lane.b32.xlu0 %v9186_v50, %s7167_s25 }
 0x1bf   :  { %v786_v11 = vsel %vm774_vm7, %v6195_v22, %v11209_v57  ;;  %5570 = vmatprep.subr.bf16.mxu1 %v5569_v2  ;;  %v6684_v52 = vunpack.i.l.bf16 %v9310_v5  ;;  %v11212_v22 = vunpack.i.l.bf16 %v11211_v19  ;;  %v5575_v57 = vpack.c.bf16 %v785_v4, %v675_v48 }
 0x1c0   :  { %v11214_v14 = vunpack.i.l.bf16 %v9164_v30  ;;  %v11216_v2 = vpack.c.bf16 %v8719_v61, %v8725_v26  ;;  %5572 = vmatpush1.bf16.msra.mxu1 %v5571_v43  ;;  %v11217_v20 = vunpack.i.h.bf16 %v8758_v47  ;;  %vm11218_vm1 = vcmask 138240   ;;  %v9334_v30 = vpop.permute.xlu1 %6697 }
 0x1c1   :  { %v676_v56 = vsel %vm11213_vm5, %v6155_v28, %v11212_v22  ;;  %v11219_v28 = vunpack.i.h.bf16 %v8765_v10  ;;  %vm11220_vm9 = vcmask 146432   ;;  %vm11221_vm2 = vcmask 867328   ;;  %vm11222_vm5 = vmmov %vm11215_vm8  ;;  %v9344_v43 = vpop.permute.xlu0 %6692  ;;  %2860 = vrot.lane.b32.xlu1 %v8878_v17, %s7171_s23 }
 0x1c2   :  { %v1005_v24 = vsel %vm11215_vm8, %v11214_v14, %v6660_v44  ;;  %5532 = vmatpush1.bf16.msra.mxu0 %v11216_v2  ;;  %v5573_v6 = vpack.c.bf16 %v786_v11, %v676_v56  ;;  %v1444_v39 = vsel %vm11218_vm1, %v11217_v20, %v6689_v12  ;;  %v896_v26 = vsel %vm11221_vm2, %v6655_v38, %v6674_v27  ;;  %vm11223_vm8 = vmmov %vm11221_vm2 }
 0x1c3   :  { %v1334_v61 = vsel %vm11220_vm9, %v11219_v28, %v6684_v52  ;;  %v1006_v4 = vsel %vm11222_vm5, %v6660_v44, %v6679_v42  ;;  %v6670_v47 = vunpack.i.h.bf16 %v9212_v3  ;;  %v6700_v11 = vunpack.i.h.bf16 %v9334_v30  ;;  %2858 = vrot.lane.b32.xlu0 %v8873_v13, %s7171_s23 }
 0x1c4   :  { %5574 = vmatprep.subr.bf16.mxu1 %v5573_v6  ;;  %v6699_v48 = vunpack.i.l.bf16 %v9334_v30  ;;  %v5533_v22 = vpack.c.bf16 %v1444_v39, %v1334_v61  ;;  %v895_v10 = vsel %vm11223_vm8, %v6654_v25, %v6655_v38  ;;  %v6665_v56 = vunpack.i.h.bf16 %v9226_v41  ;;  %v9367_v25 = vpop.permute.xlu1 %6707 }
 0x1c5   :  { %v6695_v27 = vunpack.i.h.bf16 %v9344_v43  ;;  %v6694_v42 = vunpack.i.l.bf16 %v9344_v43  ;;  %vm11224_vm1 = vcmask 211968   ;;  %5576 = vmatpush1.bf16.msra.mxu1 %v5575_v57  ;;  %v5577_v14 = vpack.c.bf16 %v1006_v4, %v896_v26  ;;  %v9374_v6 = vpop.permute.xlu0 %6702  ;;  %2752 = vrot.lane.b32.xlu1 %v9186_v50, %s7170_s30  ;;  %s11352_s30 = smov 117  }
 0x1c6   :  { %v9355_v44 = vsel %vm11224_vm1, %v6699_v48, %v6700_v11  ;;  %5534 = vmatprep.subr.bf16.mxu0 %v5533_v22  ;;  %vm11225_vm9 = vmmov %vm11224_vm1  ;;  %vm11226_vm2 = vcmask 220160   ;;  %v11228_v57 = vpack.c.bf16 %v8775_v23, %v8784_v46  ;;  %v6709_v2 = vunpack.i.l.bf16 %v9367_v25 }
 0x1c7   :  { %v1226_v39 = vsel %vm11225_vm9, %v6670_v47, %v6699_v48  ;;  %v9361_v59 = vsel %vm11226_vm2, %v6694_v42, %v6695_v27  ;;  %vm11227_vm5 = vmmov %vm11226_vm2  ;;  %5578 = vmatprep.subr.bf16.mxu1 %v5577_v14  ;;  %v5579_v20 = vpack.c.bf16 %v1005_v24, %v895_v10  ;;  %v6690_v23 = vunpack.i.h.bf16 %v9301_v8  ;;  %2642 = vrot.lane.b32.xlu0 %v9186_v50, %s7169_s29 }
 0x1c8   :  { %v1116_v38 = vsel %vm11227_vm5, %v6665_v56, %v6694_v42  ;;  %5536 = vmatpush1.bf16.msra.mxu0 %v11228_v57  ;;  %v5635_v17 = vpack.c.bf16 %v9355_v44, %v9361_v59  ;;  %vm11229_vm8 = vmmov %vm11224_vm1  ;;  %v6704_v46 = vunpack.i.l.bf16 %v9374_v6  ;;  %v6685_v26 = vunpack.i.h.bf16 %v9310_v5  ;;  %v9394_v3 = vpop.permute.xlu1 %6717 }
 0x1c9   :  { %v5581_v28 = vpack.c.bf16 %v1226_v39, %v1116_v38  ;;  %v1225_v13 = vsel %vm11229_vm8, %v6669_v63, %v6670_v47  ;;  %vm11230_vm1 = vmmov %vm11226_vm2  ;;  %5580 = vmatpush1.bf16.msra.mxu1 %v5579_v20  ;;  %v11231_v24 = vunpack.i.h.bf16 %v8811_v35  ;;  %vm11232_vm9 = vcmask 64512   ;;  %v9401_v35 = vpop.permute.xlu0 %6712 }
 0x1ca   :  { %v1115_v61 = vsel %vm11230_vm1, %v6664_v58, %v6665_v56  ;;  %v11233_v63 = vunpack.i.h.bf16 %v8818_v31  ;;  %vm11234_vm2 = vcmask 130048   ;;  %v10895_v58 = vunpack.i.h.bf16 %v9394_v3 }
 0x1cb   :  { %v1664_v4 = vsel %vm11232_vm9, %v11231_v24, %v6709_v2  ;;  %5582 = vmatprep.subr.bf16.mxu1 %v5581_v28  ;;  %v6719_v5 = vunpack.i.l.bf16 %v9394_v3  ;;  %v5583_v47 = vpack.c.bf16 %v1225_v13, %v1115_v61  ;;  %vm11235_vm5 = vcmask 138240   ;;  %2862 = vrot.lane.b32.xlu0 %v9186_v50, %s7171_s23 }
 0x1cc   :  { %v1554_v41 = vsel %vm11234_vm2, %v11233_v63, %v6704_v46  ;;  %v1445_v22 = vsel %vm11235_vm5, %v6689_v12, %v6690_v23  ;;  %v6715_v10 = vunpack.i.h.bf16 %v9401_v35  ;;  %v6714_v56 = vunpack.i.l.bf16 %v9401_v35  ;;  %vm11237_vm1 = vmmov %vm11235_vm5 }
 0x1cd   :  { %v5537_v48 = vpack.c.bf16 %v1664_v4, %v1554_v41  ;;  %vm11236_vm8 = vcmask 146432   ;;  %v9412_v42 = vsel %vm11237_vm1, %v6719_v5, %v10895_v58  ;;  %5584 = vmatpush1.bf16.msra.mxu1 %v5583_v47  ;;  %vm11238_vm9 = vmmov %vm11237_vm1  ;;  %v11240_v12 = vpack.c.bf16 %v8826_v54, %v8838_v9  ;;  %v6723_v57 = vpop.permute.xlu0 %6722 }
 0x1ce   :  { %v1335_v31 = vsel %vm11236_vm8, %v6684_v52, %v6685_v26  ;;  %v1446_v14 = vsel %vm11238_vm9, %v6690_v23, %v6719_v5  ;;  %vm11239_vm2 = vmmov %vm11236_vm8  ;;  %v6728_v52 = vpop.permute.xlu1 %6727  ;;  %v6724_v13 = vunpack.i.l.bf16 %v6723_v57  ;;  %v6710_v23 = vunpack.i.h.bf16 %v9367_v25 }
 0x1cf   :  { %5538 = vmatprep.subr.bf16.mxu0 %v5537_v48  ;;  %v9418_v8 = vsel %vm11239_vm2, %v6714_v56, %v6715_v10  ;;  %vm11241_vm5 = vmmov %vm11239_vm2  ;;  %v6729_v38 = vunpack.i.l.bf16 %v6728_v52  ;;  %v5587_v61 = vpack.c.bf16 %v1445_v22, %v1335_v31  ;;  %v6705_v24 = vunpack.i.h.bf16 %v9374_v6  ;;  %v11251_v31 = vld [vmem:[#allocation37_spill] sm:$0xff] }
 0x1d0   :  { %5540 = vmatpush1.bf16.msra.mxu0 %v11240_v12  ;;  %v1336_v39 = vsel %vm11241_vm5, %v6685_v26, %v6714_v56  ;;  %v11242_v50 = vunpack.i.h.bf16 %v8865_v62  ;;  %vm11243_vm8 = vcmask 48128   ;;  %v11244_v26 = vunpack.i.h.bf16 %v8882_v32 }
 0x1d1   :  { %v5585_v20 = vpack.c.bf16 %v1446_v14, %v1336_v39  ;;  %vm11245_vm1 = vcmask 56320   ;;  %v9440_v5 = vpop.permute.xlu0 %6732  ;;  %vm11246_vm9 = vcmask 64512   ;;  %vm11247_vm2 = vcmask 130048  }
 0x1d2   :  { %v1884_v54 = vsel %vm11243_vm8, %v11242_v50, %v6729_v38  ;;  %v9433_v9 = vpop.permute.xlu1 %6737  ;;  %v1774_v4 = vsel %vm11245_vm1, %v11244_v26, %v6724_v13  ;;  %v10894_v6 = vunpack.i.h.bf16 %v9440_v5  ;;  %v6734_v62 = vunpack.i.l.bf16 %v9440_v5  ;;  %vm11248_vm5 = vmmov %vm11246_vm9 }
 0x1d3   :  { %5586 = vmatprep.subr.bf16.mxu1 %v5585_v20  ;;  %v10893_v63 = vunpack.i.h.bf16 %v9433_v9  ;;  %v6739_v41 = vunpack.i.l.bf16 %v9433_v9  ;;  %v5541_v25 = vpack.c.bf16 %v1884_v54, %v1774_v4  ;;  %v1665_v47 = vsel %vm11246_vm9, %v6709_v2, %v6710_v23  ;;  %vm11249_vm8 = vmmov %vm11248_vm5  ;;  %v11254_v54 = vld [vmem:[#allocation36_spill] sm:$0xff] }
 0x1d4   :  { %5588 = vmatpush1.bf16.msra.mxu1 %v5587_v61  ;;  %v1555_v48 = vsel %vm11247_vm2, %v6704_v46, %v6705_v24  ;;  %vm11250_vm1 = vmmov %vm11247_vm2  ;;  %v11252_v14 = vpack.c.bf16 %v8890_v7, %v11251_v31  ;;  %v11255_v26 = vunpack.i.h.bf16 %v11254_v54  ;;  %vm11256_vm2 = vcmask 449536   ;;  %v11257_v7 = vld [vmem:[#allocation39_spill] sm:$0xff] }
 0x1d5   :  { %v9449_v32 = vsel %vm11248_vm5, %v6739_v41, %v10893_v63  ;;  %5542 = vmatprep.subr.bf16.mxu0 %v5541_v25  ;;  %v1666_v22 = vsel %vm11249_vm8, %v6710_v23, %v6739_v41  ;;  %v9455_v56 = vsel %vm11250_vm1, %v6734_v62, %v10894_v6  ;;  %vm11253_vm9 = vmmov %vm11250_vm1  ;;  %v6743_v39 = vpop.permute.xlu0 %6742  ;;  %v5591_v23 = vpack.c.bf16 %v1665_v47, %v1555_v48 }
 0x1d6   :  { %5544 = vmatpush1.bf16.msra.mxu0 %v11252_v14  ;;  %v6748_v2 = vpop.permute.xlu1 %6747  ;;  %v1556_v46 = vsel %vm11253_vm9, %v6705_v24, %v6734_v62  ;;  %v6744_v50 = vunpack.i.l.bf16 %v6743_v39  ;;  %v6730_v41 = vunpack.i.h.bf16 %v6728_v52  ;;  %v6725_v25 = vunpack.i.h.bf16 %v6723_v57 }
 0x1d7   :  { %v6749_v12 = vunpack.i.l.bf16 %v6748_v2  ;;  %v5589_v20 = vpack.c.bf16 %v1666_v22, %v1556_v46  ;;  %v11258_v31 = vunpack.i.h.bf16 %v11257_v7  ;;  %vm11259_vm5 = vcmask 457728  }
 0x1d8   :  { %vm11260_vm8 = vcmask 48128   ;;  %vm11261_vm1 = vcmask 56320   ;;  %v11262_v52 = vpack.c.bf16 %v8940_v29, %v8947_v53  ;;  %v6745_v54 = vunpack.i.h.bf16 %v6743_v39 }
 0x1d9   :  { %5590 = vmatprep.subr.bf16.mxu1 %v5589_v20  ;;  %v2104_v4 = vsel %vm11256_vm2, %v11255_v26, %v6749_v12  ;;  %v1994_v24 = vsel %vm11259_vm5, %v11258_v31, %v6744_v50  ;;  %v9471_v22 = vpop.permute.xlu0 %6752  ;;  %v1885_v47 = vsel %vm11260_vm8, %v6729_v38, %v6730_v41  ;;  %v1775_v48 = vsel %vm11261_vm1, %v6724_v13, %v6725_v25  ;;  %vm11263_vm9 = vmmov %vm11260_vm8 }
 0x1da   :  { %5592 = vmatpush1.bf16.msra.mxu1 %v5591_v23  ;;  %v5545_v62 = vpack.c.bf16 %v2104_v4, %v1994_v24  ;;  %v9469_v14 = vpop.permute.xlu1 %1866  ;;  %v10892_v46 = vunpack.i.l.bf16 %v9471_v22  ;;  %vm11264_vm2 = vmmov %vm11261_vm1  ;;  %v6750_v23 = vunpack.i.h.bf16 %v6748_v2  ;;  %v5595_v24 = vpack.c.bf16 %v1885_v47, %v1775_v48 }
 0x1db   :  { %v1886_v57 = vsel %vm11263_vm9, %v6730_v41, %v9469_v14  ;;  %v11265_v29 = vunpack.i.h.bf16 %v8980_v0  ;;  %vm11266_vm5 = vcmask 441344   ;;  %v11267_v13 = vunpack.i.h.bf16 %v8973_v51  ;;  %v11272_v51 = vld [vmem:[#allocation54_spill] sm:$0xff] }
 0x1dc   :  { %5546 = vmatprep.subr.bf16.mxu0 %v5545_v62  ;;  %v1776_v20 = vsel %vm11264_vm2, %v6725_v25, %v10892_v46  ;;  %vm11268_vm8 = vcmask 449536   ;;  %vm11269_vm1 = vcmask 457728   ;;  %v5960_v46 = vunpack.i.h.bf16 %v11158_v34 }
 0x1dd   :  { %5548 = vmatpush1.bf16.msra.mxu0 %v11262_v52  ;;  %v6758_v4 = vpop.permute.xlu0 %6757  ;;  %v5593_v7 = vpack.c.bf16 %v1886_v57, %v1776_v20  ;;  %v2105_v25 = vsel %vm11268_vm8, %v6749_v12, %v6750_v23  ;;  %v1995_v2 = vsel %vm11269_vm1, %v6744_v50, %v6745_v54  ;;  %vm11270_vm9 = vmmov %vm11268_vm8  ;;  %v11273_v57 = vld [vmem:[#allocation38_spill] sm:$0xff] }
 0x1de   :  { %v6763_v26 = vpop.permute.xlu1 %6762  ;;  %v6759_v38 = vunpack.i.l.bf16 %v6758_v4  ;;  %vm11271_vm2 = vmmov %vm11269_vm1  ;;  %v11274_v20 = vpack.c.bf16 %v11272_v51, %v11273_v57  ;;  %v5599_v12 = vpack.c.bf16 %v2105_v25, %v1995_v2  ;;  %v6760_v50 = vunpack.i.h.bf16 %v6758_v4  ;;  %v11279_v57 = vld [vmem:[#allocation43_spill] sm:$0xff] }
 0x1df   :  { %v6764_v31 = vunpack.i.l.bf16 %v6763_v26  ;;  %5594 = vmatprep.subr.bf16.mxu1 %v5593_v7  ;;  %v6765_v7 = vunpack.i.h.bf16 %v6763_v26  ;;  %vm11278_vm8 = vmmov %vm11266_vm5  ;;  %vm11294_vm1 = vcmask 965632  }
 0x1e0   :  { %5596 = vmatpush1.bf16.msra.mxu1 %v5595_v24  ;;  %v2214_v53 = vsel %vm11266_vm5, %v11265_v29, %v6759_v38  ;;  %v2215_v25 = vsel %vm11266_vm5, %v6759_v38, %v6760_v50  ;;  %vm11310_vm5 = vcmask 883712  }
 0x1e1   :  { %v2324_v41 = vsel %vm2314_vm15, %v11267_v13, %v6764_v31  ;;  %v9494_v62 = vpop.permute.xlu0 %1976 }
 0x1e2   :  { %v9492_v39 = vpop.permute.xlu1 %2086  ;;  %v5549_v52 = vpack.c.bf16 %v2324_v41, %v2214_v53  ;;  %v1996_v0 = vsel %vm11271_vm2, %v6745_v54, %v9494_v62  ;;  %v11276_v54 = vld [vmem:[#allocation40_spill] sm:$0xff]  ;;  %vm11308_vm2 = vmmov %vm11294_vm1 }
 0x1e3   :  { %v2106_v47 = vsel %vm11270_vm9, %v6750_v23, %v9492_v39  ;;  %v11275_v23 = vunpack.i.h.bf16 %v9042_v21  ;;  %vm11298_vm9 = vcmask 1031168  }
 0x1e4   :  { %5550 = vmatprep.subr.bf16.mxu0 %v5549_v52  ;;  %v5597_v48 = vpack.c.bf16 %v2106_v47, %v1996_v0  ;;  %v11277_v52 = vunpack.i.h.bf16 %v11276_v54  ;;  %v2325_v0 = vsel %vm2314_vm15, %v6764_v31, %v6765_v7 }
 0x1e5   :  { %5552 = vmatpush1.bf16.msra.mxu0 %v11274_v20  ;;  %v6768_v29 = vpop.permute.xlu0 %6767  ;;  %v11280_v20 = vld [vmem:[#allocation42_spill] sm:$0xff]  ;;  %v5603_v31 = vpack.c.bf16 %v2325_v0, %v2215_v25 }
 0x1e6   :  { %v6773_v24 = vpop.permute.xlu1 %6772  ;;  %5598 = vmatprep.subr.bf16.mxu1 %v5597_v48  ;;  %v6769_v53 = vunpack.i.l.bf16 %v6768_v29  ;;  %v6770_v38 = vunpack.i.h.bf16 %v6768_v29 }
 0x1e7   :  { %v6774_v13 = vunpack.i.l.bf16 %v6773_v24  ;;  %5600 = vmatpush1.bf16.msra.mxu1 %v5599_v12  ;;  %v11281_v12 = vpack.c.bf16 %v11279_v57, %v11280_v20 }
 0x1e8   :  { %v2434_v41 = vsel %vm2424_vm10, %v11275_v23, %v6769_v53  ;;  %v6775_v23 = vunpack.i.h.bf16 %v6773_v24  ;;  %v2435_v29 = vsel %vm2424_vm10, %v6769_v53, %v6770_v38 }
 0x1e9   :  { %v2544_v47 = vsel %vm2534_vm11, %v11277_v52, %v6774_v13  ;;  %v9513_v4 = vpop.permute.xlu0 %2196 }
 0x1ea   :  { %v9511_v26 = vpop.permute.xlu1 %2306  ;;  %v5553_v2 = vpack.c.bf16 %v2544_v47, %v2434_v41  ;;  %v2216_v21 = vsel %vm11278_vm8, %v6760_v50, %v9513_v4  ;;  %v11282_v47 = vld [vmem:[#allocation5_spill] sm:$0xff]  ;;  %v11283_v50 = vld [vmem:[#allocation44_spill] sm:$0xff]  ;;  %v2545_v24 = vsel %vm2534_vm11, %v6774_v13, %v6775_v23  ;;  %v11289_v13 = vpack.c.bf16 %v9127_v15, %v9139_v18  ;;  %v11291_v15 = vld [vmem:[#allocation22_spill] sm:$0xff] }
 0x1eb   :  { %v2326_v48 = vsel %vm2314_vm15, %v6765_v7, %v9511_v26  ;;  %v5964_v7 = vunpack.i.l.bf16 %v11282_v47  ;;  %v5607_v53 = vpack.c.bf16 %v2545_v24, %v2435_v29  ;;  %v6124_v18 = vunpack.i.l.bf16 %v11291_v15  ;;  %v11292_v24 = vld [vmem:[#allocation47_spill] sm:$0xff]  ;;  %vm11312_vm8 = vmmov %vm11298_vm9 }
 0x1ec   :  { %v5601_v51 = vpack.c.bf16 %v2326_v48, %v2216_v21  ;;  %5554 = vmatprep.subr.bf16.mxu0 %v5553_v2  ;;  %v11284_v48 = vunpack.i.h.bf16 %v11283_v50  ;;  %v11285_v21 = vld [vmem:[#allocation45_spill] sm:$0xff] }
 0x1ed   :  { %5556 = vmatpush1.bf16.msra.mxu0 %v11281_v12  ;;  %v6778_v52 = vpop.permute.xlu0 %6777  ;;  %v11286_v57 = vunpack.i.h.bf16 %v11285_v21  ;;  %v11287_v12 = vld [vmem:[#allocation14_spill] sm:$0xff] }
 0x1ee   :  { %v6783_v54 = vpop.permute.xlu1 %6782  ;;  %5602 = vmatprep.subr.bf16.mxu1 %v5601_v51  ;;  %v6779_v41 = vunpack.i.l.bf16 %v6778_v52  ;;  %v6780_v28 = vunpack.i.h.bf16 %v6778_v52 }
 0x1ef   :  { %v6784_v61 = vunpack.i.l.bf16 %v6783_v54  ;;  %5604 = vmatpush1.bf16.msra.mxu1 %v5603_v31  ;;  %v6044_v31 = vunpack.i.l.bf16 %v11287_v12  ;;  %v6785_v6 = vunpack.i.h.bf16 %v6783_v54  ;;  %v11295_v54 = vld [vmem:[#allocation41_spill] sm:$0xff] }
 0x1f0   :  { %v2654_v2 = vsel %vm2644_vm12, %v11284_v48, %v6779_v41  ;;  %v2655_v58 = vsel %vm2644_vm12, %v6779_v41, %v6780_v28  ;;  %v11299_v41 = vunpack.i.h.bf16 %v11198_v36 }
 0x1f1   :  { %v2764_v0 = vsel %vm2754_vm13, %v11286_v57, %v6784_v61  ;;  %v9534_v51 = vpop.permute.xlu0 %2416  ;;  %v11288_v57 = vld [vmem:[#allocation9_spill] sm:$0xff] }
 0x1f2   :  { %v9532_v25 = vpop.permute.xlu1 %2526  ;;  %v5557_v20 = vpack.c.bf16 %v2764_v0, %v2654_v2  ;;  %v2436_v48 = vsel %vm2424_vm10, %v6770_v38, %v9534_v51  ;;  %v6004_v63 = vunpack.i.l.bf16 %v11288_v57  ;;  %v128_v2 = vsel %vm114_vm0, %v5960_v46, %v5964_v7 }
 0x1f3   :  { %v2546_v50 = vsel %vm2534_vm11, %v6775_v23, %v9532_v25  ;;  %v11290_v0 = vunpack.i.l.bf16 %v11158_v34  ;;  %v11293_v34 = vunpack.i.h.bf16 %v11182_v49  ;;  %v5613_v52 = vpack.c.bf16 %v128_v2, %v11295_v54  ;;  %v9579_v2 = vld [vmem:[%s10718_s1] sm:$0xff] }
 0x1f4   :  { %v5605_v21 = vpack.c.bf16 %v2546_v50, %v2436_v48  ;;  %5558 = vmatprep.subr.bf16.mxu0 %v5557_v20  ;;  %v32_v20 = vld [vmem:[%s10717_s0 + $0x60] sm:$0xff] }
 0x1f5   :  { %5560 = vmatpush1.bf16.msra.mxu0 %v11289_v13  ;;  %v127_v23 = vsel %vm114_vm0, %v11290_v0, %v5960_v46  ;;  %v2851_v50 = vpop.permute.xlu0 %2850  ;;  %v348_v46 = vsel %vm11294_vm1, %v11293_v34, %v6044_v31  ;;  %vm11316_vm1 = vcmask 867328  }
 0x1f6   :  { %v2853_v38 = vpop.permute.xlu1 %2852  ;;  %5606 = vmatprep.subr.bf16.mxu1 %v5605_v21  ;;  %v2873_v29 = vsel %vm2864_vm14, %v11292_v24, %v2851_v50  ;;  %v11296_v21 = vld [vmem:[#allocation18_spill] sm:$0xff]  ;;  %v5615_v0 = vpack.c.bf16 %v127_v23, %v32_v20  ;;  %v11297_v24 = vunpack.i.h.bf16 %v11186_v55  ;;  %v568_v20 = vsel %vm554_vm4, %v11299_v41, %v6124_v18 }
 0x1f7   :  { %5608 = vmatpush1.bf16.msra.mxu1 %v5607_v53  ;;  %v2874_v48 = vsel %vm2864_vm14, %v2851_v50, %v2853_v38  ;;  %v6084_v13 = vunpack.i.l.bf16 %v11296_v21  ;;  %v2765_v50 = vsel %vm2754_vm13, %v6784_v61, %v6785_v6 }
 0x1f8   :  { %3657 = vmatprep.subr.mxu0 %v2874_v48  ;;  %v238_v53 = vsel %vm11298_vm9, %v11297_v24, %v6004_v63  ;;  %v5965_v48 = vunpack.i.h.bf16 %v11282_v47  ;;  %v11301_v24 = vld [vmem:[#allocation16_spill] sm:$0xff]  ;;  %vm11321_vm9 = vcmask 211968  }
 0x1f9   :  { %3658 = vmatpush1.msra.mxu0 %v2873_v29  ;;  %v9574_v34 = vpop.permute.xlu0 %2636  ;;  %v5617_v23 = vpack.c.bf16 %v348_v46, %v238_v53  ;;  %v7145_v29 = vld [vmem:[%s10718_s1 + $0x8] sm:$0xff]  ;;  %v11302_v53 = vld [vmem:[#allocation11_spill] sm:$0xff] }
 0x1fa   :  { %v9572_v49 = vpop.permute.xlu1 %2746  ;;  %3670 = vmatmul.mubr.f32.vlgmr.msra.gmra.mrb[4].mxu0 %v9579_v2  ;;  %5614 = vmatprep.subr.bf16.mxu0 %v5613_v52  ;;  %v2656_v61 = vsel %vm2644_vm12, %v6780_v28, %v9574_v34  ;;  %v11300_v28 = vunpack.i.h.bf16 %v11201_v16  ;;  %v11303_v41 = vpack.c.bf16 %v11301_v24, %v11302_v53  ;;  %v6045_v16 = vunpack.i.h.bf16 %v11287_v12 }
 0x1fb   :  { %v2766_v55 = vsel %vm2754_vm13, %v6785_v6, %v9572_v49  ;;  %5616 = vmatpush1.bf16.msra.mxu0 %v5615_v0  ;;  %5088 = vmatprep.mubr.msk.f32.mxu0 %vm3317_vm6, %v7145_v29  ;;  %v5611_v6 = vpack.c.bf16 %v2765_v50, %v2655_v58  ;;  %v129_v58 = vsel %vm114_vm0, %v5964_v7, %v5965_v48  ;;  %v34_v50 = vld [vmem:[%s10717_s0 + $0x70] sm:$0xff]  ;;  %v11305_v7 = vld [vmem:[#allocation25_spill] sm:$0xff]  ;;  %v6125_v53 = vunpack.i.h.bf16 %v11291_v15  ;;  %s11351_s0 = smov 118  }
 0x1fc   :  { %v5609_v46 = vpack.c.bf16 %v2766_v55, %v2656_v61  ;;  %5618 = vmatprep.subr.bf16.mxu0 %v5617_v23  ;;  %v458_v54 = vsel %vm444_vm3, %v11300_v28, %v6084_v13  ;;  %v11304_v55 = vld [vmem:[#allocation29_spill] sm:$0xff]  ;;  %v11306_v48 = vld [vmem:[#allocation26_spill] sm:$0xff]  ;;  %v349_v24 = vsel %vm11308_vm2, %v6044_v31, %v6045_v16  ;;  %v6085_v16 = vunpack.i.h.bf16 %v11296_v21  ;;  %vm11322_vm2 = vmmov %vm11310_vm5 }
 0x1fd   :  { %v2855_v52 = vpop.permute.xlu0 %2854  ;;  %v5621_v0 = vpack.c.bf16 %v568_v20, %v458_v54  ;;  %v6164_v61 = vunpack.i.l.bf16 %v11304_v55  ;;  %v6005_v20 = vunpack.i.h.bf16 %v11288_v57  ;;  %v11307_v54 = vpack.c.bf16 %v11305_v7, %v11306_v48  ;;  %v11313_v57 = vld [vmem:[#allocation35_spill] sm:$0xff] }
 0x1fe   :  { %v9601_v36 = vpop.permute.xlu1 %2856  ;;  %5610 = vmatprep.subr.bf16.mxu1 %v5609_v46  ;;  %v2875_v46 = vsel %vm2864_vm14, %v2853_v38, %v2855_v52  ;;  %v459_v15 = vsel %vm444_vm3, %v6084_v13, %v6085_v16  ;;  %v11319_v21 = vpack.c.bf16 %v9284_v40, %v9295_v33 }
 0x1ff   :  { %5612 = vmatpush1.bf16.msra.mxu1 %v5611_v6  ;;  %5620 = vmatpush1.bf16.msra.mxu0 %v11303_v41  ;;  %v2876_v23 = vsel %vm2864_vm14, %v2855_v52, %v9601_v36  ;;  %v7172_v41 = vmov 0.0|0.0   ;;  %v11309_v52 = vunpack.i.h.bf16 %v11211_v19  ;;  %v239_v31 = vsel %vm11312_vm8, %v6004_v63, %v6005_v20  ;;  %v11314_v20 = vld [vmem:[#allocation31_spill] sm:$0xff] }
 0x200   :  { %3728 = vmatprep.subr.mxu1 %v2876_v23  ;;  %5622 = vmatprep.subr.bf16.mxu0 %v5621_v0  ;;  %v5666_v0 = vpack.c.bf16 %v129_v58, %v34_v50  ;;  %v11311_v58 = vunpack.i.h.bf16 %v11208_v45  ;;  %v5669_v48 = vpack.c.bf16 %v349_v24, %v239_v31  ;;  %v569_v45 = vsel %vm554_vm4, %v6124_v18, %v6125_v53 }
 0x201   :  { %v6788_v28 = vpop.permute.xlu0 %6787  ;;  %v678_v23 = vsel %vm11310_vm5, %v11309_v52, %v6164_v61  ;;  %v6165_v18 = vunpack.i.h.bf16 %v11304_v55  ;;  %v5672_v1 = vpack.c.bf16 %v569_v45, %v459_v15  ;;  %vm11320_vm4 = vcmask 220160  }
 0x202   :  { %v9618_v6 = vpop.permute.xlu1 %6792  ;;  %v6789_v47 = vunpack.i.l.bf16 %v6788_v28  ;;  %vm11324_vm5 = vcmask 146432   ;;  %vm11326_vm8 = vcmask 138240  }
 0x203   :  { %3729 = vmatpush1.msra.mxu1 %v2875_v46  ;;  %5624 = vmatpush1.bf16.msra.mxu0 %v11307_v54  ;;  %v6794_v38 = vunpack.i.l.bf16 %v9618_v6  ;;  %v6790_v54 = vunpack.i.h.bf16 %v6788_v28  ;;  %v679_v31 = vsel %vm11322_vm2, %v6164_v61, %v6165_v18  ;;  %vm11333_vm2 = vcmask 220160  }
 0x204   :  { %3741 = vmatmul.mubr.f32.vlgmr.msra.gmra.mrb[4].mxu1 %v9579_v2  ;;  %5665 = vmatprep.subr.bf16.mxu1 %v7172_v41  ;;  %v788_v12 = vsel %vm774_vm7, %v11311_v58, %v6789_v47 }
 0x205   :  { %5667 = vmatpush1.bf16.msra.mxu1 %v5666_v0  ;;  %v6798_v46 = vpop.permute.xlu0 %6797  ;;  %v5625_v7 = vpack.c.bf16 %v788_v12, %v678_v23  ;;  %5089 = vmatprep.mubr.msk.f32.mxu1 %vm3317_vm6, %v7145_v29  ;;  %v11315_v0 = vpack.c.bf16 %v11313_v57, %v11314_v20  ;;  %v898_v52 = vsel %vm11316_vm1, %v6675_v60, %v6794_v38  ;;  %v11317_v29 = vunpack.i.h.bf16 %v9252_v37 }
 0x206   :  { %v9640_v50 = vpop.permute.xlu1 %6802  ;;  %5668 = vmatprep.subr.bf16.mxu1 %v7172_v41  ;;  %v6799_v19 = vunpack.i.l.bf16 %v6798_v46  ;;  %vm11318_vm6 = vcmask 228352   ;;  %v789_v60 = vsel %vm774_vm7, %v6789_v47, %v6790_v54  ;;  %v6800_v12 = vunpack.i.h.bf16 %v6798_v46 }
 0x207   :  { %5626 = vmatprep.subr.bf16.mxu0 %v5625_v7  ;;  %v6804_v63 = vunpack.i.l.bf16 %v9640_v50  ;;  %v6795_v47 = vunpack.i.h.bf16 %v9618_v6  ;;  %v5675_v40 = vpack.c.bf16 %v789_v60, %v679_v31  ;;  %vm11323_vm7 = vmmov %vm11318_vm6 }
 0x208   :  { %5628 = vmatpush1.bf16.msra.mxu0 %v11315_v0  ;;  %v1008_v24 = vsel %vm11318_vm6, %v11317_v29, %v6799_v19  ;;  %v1009_v43 = vsel %vm11323_vm7, %v6799_v19, %v6800_v12  ;;  %v6805_v19 = vunpack.i.h.bf16 %v9640_v50  ;;  %vm11327_vm6 = vmmov %vm11321_vm9  ;;  %v11329_v50 = vunpack.i.h.bf16 %v9440_v5 }
 0x209   :  { %5670 = vmatpush1.bf16.msra.mxu1 %v5669_v48  ;;  %v6808_v53 = vpop.permute.xlu0 %6807  ;;  %v5629_v23 = vpack.c.bf16 %v1008_v24, %v898_v52  ;;  %v1118_v13 = vsel %vm11320_vm4, %v6695_v27, %v6804_v63  ;;  %v11325_v27 = vunpack.i.h.bf16 %v9394_v3  ;;  %v899_v6 = vsel %vm11316_vm1, %v6794_v38, %v6795_v47 }
 0x20a   :  { %v9661_v28 = vpop.permute.xlu1 %6812  ;;  %5671 = vmatprep.subr.bf16.mxu1 %v7172_v41  ;;  %v6809_v58 = vunpack.i.l.bf16 %v6808_v53  ;;  %v6810_v48 = vunpack.i.h.bf16 %v6808_v53  ;;  %v5678_v44 = vpack.c.bf16 %v1009_v43, %v899_v6  ;;  %v11328_v38 = vpack.c.bf16 %v9412_v42, %v9418_v8 }
 0x20b   :  { %5630 = vmatprep.subr.bf16.mxu0 %v5629_v23  ;;  %v6814_v37 = vunpack.i.l.bf16 %v9661_v28  ;;  %vm11330_vm4 = vcmask 130048   ;;  %v11331_v0 = vunpack.i.h.bf16 %v9433_v9  ;;  %v1119_v29 = vsel %vm11333_vm2, %v6804_v63, %v6805_v19 }
 0x20c   :  { %5632 = vmatpush1.bf16.msra.mxu0 %v11319_v21  ;;  %v1228_v55 = vsel %vm11321_vm9, %v6700_v11, %v6809_v58  ;;  %v1229_v35 = vsel %vm11327_vm6, %v6809_v58, %v6810_v48  ;;  %vm11332_vm9 = vcmask 64512   ;;  %v6815_v24 = vunpack.i.h.bf16 %v9661_v28 }
 0x20d   :  { %5673 = vmatpush1.bf16.msra.mxu1 %v5672_v1  ;;  %v6818_v46 = vpop.permute.xlu0 %6817  ;;  %v5633_v7 = vpack.c.bf16 %v1228_v55, %v1118_v13  ;;  %v1338_v11 = vsel %vm11324_vm5, %v6715_v10, %v6814_v37  ;;  %v5681_v8 = vpack.c.bf16 %v1229_v35, %v1119_v29  ;;  %v11334_v5 = vunpack.i.l.bf16 %v9471_v22  ;;  %vm11336_vm5 = vmmov %vm11326_vm8 }
 0x20e   :  { %v9677_v16 = vpop.permute.xlu1 %6822  ;;  %5674 = vmatprep.subr.bf16.mxu1 %v7172_v41  ;;  %v6819_v33 = vunpack.i.l.bf16 %v6818_v46  ;;  %v6820_v10 = vunpack.i.h.bf16 %v6818_v46  ;;  %vm11335_vm7 = vcmask 56320   ;;  %v11338_v12 = vpack.c.bf16 %v9449_v32, %v9455_v56 }
 0x20f   :  { %5634 = vmatprep.subr.bf16.mxu0 %v5633_v7  ;;  %v6824_v30 = vunpack.i.l.bf16 %v9677_v16  ;;  %vm11339_vm1 = vmmov %vm11335_vm7  ;;  %v6825_v55 = vunpack.i.h.bf16 %v9677_v16  ;;  %vm11342_vm2 = vcmask 457728  }
 0x210   :  { %5636 = vmatpush1.bf16.msra.mxu0 %v5635_v17  ;;  %v1448_v61 = vsel %vm11326_vm8, %v11325_v27, %v6819_v33  ;;  %v6755_v17 = vunpack.i.h.bf16 %v9471_v22  ;;  %v1449_v9 = vsel %vm11336_vm5, %v6819_v33, %v6820_v10  ;;  %vm11337_vm8 = vcmask 48128   ;;  %vm11344_vm5 = vmmov %vm11342_vm2 }
 0x211   :  { %5676 = vmatpush1.bf16.msra.mxu1 %v5675_v40  ;;  %v6828_v54 = vpop.permute.xlu0 %6827  ;;  %v5637_v57 = vpack.c.bf16 %v1448_v61, %v1338_v11  ;;  %v1558_v20 = vsel %vm11330_vm4, %v11329_v50, %v6824_v30  ;;  %vm11340_vm6 = vmmov %vm11337_vm8  ;;  %vm11341_vm4 = vcmask 146432  }
 0x212   :  { %v9693_v45 = vpop.permute.xlu1 %6832  ;;  %5677 = vmatprep.subr.bf16.mxu1 %v7172_v41  ;;  %v6829_v59 = vunpack.i.l.bf16 %v6828_v54  ;;  %v1777_v58 = vsel %vm11335_vm7, %v11334_v5, %v6755_v17  ;;  %v6830_v1 = vunpack.i.h.bf16 %v6828_v54  ;;  %v1339_v13 = vsel %vm11341_vm4, %v6814_v37, %v6815_v24 }
 0x213   :  { %5638 = vmatprep.subr.bf16.mxu0 %v5637_v57  ;;  %v6834_v3 = vunpack.i.l.bf16 %v9693_v45  ;;  %v6835_v56 = vunpack.i.h.bf16 %v9693_v45  ;;  %vm11343_vm7 = vcmask 449536   ;;  %vm11347_vm4 = vcmask 441344  }
 0x214   :  { %5640 = vmatpush1.bf16.msra.mxu0 %v11328_v38  ;;  %v1668_v52 = vsel %vm11332_vm9, %v11331_v0, %v6829_v59  ;;  %v1669_v33 = vsel %vm11332_vm9, %v6829_v59, %v6830_v1  ;;  %vm11348_vm9 = vcmask 56320  }
 0x215   :  { %5679 = vmatpush1.bf16.msra.mxu1 %v5678_v44  ;;  %v6838_v18 = vpop.permute.xlu0 %6837  ;;  %v5641_v42 = vpack.c.bf16 %v1668_v52, %v1558_v20  ;;  %v1778_v22 = vsel %vm11339_vm1, %v6755_v17, %v6834_v3  ;;  %vm11346_vm1 = vcmask 130048   ;;  %v1779_v35 = vsel %vm11348_vm9, %v6834_v3, %v6835_v56 }
 0x216   :  { %v9712_v15 = vpop.permute.xlu1 %6842  ;;  %5680 = vmatprep.subr.bf16.mxu1 %v7172_v41  ;;  %v6840_v53 = vunpack.i.h.bf16 %v6838_v18  ;;  %v6839_v23 = vunpack.i.l.bf16 %v6838_v18  ;;  %vm11387_vm9 = vcmask 138240  }
 0x217   :  { %v6844_v63 = vunpack.i.l.bf16 %v9712_v15  ;;  %5642 = vmatprep.subr.bf16.mxu0 %v5641_v42  ;;  %v6845_v28 = vunpack.i.h.bf16 %v9712_v15 }
 0x218   :  { %v1887_v60 = vsel %vm11337_vm8, %v9469_v14, %v6839_v23  ;;  %5644 = vmatpush1.bf16.msra.mxu0 %v11338_v12  ;;  %v1888_v21 = vsel %vm11340_vm6, %v6839_v23, %v6840_v53  ;;  %v5684_v14 = vpack.c.bf16 %v1449_v9, %v1339_v13  ;;  %vm11345_vm8 = vmmov %vm11343_vm7 }
 0x219   :  { %5682 = vmatpush1.bf16.msra.mxu1 %v5681_v8  ;;  %v5647_v31 = vpack.c.bf16 %v1887_v60, %v1777_v58  ;;  %v6848_v46 = vpop.permute.xlu0 %6847  ;;  %v5645_v7 = vpack.c.bf16 %v1888_v21, %v1778_v22  ;;  %v1997_v43 = vsel %vm11342_vm2, %v9494_v62, %v6844_v63  ;;  %v1998_v27 = vsel %vm11344_vm5, %v6844_v63, %v6845_v28  ;;  %vm11349_vm2 = vmmov %vm11347_vm4 }
 0x21a   :  { %v9730_v47 = vpop.permute.xlu1 %6852  ;;  %5683 = vmatprep.subr.bf16.mxu1 %v7172_v41  ;;  %v6850_v40 = vunpack.i.h.bf16 %v6848_v46  ;;  %v6849_v32 = vunpack.i.l.bf16 %v6848_v46  ;;  %v1559_v62 = vsel %vm11346_vm1, %v6824_v30, %v6825_v55 }
 0x21b   :  { %v6854_v37 = vunpack.i.l.bf16 %v9730_v47  ;;  %5646 = vmatprep.subr.bf16.mxu0 %v5645_v7  ;;  %v6855_v48 = vunpack.i.h.bf16 %v9730_v47  ;;  %v5687_v57 = vpack.c.bf16 %v1669_v33, %v1559_v62 }
 0x21c   :  { %v2107_v11 = vsel %vm11343_vm7, %v9492_v39, %v6849_v32  ;;  %5648 = vmatpush1.bf16.msra.mxu0 %v5647_v31  ;;  %v2108_v61 = vsel %vm11345_vm8, %v6849_v32, %v6850_v40  ;;  %vm11350_vm8 = vmmov %vm11349_vm2 }
 0x21d   :  { %5685 = vmatpush1.bf16.msra.mxu1 %v5684_v14  ;;  %v5651_v6 = vpack.c.bf16 %v2107_v11, %v1997_v43  ;;  %v6858_v45 = vpop.permute.xlu0 %6857  ;;  %v5649_v54 = vpack.c.bf16 %v2108_v61, %v1998_v27  ;;  %v2217_v17 = vsel %vm11347_vm4, %v9513_v4, %v6854_v37  ;;  %v2218_v30 = vsel %vm11349_vm2, %v6854_v37, %v6855_v48 }
 0x21e   :  { %v1873_v19 = vpop.permute.xlu1 %1872  ;;  %5686 = vmatprep.subr.bf16.mxu1 %v7172_v41  ;;  %v6860_v44 = vunpack.i.h.bf16 %v6858_v45  ;;  %v6859_v59 = vunpack.i.l.bf16 %v6858_v45 }
 0x21f   :  { %v1889_v39 = vsel %vm11340_vm6, %v6840_v53, %v1873_v19  ;;  %5650 = vmatprep.subr.bf16.mxu0 %v5649_v54  ;;  %vm11384_vm6 = vcmask 146432  }
 0x220   :  { %v2327_v16 = vsel %vm2314_vm15, %v9511_v26, %v6859_v59  ;;  %5652 = vmatpush1.bf16.msra.mxu0 %v5651_v6  ;;  %v2328_v10 = vsel %vm2314_vm15, %v6859_v59, %v6860_v44  ;;  %v5690_v38 = vpack.c.bf16 %v1889_v39, %v1779_v35  ;;  %v7173_v35 = vmov 0.0   ;;  %vm11385_vm4 = vmmov %vm11384_vm6 }
 0x221   :  { %5688 = vmatpush1.bf16.msra.mxu1 %v5687_v57  ;;  %v5655_v50 = vpack.c.bf16 %v2327_v16, %v2217_v17  ;;  %v6863_v0 = vpop.permute.xlu0 %6862  ;;  %v5653_v52 = vpack.c.bf16 %v2328_v10, %v2218_v30 }
 0x222   :  { %v6868_v20 = vpop.permute.xlu1 %6867  ;;  %5689 = vmatprep.subr.bf16.mxu1 %v7172_v41  ;;  %v6865_v29 = vunpack.i.h.bf16 %v6863_v0  ;;  %v6864_v24 = vunpack.i.l.bf16 %v6863_v0 }
 0x223   :  { %v6870_v4 = vunpack.i.h.bf16 %v6868_v20  ;;  %v6869_v3 = vunpack.i.l.bf16 %v6868_v20  ;;  %5654 = vmatprep.subr.bf16.mxu0 %v5653_v52 }
 0x224   :  { %v2437_v18 = vsel %vm2424_vm10, %v9534_v51, %v6864_v24  ;;  %5656 = vmatpush1.bf16.msra.mxu0 %v5655_v50  ;;  %v2438_v42 = vsel %vm2424_vm10, %v6864_v24, %v6865_v29 }
 0x225   :  { %v2547_v26 = vsel %vm2534_vm11, %v9532_v25, %v6869_v3  ;;  %5691 = vmatpush1.bf16.msra.mxu1 %v5690_v38  ;;  %v1983_v23 = vpop.permute.xlu0 %1982  ;;  %v2548_v5 = vsel %vm2534_vm11, %v6869_v3, %v6870_v4 }
 0x226   :  { %v5659_v8 = vpack.c.bf16 %v2547_v26, %v2437_v18  ;;  %v2093_v53 = vpop.permute.xlu1 %2092  ;;  %5692 = vmatprep.subr.bf16.mxu1 %v7172_v41  ;;  %v1999_v25 = vsel %vm11344_vm5, %v6845_v28, %v1983_v23  ;;  %v5657_v9 = vpack.c.bf16 %v2548_v5, %v2438_v42  ;;  %v4159_v42 = vld [vmem:[%s10719_s2 + $0x80] sm:$0xff]  ;;  %v4192_v5 = vld [vmem:[%s10719_s2 + $0x188] sm:$0xff] }
 0x227   :  { %v2109_v58 = vsel %vm11343_vm7, %v6850_v40, %v2093_v53  ;;  %v9778_v31 = vpop.f32.mrb[0].mxu0  ;;  %v4191_v53 = vld [vmem:[%s10719_s2 + $0x180] sm:$0xff]  ;;  %vm11389_vm7 = vmmov %vm11387_vm9 }
 0x228   :  { %v5693_v1 = vpack.c.bf16 %v2109_v58, %v1999_v25  ;;  %5658 = vmatprep.subr.bf16.mxu0 %v5657_v9  ;;  %v4143_v58 = vld [vmem:[%s10719_s2] sm:$0xff]  ;;  %v4144_v25 = vld [vmem:[%s10719_s2 + $0x8] sm:$0xff]  ;;  %v9875_v9 = vpack.c.bf16 %v4192_v5, %v4191_v53 }
 0x229   :  { %5660 = vmatpush1.bf16.msra.mxu0 %v5659_v8  ;;  %v6873_v63 = vpop.permute.xlu0 %6872  ;;  %v4160_v8 = vld [vmem:[%s10719_s2 + $0x88] sm:$0xff]  ;;  %v4199_v53 = vld [vmem:[%s10719_s2 + $0x1c0] sm:$0xff] }
 0x22a   :  { %v6878_v51 = vpop.permute.xlu1 %6877  ;;  %5694 = vmatpush1.bf16.msra.mxu1 %v5693_v1  ;;  %v6875_v22 = vunpack.i.h.bf16 %v6873_v63  ;;  %v6874_v21 = vunpack.i.l.bf16 %v6873_v63  ;;  %v9864_v23 = vpack.c.bf16 %v4160_v8, %v4159_v42  ;;  %11355 = vst [vmem:[#allocation48_spill] sm:$0xff] %v9875_v9  ;;  %v9877_v1 = vpack.c.bf16 %v4144_v25, %v4143_v58  ;;  %v4176_v63 = vld [vmem:[%s10719_s2 + $0x108] sm:$0xff]  ;;  %v4167_v42 = vld [vmem:[%s10719_s2 + $0xc0] sm:$0xff] }
 0x22b   :  { %v6880_v60 = vunpack.i.h.bf16 %v6878_v51  ;;  %v6879_v12 = vunpack.i.l.bf16 %v6878_v51  ;;  %5695 = vmatprep.subr.bf16.mxu1 %v7172_v41  ;;  %v4175_v51 = vld [vmem:[%s10719_s2 + $0x100] sm:$0xff]  ;;  %v4168_v8 = vld [vmem:[%s10719_s2 + $0xc8] sm:$0xff] }
 0x22c   :  { %v2657_v15 = vsel %vm2644_vm12, %v9574_v34, %v6874_v21  ;;  %v2658_v28 = vsel %vm2644_vm12, %v6874_v21, %v6875_v22  ;;  %v4193_v21 = vld [vmem:[%s10719_s2 + $0x190] sm:$0xff]  ;;  %v10019_v5 = vpack.c.bf16 %v4168_v8, %v4167_v42  ;;  %v4200_v58 = vld [vmem:[%s10719_s2 + $0x1c8] sm:$0xff]  ;;  %v4151_v25 = vld [vmem:[%s10719_s2 + $0x40] sm:$0xff] }
 0x22d   :  { %v2767_v13 = vsel %vm2754_vm13, %v9572_v49, %v6879_v12  ;;  %v2768_v55 = vsel %vm2754_vm13, %v6879_v12, %v6880_v60  ;;  %v2203_v14 = vpop.permute.xlu0 %2202  ;;  %v9784_v49 = vpop.f32.mrb[1].mxu0  ;;  %v4161_v12 = vld [vmem:[%s10719_s2 + $0x90] sm:$0xff]  ;;  %v4187_v42 = vld [vmem:[%s10719_s2 + $0x160] sm:$0xff]  ;;  %v4188_v8 = vld [vmem:[%s10719_s2 + $0x168] sm:$0xff] }
 0x22e   :  { %v5663_v46 = vpack.c.bf16 %v2767_v13, %v2657_v15  ;;  %v2313_v7 = vpop.permute.xlu1 %2312  ;;  %v5661_v40 = vpack.c.bf16 %v2768_v55, %v2658_v28  ;;  %v2219_v56 = vsel %vm11350_vm8, %v6855_v48, %v2203_v14  ;;  %v4194_v15 = vld [vmem:[%s10719_s2 + $0x198] sm:$0xff]  ;;  %v4145_v28 = vld [vmem:[%s10719_s2 + $0x10] sm:$0xff] }
 0x22f   :  { %v2329_v32 = vsel %vm2314_vm15, %v6860_v44, %v2313_v7  ;;  %v4146_v55 = vld [vmem:[%s10719_s2 + $0x18] sm:$0xff]  ;;  %v4177_v14 = vld [vmem:[%s10719_s2 + $0x110] sm:$0xff]  ;;  %vm11381_vm15 = vcmask 220160  }
 0x230   :  { %v5696_v33 = vpack.c.bf16 %v2329_v32, %v2219_v56  ;;  %5662 = vmatprep.subr.bf16.mxu0 %v5661_v40  ;;  %v9915_v7 = vpack.c.bf16 %v4146_v55, %v4145_v28  ;;  %v4178_v40 = vld [vmem:[%s10719_s2 + $0x118] sm:$0xff]  ;;  %v4163_v56 = vld [vmem:[%s10719_s2 + $0xa0] sm:$0xff]  ;;  %v4169_v28 = vld [vmem:[%s10719_s2 + $0xd0] sm:$0xff] }
 0x231   :  { %5664 = vmatpush1.bf16.msra.mxu0 %v5663_v46  ;;  %v2423_v43 = vpop.permute.xlu0 %2422  ;;  %v9913_v46 = vpack.c.bf16 %v4194_v15, %v4193_v21  ;;  %v9924_v32 = vpack.c.bf16 %v4178_v40, %v4177_v14  ;;  %v4184_v21 = vld [vmem:[%s10719_s2 + $0x148] sm:$0xff]  ;;  %v4170_v55 = vld [vmem:[%s10719_s2 + $0xd8] sm:$0xff]  ;;  %v4201_v14 = vld [vmem:[%s10719_s2 + $0x1d0] sm:$0xff] }
 0x232   :  { %v2533_v34 = vpop.permute.xlu1 %2532  ;;  %5697 = vmatpush1.bf16.msra.mxu1 %v5696_v33  ;;  %v2439_v11 = vsel %vm2424_vm10, %v6865_v29, %v2423_v43  ;;  %v4164_v33 = vld [vmem:[%s10719_s2 + $0xa8] sm:$0xff]  ;;  %v10059_v40 = vpack.c.bf16 %v4170_v55, %v4169_v28  ;;  %v4157_v28 = vld [vmem:[%s10719_s2 + $0x70] sm:$0xff]  ;;  %v4158_v55 = vld [vmem:[%s10719_s2 + $0x78] sm:$0xff]  ;;  %vm11372_vm10 = vcmask 965632  }
 0x233   :  { %v2549_v37 = vsel %vm2534_vm11, %v6870_v4, %v2533_v34  ;;  %5698 = vmatprep.subr.bf16.mxu1 %v7172_v41  ;;  %11357 = vst [vmem:[#allocation50_spill] sm:$0xff] %v9913_v46  ;;  %11358 = vst [vmem:[#allocation53_spill] sm:$0xff] %v9924_v32  ;;  %v4195_v34 = vld [vmem:[%s10719_s2 + $0x1a0] sm:$0xff]  ;;  %v9940_v43 = vpack.c.bf16 %v4164_v33, %v4163_v56  ;;  %v4202_v56 = vld [vmem:[%s10719_s2 + $0x1d8] sm:$0xff] }
 0x234   :  { %v5699_v27 = vpack.c.bf16 %v2549_v37, %v2439_v11  ;;  %v9793_v6 = vpop.f32.mrb[0].mxu1  ;;  %v4196_v37 = vld [vmem:[%s10719_s2 + $0x1a8] sm:$0xff]  ;;  %v4147_v11 = vld [vmem:[%s10719_s2 + $0x20] sm:$0xff]  ;;  %v4153_v33 = vld [vmem:[%s10719_s2 + $0x50] sm:$0xff] }
 0x235   :  { %v2859_v62 = vpop.permute.xlu0 %2858  ;;  %v6881_v54 = vpack.i.bf16 %v9793_v6, %v9784_v49  ;;  %v9800_v57 = vpack.i.bf16 %v9778_v31, %v9793_v6  ;;  %vm11375_vm11 = vmmov %vm11372_vm10 }
 0x236   :  { %v2861_v61 = vpop.permute.xlu1 %2860  ;;  %5700 = vmatpush1.bf16.msra.mxu1 %v5699_v27  ;;  %v2877_v47 = vsel %vm2864_vm14, %v9601_v36, %v2859_v62  ;;  %v4148_v27 = vld [vmem:[%s10719_s2 + $0x28] sm:$0xff]  ;;  %vm11383_vm1 = vmmov %vm11381_vm15 }
 0x237   :  { %v2878_v48 = vsel %vm2864_vm14, %v2859_v62, %v2861_v61  ;;  %5701 = vmatprep.subr.bf16.mxu1 %v7172_v41  ;;  %v9804_v41 = vpop.f32.mrb[1].mxu1  ;;  %6882 = vrot.lane.b32.xlu1 %v6881_v54, %s7146_s9  ;;  %v9954_v62 = vpack.c.bf16 %v4148_v27, %v4147_v11  ;;  %v4185_v11 = vld [vmem:[%s10719_s2 + $0x150] sm:$0xff]  ;;  %v4186_v27 = vld [vmem:[%s10719_s2 + $0x158] sm:$0xff]  ;;  %vm11388_vm2 = vmmov %vm11372_vm10 }
 0x238   :  { %3799 = vmatprep.subr.mxu0 %v2878_v48  ;;  %v6886_v59 = vpack.i.bf16 %v9804_v41, %v9778_v31  ;;  %v4180_v48 = vld [vmem:[%s10719_s2 + $0x128] sm:$0xff]  ;;  %vm11390_vm5 = vmmov %vm11388_vm2 }
 0x239   :  { %3800 = vmatpush1.msra.mxu0 %v2877_v47  ;;  %v2643_v45 = vpop.permute.xlu0 %2642  ;;  %v4179_v47 = vld [vmem:[%s10719_s2 + $0x120] sm:$0xff]  ;;  %vm11391_vm8 = vmmov %vm11388_vm2 }
 0x23a   :  { %v2753_v19 = vpop.permute.xlu1 %2752  ;;  %3812 = vmatmul.mubr.f32.vlgmr.msra.gmra.mrb[6].mxu0 %v9579_v2  ;;  %v2659_v39 = vsel %vm2644_vm12, %v6875_v22, %v2643_v45  ;;  %6887 = vrot.lane.b32.xlu0 %v6886_v59, %s7146_s9  ;;  %v4162_v22 = vld [vmem:[%s10719_s2 + $0x98] sm:$0xff]  ;;  %v4165_v45 = vld [vmem:[%s10719_s2 + $0xb0] sm:$0xff]  ;;  %vm11376_vm12 = vmmov %vm11372_vm10 }
 0x23b   :  { %v2769_v36 = vsel %vm2754_vm13, %v6880_v60, %v2753_v19  ;;  %6897 = vrot.lane.b32.xlu1 %v6886_v59, %s11351_s0  ;;  %5705 = vmatprep.subr.bf16.mxu0 %v9864_v23  ;;  %v9886_v60 = vpack.c.bf16 %v4176_v63, %v4175_v51  ;;  %v9901_v13 = vpack.c.bf16 %v4162_v22, %v4161_v12  ;;  %v4152_v51 = vld [vmem:[%s10719_s2 + $0x48] sm:$0xff]  ;;  %v4183_v22 = vld [vmem:[%s10719_s2 + $0x140] sm:$0xff]  ;;  %vm11378_vm13 = vcmask 228352  }
 0x23c   :  { %v5702_v44 = vpack.c.bf16 %v2769_v36, %v2659_v39  ;;  %5707 = vmatpush3.bf16.msra.mxu0 %v9877_v1  ;;  %v9963_v19 = vpack.c.bf16 %v4180_v48, %v4179_v47  ;;  %v4197_v36 = vld [vmem:[%s10719_s2 + $0x1b0] sm:$0xff]  ;;  %v10031_v63 = vpack.c.bf16 %v4200_v58, %v4199_v53  ;;  %v10033_v12 = vpack.c.bf16 %v4152_v51, %v4151_v25  ;;  %v4171_v48 = vld [vmem:[%s10719_s2 + $0xe0] sm:$0xff]  ;;  %v4174_v25 = vld [vmem:[%s10719_s2 + $0xf8] sm:$0xff] }
 0x23d   :  { %v2863_v17 = vpop.permute.xlu0 %2862  ;;  %11356 = vst [vmem:[#allocation51_spill] sm:$0xff] %v9886_v60  ;;  %5709 = vmatprep.subr.bf16.mxu0 %v9901_v13  ;;  %v10042_v15 = vpack.c.bf16 %v4184_v21, %v4183_v22  ;;  %v10082_v47 = vpack.c.bf16 %v4186_v27, %v4185_v11  ;;  %v10122_v53 = vpack.c.bf16 %v4188_v8, %v4187_v42  ;;  %v4173_v58 = vld [vmem:[%s10719_s2 + $0xf0] sm:$0xff]  ;;  %v4206_v21 = vld [vmem:[%s10719_s2 + $0x1f8] sm:$0xff]  ;;  %v4223_v27 = vld [vmem:[%s10719_s2 + $0x280] sm:$0xff] }
 0x23e   :  { %5703 = vmatpush1.bf16.msra.mxu1 %v5702_v44  ;;  %v2879_v16 = vsel %vm2864_vm14, %v2861_v61, %v2863_v17  ;;  %6892 = vrot.lane.b32.xlu0 %v6881_v54, %s11351_s0  ;;  %v9952_v61 = vpack.c.bf16 %v4196_v37, %v4195_v34  ;;  %11360 = vst [vmem:[#allocation56_spill] sm:$0xff] %v9963_v19  ;;  %v4198_v44 = vld [vmem:[%s10719_s2 + $0x1b8] sm:$0xff]  ;;  %11363 = vst [vmem:[#allocation57_spill] sm:$0xff] %v10031_v63  ;;  %v4205_v51 = vld [vmem:[%s10719_s2 + $0x1f0] sm:$0xff] }
 0x23f   :  { %3870 = vmatprep.subr.mxu1 %v7173_v35  ;;  %6902 = vrot.lane.b32.xlu1 %v6881_v54, %s11352_s30  ;;  %v4166_v54 = vld [vmem:[%s10719_s2 + $0xb8] sm:$0xff]  ;;  %v9991_v35 = vpack.c.bf16 %v4198_v44, %v4197_v36  ;;  %11364 = vst [vmem:[#allocation59_spill] sm:$0xff] %v10042_v15  ;;  %v10071_v37 = vpack.c.bf16 %v4202_v56, %v4201_v14  ;;  %11366 = vst [vmem:[#allocation12_spill] sm:$0xff] %v10082_v47  ;;  %v4204_v44 = vld [vmem:[%s10719_s2 + $0x1e8] sm:$0xff] }
 0x240   :  { %5711 = vmatpush3.bf16.msra.mxu0 %v9915_v7  ;;  %11359 = vst [vmem:[#allocation52_spill] sm:$0xff] %v9952_v61  ;;  %v9979_v39 = vpack.c.bf16 %v4166_v54, %v4165_v45  ;;  %v4150_v17 = vld [vmem:[%s10719_s2 + $0x38] sm:$0xff]  ;;  %v4172_v45 = vld [vmem:[%s10719_s2 + $0xe8] sm:$0xff]  ;;  %v4203_v54 = vld [vmem:[%s10719_s2 + $0x1e0] sm:$0xff]  ;;  %v10139_v22 = vpack.c.bf16 %v4174_v25, %v4173_v58  ;;  %v10151_v14 = vpack.c.bf16 %v4206_v21, %v4205_v51 }
 0x241   :  { %5713 = vmatprep.subr.bf16.mxu0 %v9940_v43  ;;  %11361 = vst [vmem:[#allocation55_spill] sm:$0xff] %v9991_v35  ;;  %v4154_v34 = vld [vmem:[%s10719_s2 + $0x58] sm:$0xff]  ;;  %11365 = vst [vmem:[#allocation4_spill] sm:$0xff] %v10071_v37  ;;  %v10099_v36 = vpack.c.bf16 %v4172_v45, %v4171_v48  ;;  %v4189_v56 = vld [vmem:[%s10719_s2 + $0x170] sm:$0xff] }
 0x242   :  { %3871 = vmatpush1.msra.mxu1 %v2879_v16  ;;  %11368 = vst [vmem:[#allocation20_spill] sm:$0xff] %v10122_v53  ;;  %11369 = vst [vmem:[#allocation17_spill] sm:$0xff] %v10151_v14  ;;  %v4224_v48 = vld [vmem:[%s10719_s2 + $0x288] sm:$0xff] }
 0x243   :  { %3883 = vmatmul.mubr.f32.vlgmr.msra.gmra.mrb[6].mxu1 %v9579_v2  ;;  %6907 = vrot.lane.b32.xlu1 %v6886_v59, %s11352_s30  ;;  %v4149_v59 = vld [vmem:[%s10719_s2 + $0x30] sm:$0xff]  ;;  %vm11380_vm14 = vmmov %vm11378_vm13 }
 0x244   :  { %5737 = vmatprep.subr.bf16.mxu1 %v9875_v9  ;;  %5715 = vmatpush3.bf16.msra.mxu0 %v9954_v62  ;;  %v9993_v16 = vpack.c.bf16 %v4150_v17, %v4149_v59  ;;  %v4155_v59 = vld [vmem:[%s10719_s2 + $0x60] sm:$0xff]  ;;  %v4156_v17 = vld [vmem:[%s10719_s2 + $0x68] sm:$0xff] }
 0x245   :  { %5739 = vmatpush3.bf16.msra.mxu1 %v9886_v60  ;;  %5717 = vmatprep.subr.bf16.mxu0 %v9979_v39 }
 0x246   :  { %5741 = vmatprep.subr.bf16.mxu1 %v9913_v46 }
 0x248   :  { %5719 = vmatpush3.bf16.msra.mxu0 %v9993_v16 }
 0x249   :  { %5743 = vmatpush3.bf16.msra.mxu1 %v9924_v32  ;;  %5721 = vmatprep.subr.bf16.mxu0 %v10019_v5 }
 0x24a   :  { %5745 = vmatprep.subr.bf16.mxu1 %v9952_v61 }
 0x24c   :  { %5723 = vmatpush3.bf16.msra.mxu0 %v10033_v12 }
 0x24d   :  { %5747 = vmatpush3.bf16.msra.mxu1 %v9963_v19  ;;  %5725 = vmatprep.subr.bf16.mxu0 %v10059_v40 }
 0x24e   :  { %5749 = vmatprep.subr.bf16.mxu1 %v9991_v35 }
 0x279   :  { %v9816_v30 = vpop.f32.mrb[2].mxu0 }
 0x27a   :  { %11353 = vst [vmem:[#allocation46_spill] sm:$0xff] %v9816_v30  ;;  %v9818_v10 = vpop.f32.mrb[3].mxu0  ;;  %v9822_v38 = vpack.i.bf16 %v9816_v30, %v9804_v41 }
 0x27b   :  { %11354 = vst [vmem:[#allocation49_spill] sm:$0xff] %v9818_v10 }
 0x286   :  { %v3600_v50 = vpop.f32.mrb[2].mxu1 }
 0x287   :  { %v9824_v20 = vpop.f32.mrb[3].mxu1  ;;  %v9827_v0 = vpack.i.bf16 %v3600_v50, %v9818_v10  ;;  %v4181_v50 = vld [vmem:[%s10719_s2 + $0x130] sm:$0xff] }
 0x2ac   :  { %v10229_v25 = vpop.permute.xlu0 %6887 }
 0x2cd   :  { %v9829_v52 = vpop.f32.mrb[4].mxu0 }
 0x2ce   :  { %v9831_v2 = vpop.f32.mrb[5].mxu0 }
 0x2cf   :  { %v6946_v4 = vpack.i.bf16 %v9831_v2, %v9829_v52 }
 0x2d1   :  { %6947 = vrot.lane.b32.xlu1 %v6946_v4, %s7146_s9 }
 0x2d5   :  { %6952 = vrot.lane.b32.xlu1 %v6946_v4, %s11351_s0 }
 0x2d7   :  { %v9837_v3 = vpop.f32.mrb[4].mxu1 }
 0x2d8   :  { %v9839_v29 = vpop.f32.mrb[5].mxu1  ;;  %v6911_v24 = vpack.i.bf16 %v9824_v20, %v9837_v3  ;;  %v9845_v26 = vpack.i.bf16 %v9784_v49, %v9837_v3 }
 0x2d9   :  { %6957 = vrot.lane.b32.xlu1 %v6946_v4, %s11352_s30  ;;  %v9850_v18 = vpack.i.bf16 %v9839_v29, %v9816_v30 }
 0x2da   :  { %6912 = vrot.lane.b32.xlu0 %v6911_v24, %s7146_s9 }
 0x2dd   :  { %6962 = vrot.lane.b32.xlu1 %v6946_v4, %s7154_s8 }
 0x2de   :  { %6917 = vrot.lane.b32.xlu0 %v6911_v24, %s11351_s0 }
 0x2e1   :  { %6967 = vrot.lane.b32.xlu1 %v6946_v4, %s7155_s10 }
 0x2e2   :  { %6922 = vrot.lane.b32.xlu0 %v6911_v24, %s11352_s30 }
 0x2e5   :  { %6972 = vrot.lane.b32.xlu1 %v6946_v4, %s7157_s12 }
 0x2e6   :  { %6927 = vrot.lane.b32.xlu0 %v9845_v26, %s7154_s8 }
 0x2e9   :  { %6977 = vrot.lane.b32.xlu1 %v6946_v4, %s7158_s13  ;;  %v4182_v4 = vld [vmem:[%s10719_s2 + $0x138] sm:$0xff] }
 0x2ea   :  { %6932 = vrot.lane.b32.xlu0 %v9845_v26, %s7155_s10  ;;  %v10002_v24 = vpack.c.bf16 %v4182_v4, %v4181_v50  ;;  %v10111_v50 = vpack.c.bf16 %v4204_v44, %v4203_v54  ;;  %v10113_v4 = vpack.c.bf16 %v4156_v17, %v4155_v59  ;;  %v10192_v54 = vpack.c.bf16 %v4224_v48, %v4223_v27  ;;  %v10215_v17 = vpop.permute.xlu1 %6882 }
 0x2ec   :  { %11362 = vst [vmem:[#allocation58_spill] sm:$0xff] %v10002_v24  ;;  %5751 = vmatpush3.bf16.msra.mxu1 %v10002_v24  ;;  %11367 = vst [vmem:[#allocation7_spill] sm:$0xff] %v10111_v50 }
 0x2ed   :  { %6982 = vrot.lane.b32.xlu1 %v9850_v18, %s7146_s9  ;;  %5753 = vmatprep.subr.bf16.mxu1 %v10031_v63  ;;  %11371 = vst [vmem:[#allocation32_spill] sm:$0xff] %v10192_v54  ;;  %v6884_v63 = vunpack.i.l.bf16 %v10215_v17 }
 0x2ee   :  { %6937 = vrot.lane.b32.xlu0 %v9845_v26, %s7157_s12  ;;  %v10221_v42 = vpop.permute.xlu1 %6897 }
 0x2f0   :  { %5755 = vmatpush3.bf16.msra.mxu1 %v10042_v15 }
 0x2f1   :  { %6987 = vrot.lane.b32.xlu1 %v9800_v57, %s7154_s8  ;;  %5757 = vmatprep.subr.bf16.mxu1 %v10071_v37 }
 0x2f2   :  { %6942 = vrot.lane.b32.xlu0 %v9845_v26, %s7158_s13  ;;  %v10073_v26 = vpack.c.bf16 %v4154_v34, %v4153_v33  ;;  %v4190_v33 = vld [vmem:[%s10719_s2 + $0x178] sm:$0xff]  ;;  %v10225_v8 = vpop.permute.xlu1 %6902 }
 0x2f3   :  { %v10162_v34 = vpack.c.bf16 %v4190_v33, %v4189_v56 }
 0x2f4   :  { %5727 = vmatpush3.bf16.msra.mxu0 %v10073_v26  ;;  %5759 = vmatpush3.bf16.msra.mxu1 %v10082_v47 }
 0x2f5   :  { %6992 = vrot.lane.b32.xlu1 %v9822_v38, %s7154_s8  ;;  %5729 = vmatprep.subr.bf16.mxu0 %v10099_v36  ;;  %11370 = vst [vmem:[#allocation6_spill] sm:$0xff] %v10162_v34 }
 0x2f6   :  { %6997 = vrot.lane.b32.xlu0 %v9850_v18, %s11351_s0  ;;  %5761 = vmatprep.subr.bf16.mxu1 %v10111_v50  ;;  %v10227_v58 = vpop.permute.xlu1 %6907 }
 0x2f8   :  { %5731 = vmatpush3.bf16.msra.mxu0 %v10113_v4  ;;  %5763 = vmatpush3.bf16.msra.mxu1 %v10122_v53 }
 0x2f9   :  { %7017 = vrot.lane.b32.xlu1 %v9800_v57, %s7157_s12  ;;  %5733 = vmatprep.subr.bf16.mxu0 %v10139_v22 }
 0x2fa   :  { %7002 = vrot.lane.b32.xlu0 %v9850_v18, %s11352_s30  ;;  %v10153_v18 = vpack.c.bf16 %v4158_v55, %v4157_v28  ;;  %5765 = vmatprep.subr.bf16.mxu1 %v10151_v14  ;;  %v10231_v28 = vpop.permute.xlu0 %6892 }
 0x2fc   :  { %5735 = vmatpush3.bf16.msra.mxu0 %v10153_v18  ;;  %5767 = vmatpush3.bf16.msra.mxu1 %v10162_v34 }
 0x2fd   :  { %7022 = vrot.lane.b32.xlu1 %v9822_v38, %s7157_s12  ;;  %5801 = vmatprep.subr.bf16.mxu1 %v9864_v23 }
 0x2fe   :  { %7007 = vrot.lane.b32.xlu0 %v9800_v57, %s7155_s10  ;;  %5769 = vmatprep.subr.bf16.mxu0 %v10192_v54 }
 0x301   :  { %7032 = vrot.lane.b32.xlu1 %v9822_v38, %s7158_s13 }
 0x302   :  { %7012 = vrot.lane.b32.xlu0 %v9822_v38, %s7155_s10 }
 0x306   :  { %7027 = vrot.lane.b32.xlu0 %v9800_v57, %s7158_s13 }
 0x30d   :  { %v10178_v11 = vpop.f32.mrb[6].mxu0 }
 0x30e   :  { %v10186_v23 = vpop.f32.mrb[7].mxu0  ;;  %v7046_v45 = vpack.i.bf16 %v10178_v11, %v9839_v29 }
 0x30f   :  { %v7061_v38 = vpack.i.bf16 %v10186_v23, %v10178_v11 }
 0x310   :  { %7047 = vrot.lane.b32.xlu1 %v7046_v45, %s7157_s12  ;;  %7037 = vrot.lane.b32.xlu0 %v7046_v45, %s7154_s8 }
 0x314   :  { %7042 = vrot.lane.b32.xlu0 %v7046_v45, %s7155_s10  ;;  %7062 = vrot.lane.b32.xlu1 %v7061_v38, %s11352_s30 }
 0x316   :  { %v3884_v57 = vpop.f32.mrb[6].mxu1 }
 0x317   :  { %v7086_v44 = vpack.i.bf16 %v3884_v57, %v10186_v23  ;;  %v3886_v59 = vpop.f32.mrb[7].mxu1 }
 0x318   :  { %7052 = vrot.lane.b32.xlu0 %v7061_v38, %s7146_s9 }
 0x319   :  { %7067 = vrot.lane.b32.xlu1 %v7086_v44, %s7154_s8 }
 0x31c   :  { %7057 = vrot.lane.b32.xlu0 %v7061_v38, %s11351_s0 }
 0x31d   :  { %7072 = vrot.lane.b32.xlu1 %v7046_v45, %s7158_s13 }
 0x320   :  { %7077 = vrot.lane.b32.xlu0 %v7086_v44, %s7155_s10 }
 0x321   :  { %7092 = vrot.lane.b32.xlu1 %v9827_v0, %s7146_s9  ;;  %s7174_s9 = smov 24  }
 0x324   :  { %7082 = vrot.lane.b32.xlu0 %v7086_v44, %s7157_s12 }
 0x325   :  { %7102 = vrot.lane.b32.xlu1 %v9827_v0, %s11352_s30 }
 0x328   :  { %7087 = vrot.lane.b32.xlu0 %v7086_v44, %s7158_s13 }
 0x329   :  { %7112 = vrot.lane.b32.xlu1 %v9827_v0, %s7155_s10 }
 0x32c   :  { %7097 = vrot.lane.b32.xlu0 %v9827_v0, %s11351_s0 }
 0x32d   :  { %7122 = vrot.lane.b32.xlu1 %v9827_v0, %s7158_s13 }
 0x330   :  { %7107 = vrot.lane.b32.xlu0 %v9827_v0, %s7154_s8 }
 0x334   :  { %7117 = vrot.lane.b32.xlu0 %v9827_v0, %s7157_s12 }
 0x343   :  { %v6948_v51 = vpop.permute.xlu1 %6947 }
 0x344   :  { %v6949_v27 = vunpack.i.l.bf16 %v6948_v51  ;;  %v6950_v53 = vunpack.i.h.bf16 %v6948_v51 }
 0x346   :  { %v4494_v51 = vsel %vm114_vm0, %v6949_v27, %v6950_v53 }
 0x347   :  { %v6953_v21 = vpop.permute.xlu1 %6952 }
 0x348   :  { %v6954_v0 = vunpack.i.l.bf16 %v6953_v21  ;;  %v6955_v24 = vunpack.i.h.bf16 %v6953_v21 }
 0x34b   :  { %v6958_v55 = vpop.permute.xlu1 %6957 }
 0x34c   :  { %v10233_v56 = vpop.permute.xlu0 %6912  ;;  %v6959_v50 = vunpack.i.l.bf16 %v6958_v55  ;;  %v6960_v47 = vunpack.i.h.bf16 %v6958_v55 }
 0x34d   :  { %v6915_v33 = vunpack.i.h.bf16 %v10233_v56  ;;  %v11373_v32 = vunpack.i.l.bf16 %v10233_v56 }
 0x34f   :  { %v6963_v48 = vpop.permute.xlu1 %6962  ;;  %v4493_v38 = vsel %vm114_vm0, %v6915_v33, %v6949_v27  ;;  %v4495_v15 = vsel %vm114_vm0, %v6950_v53, %v11373_v32  ;;  %v4507_v32 = vmax.f32 %v9829_v52, %v4494_v51  ;;  %v6890_v52 = vunpack.i.h.bf16 %v10229_v25 }
 0x350   :  { %v10236_v45 = vpop.permute.xlu0 %6917  ;;  %v4506_v34 = vmax.f32 %v9824_v20, %v4493_v38  ;;  %v6964_v20 = vunpack.i.l.bf16 %v6963_v48  ;;  %v4508_v53 = vmax.f32 %v9831_v2, %v4495_v15 }
 0x351   :  { %v6920_v57 = vunpack.i.h.bf16 %v10236_v45  ;;  %v10913_v35 = vunpack.i.l.bf16 %v10236_v45 }
 0x353   :  { %v4527_v44 = vsel %vm11372_vm10, %v6920_v57, %v6954_v0  ;;  %v6968_v59 = vpop.permute.xlu1 %6967  ;;  %v4529_v55 = vsel %vm11376_vm12, %v6955_v24, %v10913_v35  ;;  %vm11392_vm10 = vmmov %vm11388_vm2 }
 0x354   :  { %v10242_v14 = vpop.permute.xlu0 %6922  ;;  %v4540_v33 = vmax.f32 %v4506_v34, %v4527_v44  ;;  %v11374_v34 = vunpack.i.h.bf16 %v10215_v17  ;;  %v6970_v30 = vunpack.i.h.bf16 %v6968_v59  ;;  %v4542_v27 = vmax.f32 %v4508_v53, %v4529_v55 }
 0x355   :  { %v6925_v37 = vunpack.i.h.bf16 %v10242_v14  ;;  %v6894_v53 = vunpack.i.l.bf16 %v10231_v28 }
 0x356   :  { %v10260_v21 = vsel %vm114_vm0, %v6884_v63, %v11374_v34 }
 0x357   :  { %v4561_v57 = vsel %vm444_vm3, %v6925_v37, %v6959_v50  ;;  %v6973_v19 = vpop.permute.xlu1 %6972  ;;  %v6969_v37 = vunpack.i.l.bf16 %v6968_v59 }
 0x358   :  { %v4574_v38 = vmax.f32 %v4540_v33, %v4561_v57  ;;  %v10250_v61 = vpop.permute.xlu0 %6927  ;;  %v4528_v33 = vsel %vm11375_vm11, %v6954_v0, %v6955_v24  ;;  %v6965_v57 = vunpack.i.h.bf16 %v6963_v48  ;;  %v6974_v46 = vunpack.i.l.bf16 %v6973_v19  ;;  %vm11393_vm11 = vmmov %vm11378_vm13 }
 0x359   :  { %v11377_v48 = vunpack.i.l.bf16 %v10242_v14  ;;  %v4541_v35 = vmax.f32 %v4507_v32, %v4528_v33  ;;  %v6975_v15 = vunpack.i.h.bf16 %v6973_v19  ;;  %v11379_v51 = vunpack.i.l.bf16 %v10250_v61  ;;  %vm11394_vm12 = vmmov %vm11393_vm11 }
 0x35a   :  { %v4622_v44 = vmax.f32 %v4574_v38, %v6964_v20  ;;  %v4562_v38 = vsel %vm444_vm3, %v6959_v50, %v6960_v47  ;;  %v4609_v2 = vsel %vm11378_vm13, %v6964_v20, %v6965_v57  ;;  %vm11395_vm13 = vmmov %vm11393_vm11 }
 0x35b   :  { %v6978_v60 = vpop.permute.xlu1 %6977  ;;  %v4563_v0 = vsel %vm444_vm3, %v6960_v47, %v11377_v48  ;;  %v4610_v50 = vsel %vm11380_vm14, %v6965_v57, %v11379_v51  ;;  %v4575_v47 = vmax.f32 %v4541_v35, %v4562_v38  ;;  %v6895_v57 = vunpack.i.h.bf16 %v10231_v28  ;;  %vm11396_vm14 = vmmov %vm11383_vm1 }
 0x35c   :  { %v4656_v10 = vmax.f32 %v4622_v44, %v6969_v37  ;;  %v10269_v34 = vpop.permute.xlu0 %6932  ;;  %v6979_v9 = vunpack.i.l.bf16 %v6978_v60  ;;  %v6889_v44 = vunpack.i.l.bf16 %v10229_v25  ;;  %v4576_v48 = vmax.f32 %v4542_v27, %v4563_v0 }
 0x35d   :  { %v6980_v55 = vunpack.i.h.bf16 %v6978_v60  ;;  %v11382_v32 = vunpack.i.l.bf16 %v10269_v34  ;;  %v4623_v51 = vmax.f32 %v4575_v47, %v4609_v2  ;;  %v4677_v35 = vsel %vm11384_vm6, %v6974_v46, %v6975_v15  ;;  %vm11399_vm6 = vmmov %vm11396_vm14 }
 0x35e   :  { %v4690_v54 = vmax.f32 %v4656_v10, %v6974_v46  ;;  %v4643_v10 = vsel %vm11381_vm15, %v6969_v37, %v6970_v30  ;;  %v4624_v25 = vmax.f32 %v4576_v48, %v4610_v50  ;;  %v3933_v37 = vsel %vm114_vm0, %v6889_v44, %v6884_v63  ;;  %vm11397_vm15 = vmmov %vm11383_vm1 }
 0x35f   :  { %v10281_v59 = vpop.permute.xlu1 %6982  ;;  %v4644_v19 = vsel %vm11383_vm1, %v6970_v30, %v11382_v32  ;;  %v3946_v30 = vmax.f32 %v9784_v49, %v10260_v21  ;;  %v4657_v27 = vmax.f32 %v4623_v51, %v4643_v10  ;;  %v11386_v0 = vunpack.i.h.bf16 %v10215_v17  ;;  %vm11398_vm1 = vmmov %vm11393_vm11 }
 0x360   :  { %v4724_v24 = vmax.f32 %v4690_v54, %v6979_v9  ;;  %v10284_v33 = vpop.permute.xlu0 %6937  ;;  %v4658_v28 = vmax.f32 %v4624_v25, %v4644_v19  ;;  %v6899_v46 = vunpack.i.l.bf16 %v10221_v42  ;;  %v4711_v2 = vsel %vm11387_vm9, %v6979_v9, %v6980_v55 }
 0x361   :  { %v10924_v20 = vunpack.i.l.bf16 %v10284_v33  ;;  %v6900_v50 = vunpack.i.h.bf16 %v10221_v42  ;;  %v3966_v49 = vsel %vm11388_vm2, %v6894_v53, %v6895_v57  ;;  %v4691_v21 = vmax.f32 %v4657_v27, %v4677_v35 }
 0x362   :  { %4834 = vrot.lane.b32.xlu1 %v4724_v24, %s7174_s9  ;;  %v3935_v24 = vsel %vm114_vm0, %v11386_v0, %v6890_v52  ;;  %v6905_v44 = vunpack.i.h.bf16 %v10225_v8  ;;  %v6904_v47 = vunpack.i.l.bf16 %v10225_v8  ;;  %v10919_v17 = vunpack.i.l.bf16 %v10281_v59 }
 0x363   :  { %v4678_v60 = vsel %vm11385_vm4, %v6975_v15, %v10924_v20  ;;  %v10298_v54 = vpop.permute.xlu1 %6987  ;;  %v6910_v9 = vunpack.i.h.bf16 %v10227_v58  ;;  %v6909_v42 = vunpack.i.l.bf16 %v10227_v58  ;;  %v4725_v32 = vmax.f32 %v4691_v21, %v4711_v2  ;;  %vm11400_vm4 = vmmov %vm11399_vm6 }
 0x364   :  { %v10303_v38 = vpop.permute.xlu0 %6942  ;;  %v4692_v63 = vmax.f32 %v4658_v28, %v4678_v60  ;;  %v3965_v25 = vsel %vm11390_vm5, %v6899_v46, %v6894_v53  ;;  %v3945_v35 = vmax.f32 %v9778_v31, %v3933_v37  ;;  %v3967_v60 = vsel %vm11391_vm8, %v6895_v57, %v6900_v50 }
 0x365   :  { %v10920_v15 = vunpack.i.l.bf16 %v10303_v38  ;;  %v3978_v27 = vmax.f32 %v3946_v30, %v3966_v49  ;;  %v3947_v28 = vmax.f32 %v9793_v6, %v3935_v24  ;;  %v3998_v0 = vsel %vm444_vm3, %v6904_v47, %v6905_v44 }
 0x366   :  { %v3936_v58 = vsel %vm114_vm0, %v6890_v52, %v10919_v17  ;;  %v3977_v21 = vmax.f32 %v3945_v35, %v3965_v25  ;;  %v3997_v53 = vsel %vm444_vm3, %v6909_v42, %v6904_v47  ;;  %v3999_v46 = vsel %vm444_vm3, %v6905_v44, %v6910_v9 }
 0x367   :  { %v4712_v48 = vsel %vm11389_vm7, %v6980_v55, %v10920_v15  ;;  %v10319_v10 = vpop.permute.xlu1 %6992  ;;  %v6990_v31 = vunpack.i.h.bf16 %v10298_v54  ;;  %v3979_v6 = vmax.f32 %v3947_v28, %v3967_v60  ;;  %v6989_v30 = vunpack.i.l.bf16 %v10298_v54 }
 0x368   :  { %v4726_v19 = vmax.f32 %v4692_v63, %v4712_v48  ;;  %v10323_v51 = vpop.permute.xlu0 %6997  ;;  %v4010_v24 = vmax.f32 %v3978_v27, %v3998_v0  ;;  %v6930_v49 = vunpack.i.h.bf16 %v10250_v61  ;;  %v3948_v63 = vmax.f32 %v9804_v41, %v3936_v58 }
 0x369   :  { %v10918_v8 = vunpack.i.l.bf16 %v10323_v51  ;;  %v4009_v44 = vmax.f32 %v3977_v21, %v3997_v53  ;;  %v4011_v47 = vmax.f32 %v3979_v6, %v3999_v46  ;;  %v6994_v48 = vunpack.i.l.bf16 %v10319_v10 }
 0x36a   :  { %v7126_v55 = vpack.i.bf16 %v4726_v19, %v4725_v32  ;;  %v4208_v32 = vld [vmem:[%s10719_s2 + $0x208] sm:$0xff]  ;;  %v6935_v41 = vunpack.i.h.bf16 %v10269_v34  ;;  %v4029_v19 = vsel %vm11393_vm11, %v6990_v31, %v6930_v49  ;;  %v10916_v25 = vunpack.i.h.bf16 %v10319_v10 }
 0x36b   :  { %v10334_v2 = vpop.permute.xlu1 %7017  ;;  %v3968_v52 = vsel %vm11392_vm10, %v6900_v50, %v10918_v8  ;;  %v4207_v50 = vld [vmem:[%s10719_s2 + $0x200] sm:$0xff]  ;;  %v6940_v28 = vunpack.i.h.bf16 %v10284_v33  ;;  %v6945_v0 = vunpack.i.h.bf16 %v10303_v38  ;;  %v7175_v53 = vmov 0  }
 0x36c   :  { %v10339_v57 = vpop.permute.xlu0 %7002  ;;  %7127 = vrot.lane.b32.xlu0 %v7126_v55, %s7174_s9  ;;  %v3980_v35 = vmax.f32 %v3948_v63, %v3968_v52  ;;  %v10367_v21 = vpack.c.bf16 %v4208_v32, %v4207_v50  ;;  %7142 = vset.pattern.permute.xlu1 %v7175_v53  ;;  %v4041_v46 = vmax.f32 %v4009_v44, %v4029_v19  ;;  %vm11401_vm9 = vcmask 146432  }
 0x36d   :  { %v10917_v37 = vunpack.i.l.bf16 %v10339_v57  ;;  %7141 = vset.pattern.permute.xlu0 %v7175_v53  ;;  %v4031_v31 = vsel %vm11395_vm13, %v6989_v30, %v6994_v48  ;;  %v4032_v63 = vsel %vm11398_vm1, %v6994_v48, %v10916_v25  ;;  %vm11402_vm2 = vmmov %vm11401_vm9  ;;  %vm11405_vm8 = vcmask 138240  }
 0x36e   :  { %vm11403_vm7 = vmmov %vm11402_vm2  ;;  %vm11411_vm13 = vcmask 965632  }
 0x36f   :  { %v4000_v42 = vsel %vm444_vm3, %v6910_v9, %v10917_v37  ;;  %v10353_v54 = vpop.permute.xlu1 %7022  ;;  %v4030_v9 = vsel %vm11394_vm12, %v6930_v49, %v6989_v30  ;;  %vm11404_vm5 = vmmov %vm11402_vm2 }
 0x370   :  { %v7008_v60 = vpop.permute.xlu0 %7007  ;;  %v4012_v58 = vmax.f32 %v3980_v35, %v4000_v42  ;;  %v4042_v49 = vmax.f32 %v4010_v24, %v4030_v9  ;;  %v7019_v42 = vunpack.i.l.bf16 %v10334_v2  ;;  %v10922_v44 = vunpack.i.h.bf16 %v10353_v54  ;;  %vm11406_vm10 = vmmov %vm11405_vm8 }
 0x371   :  { %v7010_v27 = vunpack.i.h.bf16 %v7008_v60  ;;  %v7009_v55 = vunpack.i.l.bf16 %v7008_v60  ;;  %v7020_v60 = vunpack.i.h.bf16 %v10334_v2  ;;  %v7024_v30 = vunpack.i.l.bf16 %v10353_v54  ;;  %vm11407_vm11 = vmmov %vm11405_vm8 }
 0x372   :  { %v4044_v48 = vmax.f32 %v4012_v58, %v4032_v63  ;;  %v4094_v8 = vsel %vm11402_vm2, %v6940_v28, %v7019_v42  ;;  %vm11408_vm12 = vmmov %vm11405_vm8 }
 0x373   :  { %v4061_v6 = vsel %vm11396_vm14, %v7010_v27, %v6935_v41  ;;  %v4062_v52 = vsel %vm11397_vm15, %v6935_v41, %v7009_v55  ;;  %v10377_v50 = vpop.permute.xlu1 %7032  ;;  %v4043_v41 = vmax.f32 %v4011_v47, %v4031_v31  ;;  %v4093_v37 = vsel %vm11401_vm9, %v7020_v60, %v6940_v28  ;;  %v4225_v60 = vld [vmem:[%s10719_s2 + $0x290] sm:$0xff]  ;;  %vm11414_vm14 = vmmov %vm11398_vm1 }
 0x374   :  { %v10379_v32 = vpop.permute.xlu0 %7012  ;;  %v4073_v35 = vmax.f32 %v4041_v46, %v4061_v6  ;;  %v4074_v9 = vmax.f32 %v4042_v49, %v4062_v52  ;;  %v10921_v27 = vunpack.i.h.bf16 %v10377_v50  ;;  %v7034_v2 = vunpack.i.l.bf16 %v10377_v50  ;;  %vm11416_vm15 = vmmov %vm11400_vm4 }
 0x375   :  { %v10923_v19 = vunpack.i.h.bf16 %v10379_v32  ;;  %v7014_v24 = vunpack.i.l.bf16 %v10379_v32  ;;  %v4095_v46 = vsel %vm11403_vm7, %v7019_v42, %v7024_v30  ;;  %v4096_v58 = vsel %vm11404_vm5, %v7024_v30, %v10922_v44  ;;  %vm11417_vm1 = vmmov %vm11411_vm13 }
 0x376   :  { %v4106_v49 = vmax.f32 %v4074_v9, %v4094_v8  ;;  %v4210_v9 = vld [vmem:[%s10719_s2 + $0x218] sm:$0xff]  ;;  %vm11424_vm7 = vmmov %vm11404_vm5 }
 0x377   :  { %v4063_v53 = vsel %vm11399_vm6, %v7009_v55, %v7014_v24  ;;  %v4064_v25 = vsel %vm11400_vm4, %v7014_v24, %v10923_v19  ;;  %v4105_v55 = vmax.f32 %v4073_v35, %v4093_v37  ;;  %v4209_v35 = vld [vmem:[%s10719_s2 + $0x210] sm:$0xff]  ;;  %vm11418_vm6 = vmmov %vm11417_vm1 }
 0x378   :  { %v4075_v17 = vmax.f32 %v4043_v41, %v4063_v53  ;;  %v4076_v15 = vmax.f32 %v4044_v48, %v4064_v25  ;;  %v7028_v47 = vpop.permute.xlu0 %7027  ;;  %v4226_v25 = vld [vmem:[%s10719_s2 + $0x298] sm:$0xff]  ;;  %v4228_v48 = vld [vmem:[%s10719_s2 + $0x2a8] sm:$0xff]  ;;  %v6985_v53 = vunpack.i.h.bf16 %v10281_v59  ;;  %vm11420_vm4 = vmmov %vm11414_vm14 }
 0x379   :  { %v7030_v31 = vunpack.i.h.bf16 %v7028_v47  ;;  %v7029_v6 = vunpack.i.l.bf16 %v7028_v47  ;;  %v10409_v41 = vpack.c.bf16 %v4226_v25, %v4225_v60  ;;  %v4231_v60 = vld [vmem:[%s10719_s2 + $0x2c0] sm:$0xff]  ;;  %v4232_v25 = vld [vmem:[%s10719_s2 + $0x2c8] sm:$0xff]  ;;  %vm11421_vm9 = vmmov %vm11420_vm4 }
 0x37a   :  { %v4107_v52 = vmax.f32 %v4075_v17, %v4095_v46  ;;  %v4108_v63 = vmax.f32 %v4076_v15, %v4096_v58  ;;  %v4128_v17 = vsel %vm11408_vm12, %v7034_v2, %v10921_v27  ;;  %v4211_v46 = vld [vmem:[%s10719_s2 + $0x220] sm:$0xff]  ;;  %v4212_v58 = vld [vmem:[%s10719_s2 + $0x228] sm:$0xff]  ;;  %v11412_v27 = vunpack.i.l.bf16 %v10242_v14  ;;  %v4222_v14 = vld [vmem:[%s10719_s2 + $0x278] sm:$0xff] }
 0x37b   :  { %v4125_v28 = vsel %vm11405_vm8, %v7030_v31, %v6945_v0  ;;  %v4127_v42 = vsel %vm11406_vm10, %v7029_v6, %v7034_v2  ;;  %v4126_v30 = vsel %vm11407_vm11, %v6945_v0, %v7029_v6  ;;  %v4227_v0 = vld [vmem:[%s10719_s2 + $0x2a0] sm:$0xff]  ;;  %v10424_v2 = vpack.c.bf16 %v4210_v9, %v4209_v35  ;;  %v4217_v35 = vld [vmem:[%s10719_s2 + $0x250] sm:$0xff]  ;;  %v4218_v9 = vld [vmem:[%s10719_s2 + $0x258] sm:$0xff] }
 0x37c   :  { %v4137_v8 = vmax.f32 %v4105_v55, %v4125_v28  ;;  %v4139_v15 = vmax.f32 %v4107_v52, %v4127_v42  ;;  %v4138_v37 = vmax.f32 %v4106_v49, %v4126_v30  ;;  %v4140_v24 = vmax.f32 %v4108_v63, %v4128_v17  ;;  %v4230_v55 = vld [vmem:[%s10719_s2 + $0x2b8] sm:$0xff]  ;;  %v4213_v49 = vld [vmem:[%s10719_s2 + $0x230] sm:$0xff]  ;;  %v4215_v28 = vld [vmem:[%s10719_s2 + $0x240] sm:$0xff] }
 0x37d   :  { %v10429_v47 = vpack.c.bf16 %v4228_v48, %v4227_v0  ;;  %v7000_v52 = vunpack.i.h.bf16 %v10323_v51  ;;  %v10456_v63 = vpack.c.bf16 %v4212_v58, %v4211_v46  ;;  %v11409_v42 = vunpack.i.l.bf16 %v10233_v56  ;;  %v4234_v56 = vld [vmem:[%s10719_s2 + $0x2d8] sm:$0xff]  ;;  %v4235_v0 = vld [vmem:[%s10719_s2 + $0x2e0] sm:$0xff]  ;;  %vm11422_vm2 = vmmov %vm11420_vm4 }
 0x37e   :  { %4303 = vmatprep.mubr.f32.mxu0 %v4138_v37  ;;  %4373 = vmatprep.mubr.f32.mxu1 %v4140_v24  ;;  %v10925_v17 = vunpack.i.h.bf16 %v10339_v57  ;;  %v11410_v48 = vunpack.i.l.bf16 %v10236_v45  ;;  %v10529_v19 = vpack.c.bf16 %v4232_v25, %v4231_v60  ;;  %v10544_v60 = vpack.c.bf16 %v4218_v9, %v4217_v35  ;;  %vm11425_vm5 = vmmov %vm11416_vm15 }
 0x37f   :  { %4304 = vmatmul.mubr.f32.vlgmr.msra.gmra.mrb[8].mxu0 %v4137_v8  ;;  %4374 = vmatmul.mubr.f32.vlgmr.msra.gmra.mrb[8].mxu1 %v4139_v15  ;;  %v4496_v30 = vsel %vm114_vm0, %v11409_v42, %v6985_v53  ;;  %v4216_v15 = vld [vmem:[%s10719_s2 + $0x248] sm:$0xff]  ;;  %vm11426_vm8 = vmmov %vm11424_vm7 }
 0x380   :  { %5771 = vmatpush3.bf16.msra.mxu0 %v10367_v21  ;;  %5803 = vmatpush3.bf16.msra.mxu1 %v9877_v1  ;;  %v4229_v1 = vld [vmem:[%s10719_s2 + $0x2b0] sm:$0xff]  ;;  %v4530_v46 = vsel %vm11411_vm13, %v11410_v48, %v7000_v52  ;;  %v4509_v42 = vmax.f32 %v9837_v3, %v4496_v30  ;;  %v4564_v44 = vsel %vm444_vm3, %v11412_v27, %v10925_v17  ;;  %vm11428_vm10 = vmmov %vm11425_vm5 }
 0x381   :  { %5773 = vmatprep.subr.bf16.mxu0 %v10409_v41  ;;  %5805 = vmatprep.subr.bf16.mxu1 %v9901_v13  ;;  %v4214_v13 = vld [vmem:[%s10719_s2 + $0x238] sm:$0xff]  ;;  %v10475_v8 = vpack.c.bf16 %v4230_v55, %v4229_v1  ;;  %v4236_v1 = vld [vmem:[%s10719_s2 + $0x2e8] sm:$0xff]  ;;  %v4219_v55 = vld [vmem:[%s10719_s2 + $0x260] sm:$0xff]  ;;  %v10531_v3 = vpack.c.bf16 %v4216_v15, %v4215_v28  ;;  %v11413_v15 = vunpack.i.l.bf16 %v10250_v61 }
 0x382   :  { %v10438_v31 = vpop.permute.xlu1 %7047  ;;  %v10440_v6 = vpop.permute.xlu0 %7037  ;;  %v10517_v45 = vpack.c.bf16 %v4214_v13, %v4213_v49  ;;  %v4237_v48 = vld [vmem:[%s10719_s2 + $0x2f0] sm:$0xff]  ;;  %v4238_v13 = vld [vmem:[%s10719_s2 + $0x2f8] sm:$0xff]  ;;  %v4543_v27 = vmax.f32 %v4509_v42, %v4530_v46  ;;  %v10546_v25 = vpack.c.bf16 %v4236_v1, %v4235_v0  ;;  %vm11429_vm11 = vmmov %vm11425_vm5 }
 0x383   :  { %v7039_v58 = vunpack.i.l.bf16 %v10440_v6  ;;  %v10558_v35 = vpack.c.bf16 %v4238_v13, %v4237_v48  ;;  %v7049_v61 = vunpack.i.l.bf16 %v10438_v31  ;;  %v11415_v13 = vunpack.i.l.bf16 %v10269_v34  ;;  %vm11431_vm13 = vmmov %vm11424_vm7 }
 0x384   :  { %5775 = vmatpush3.bf16.msra.mxu0 %v10424_v2  ;;  %5807 = vmatpush3.bf16.msra.mxu1 %v9915_v7  ;;  %v4233_v7 = vld [vmem:[%s10719_s2 + $0x2d0] sm:$0xff]  ;;  %v4577_v42 = vmax.f32 %v4543_v27, %v4564_v44  ;;  %v7040_v44 = vunpack.i.h.bf16 %v10440_v6 }
 0x385   :  { %5777 = vmatprep.subr.bf16.mxu0 %v10429_v47  ;;  %5809 = vmatprep.subr.bf16.mxu1 %v9940_v43  ;;  %v4220_v43 = vld [vmem:[%s10719_s2 + $0x268] sm:$0xff]  ;;  %v10533_v49 = vpack.c.bf16 %v4234_v56, %v4233_v7  ;;  %v4611_v7 = vsel %vm11414_vm14, %v11413_v15, %v7039_v58  ;;  %vm11432_vm14 = vmmov %vm11424_vm7 }
 0x386   :  { %v10486_v37 = vpop.permute.xlu0 %7042  ;;  %v10488_v24 = vpop.permute.xlu1 %7062  ;;  %v10548_v28 = vpack.c.bf16 %v4220_v43, %v4219_v55  ;;  %v4625_v55 = vmax.f32 %v4577_v42, %v4611_v7 }
 0x387   :  { %v10926_v56 = vunpack.i.l.bf16 %v10486_v37  ;;  %v7065_v43 = vunpack.i.h.bf16 %v10488_v24  ;;  %v7045_v34 = vunpack.i.h.bf16 %v10486_v37 }
 0x388   :  { %5779 = vmatpush3.bf16.msra.mxu0 %v10456_v63  ;;  %5811 = vmatpush3.bf16.msra.mxu1 %v9954_v62  ;;  %v4221_v62 = vld [vmem:[%s10719_s2 + $0x270] sm:$0xff] }
 0x389   :  { %5781 = vmatprep.subr.bf16.mxu0 %v10475_v8  ;;  %5813 = vmatprep.subr.bf16.mxu1 %v9979_v39  ;;  %v10560_v9 = vpack.c.bf16 %v4222_v14, %v4221_v62  ;;  %v7050_v39 = vunpack.i.h.bf16 %v10438_v31 }
 0x38a   :  { %v7053_v30 = vpop.permute.xlu0 %7052 }
 0x38b   :  { %v7055_v20 = vunpack.i.h.bf16 %v7053_v30  ;;  %v7054_v17 = vunpack.i.l.bf16 %v7053_v30  ;;  %v7068_v46 = vpop.permute.xlu1 %7067 }
 0x38c   :  { %5783 = vmatpush3.bf16.msra.mxu0 %v10517_v45  ;;  %5815 = vmatpush3.bf16.msra.mxu1 %v9993_v16  ;;  %v7064_v16 = vunpack.i.l.bf16 %v10488_v24  ;;  %v7070_v15 = vunpack.i.h.bf16 %v7068_v46  ;;  %v7069_v7 = vunpack.i.l.bf16 %v7068_v46 }
 0x38d   :  { %v4497_v0 = vsel %vm114_vm0, %v6985_v53, %v7054_v17  ;;  %v4498_v1 = vsel %vm114_vm0, %v7054_v17, %v7055_v20  ;;  %5785 = vmatprep.subr.bf16.mxu0 %v10529_v19  ;;  %5817 = vmatprep.subr.bf16.mxu1 %v10019_v5  ;;  %v4645_v53 = vsel %vm11416_vm15, %v11415_v13, %v10926_v56  ;;  %vm11433_vm15 = vmmov %vm11408_vm12 }
 0x38e   :  { %v7058_v48 = vpop.permute.xlu0 %7057  ;;  %v4512_v17 = vmax.f32 %v10186_v23, %v7055_v20  ;;  %v4510_v5 = vmax.f32 %v9839_v29, %v4497_v0  ;;  %v4511_v30 = vmax.f32 %v10178_v11, %v4498_v1  ;;  %v11419_v29 = vunpack.i.h.bf16 %v10339_v57 }
 0x38f   :  { %v7060_v62 = vunpack.i.h.bf16 %v7058_v48  ;;  %v7059_v14 = vunpack.i.l.bf16 %v7058_v48  ;;  %v10580_v27 = vpop.permute.xlu1 %7072  ;;  %v4566_v46 = vsel %vm444_vm3, %v7064_v16, %v7065_v43  ;;  %v4659_v1 = vmax.f32 %v4625_v55, %v4645_v53 }
 0x390   :  { %5787 = vmatpush3.bf16.msra.mxu0 %v10531_v3  ;;  %5819 = vmatpush3.bf16.msra.mxu1 %v10033_v12  ;;  %v4565_v11 = vsel %vm444_vm3, %v11419_v29, %v7064_v16  ;;  %v4613_v16 = vsel %vm11422_vm2, %v7040_v44, %v7069_v7  ;;  %v7074_v55 = vunpack.i.l.bf16 %v10580_v27 }
 0x391   :  { %v4531_v23 = vsel %vm11417_vm1, %v7000_v52, %v7059_v14  ;;  %v4532_v20 = vsel %vm11418_vm6, %v7059_v14, %v7060_v62  ;;  %v4546_v24 = vmax.f32 %v4512_v17, %v7060_v62  ;;  %5789 = vmatprep.subr.bf16.mxu0 %v10533_v49  ;;  %5821 = vmatprep.subr.bf16.mxu1 %v10059_v40  ;;  %vm11437_vm1 = vmmov %vm11408_vm12 }
 0x392   :  { %v4544_v12 = vmax.f32 %v4510_v5, %v4531_v23  ;;  %v4545_v42 = vmax.f32 %v4511_v30, %v4532_v20  ;;  %v7078_v0 = vpop.permute.xlu0 %7077  ;;  %v4614_v17 = vsel %vm11420_vm4, %v7069_v7, %v7070_v15  ;;  %v4612_v40 = vsel %vm11421_vm9, %v7039_v58, %v7040_v44  ;;  %vm11438_vm6 = vmmov %vm11437_vm1 }
 0x393   :  { %v4580_v48 = vmax.f32 %v4546_v24, %v7065_v43  ;;  %v7080_v13 = vunpack.i.h.bf16 %v7078_v0  ;;  %v7079_v52 = vunpack.i.l.bf16 %v7078_v0  ;;  %v7093_v56 = vpop.permute.xlu1 %7092  ;;  %v11423_v43 = vunpack.i.l.bf16 %v10284_v33  ;;  %vm11446_vm9 = vmmov %vm11422_vm2 }
 0x394   :  { %v4578_v62 = vmax.f32 %v4544_v12, %v4565_v11  ;;  %v4579_v14 = vmax.f32 %v4545_v42, %v4566_v46  ;;  %5791 = vmatpush3.bf16.msra.mxu0 %v10544_v60  ;;  %5823 = vmatpush3.bf16.msra.mxu1 %v10073_v26  ;;  %v4680_v58 = vsel %vm11426_vm8, %v7049_v61, %v7050_v39  ;;  %v11427_v44 = vunpack.i.l.bf16 %v10486_v37 }
 0x395   :  { %v4628_v5 = vmax.f32 %v4580_v48, %v4614_v17  ;;  %5793 = vmatprep.subr.bf16.mxu0 %v10546_v25  ;;  %5825 = vmatprep.subr.bf16.mxu1 %v10099_v36  ;;  %v4679_v53 = vsel %vm11424_vm7, %v11423_v43, %v7049_v61  ;;  %v4648_v26 = vsel %vm11425_vm5, %v7079_v52, %v7080_v13  ;;  %v7075_v23 = vunpack.i.h.bf16 %v10580_v27 }
 0x396   :  { %v4626_v30 = vmax.f32 %v4578_v62, %v4612_v40  ;;  %v4627_v15 = vmax.f32 %v4579_v14, %v4613_v16  ;;  %v7083_v6 = vpop.permute.xlu0 %7082  ;;  %v4646_v7 = vsel %vm11428_vm10, %v11427_v44, %v7045_v34  ;;  %v4693_v20 = vmax.f32 %v4659_v1, %v4679_v53  ;;  %v11436_v14 = vld [vmem:[#allocation32_spill] sm:$0xff]  ;;  %vm11454_vm10 = vmmov %vm11437_vm1 }
 0x397   :  { %v7085_v36 = vunpack.i.h.bf16 %v7083_v6  ;;  %v4647_v24 = vsel %vm11429_vm11, %v7045_v34, %v7079_v52  ;;  %v7084_v29 = vunpack.i.l.bf16 %v7083_v6  ;;  %v11430_v11 = vunpack.i.l.bf16 %v10303_v38  ;;  %v7103_v42 = vpop.permute.xlu1 %7102  ;;  %vm11455_vm11 = vmmov %vm11437_vm1 }
 0x398   :  { %v4660_v33 = vmax.f32 %v4626_v30, %v4646_v7  ;;  %5795 = vmatpush3.bf16.msra.mxu0 %v10548_v28  ;;  %5827 = vmatpush3.bf16.msra.mxu1 %v10113_v4  ;;  %v4661_v46 = vmax.f32 %v4627_v15, %v4647_v24  ;;  %v4662_v37 = vmax.f32 %v4628_v5, %v4648_v26  ;;  %v7094_v12 = vunpack.i.l.bf16 %v7093_v56  ;;  %v11440_v7 = vld [vmem:[#allocation49_spill] sm:$0xff] }
 0x399   :  { %v4713_v61 = vsel %vm11408_vm12, %v11430_v11, %v7074_v55  ;;  %5797 = vmatprep.subr.bf16.mxu0 %v10558_v35  ;;  %5829 = vmatprep.subr.bf16.mxu1 %v10139_v22  ;;  %v7095_v0 = vunpack.i.h.bf16 %v7093_v56  ;;  %v4681_v34 = vsel %vm11431_vm13, %v7050_v39, %v7084_v29  ;;  %v4682_v4 = vsel %vm11432_vm14, %v7084_v29, %v7085_v36  ;;  %v11435_v39 = vld [vmem:[#allocation48_spill] sm:$0xff] }
 0x39a   :  { %v4694_v27 = vmax.f32 %v4660_v33, %v4680_v58  ;;  %v7088_v1 = vpop.permute.xlu0 %7087  ;;  %v4714_v38 = vsel %vm11433_vm15, %v7074_v55, %v7075_v23  ;;  %v4727_v48 = vmax.f32 %v4693_v20, %v4713_v61  ;;  %v11434_v22 = vunpack.i.l.bf16 %v10281_v59  ;;  %v11439_v58 = vld [vmem:[#allocation46_spill] sm:$0xff] }
 0x39b   :  { %v7090_v52 = vunpack.i.h.bf16 %v7088_v1  ;;  %v7089_v17 = vunpack.i.l.bf16 %v7088_v1  ;;  %v4695_v31 = vmax.f32 %v4661_v46, %v4681_v34  ;;  %v4696_v62 = vmax.f32 %v4662_v37, %v4682_v4  ;;  %v7113_v30 = vpop.permute.xlu1 %7112 }
 0x39c   :  { %v4728_v13 = vmax.f32 %v4694_v27, %v4714_v38  ;;  %5799 = vmatpush3.bf16.msra.mxu0 %v10560_v9  ;;  %5831 = vmatpush3.bf16.msra.mxu1 %v10153_v18  ;;  %v3937_v56 = vsel %vm114_vm0, %v11434_v22, %v7094_v12  ;;  %v3938_v40 = vsel %vm114_vm0, %v7094_v12, %v7095_v0  ;;  %v7105_v59 = vunpack.i.h.bf16 %v7103_v42 }
 0x39d   :  { %5833 = vmatprep.subr.bf16.mxu0 %v11435_v39  ;;  %5865 = vmatprep.subr.bf16.mxu1 %v11436_v14  ;;  %v4715_v16 = vsel %vm11437_vm1, %v7075_v23, %v7089_v17  ;;  %v4716_v5 = vsel %vm11438_vm6, %v7089_v17, %v7090_v52  ;;  %v7104_v15 = vunpack.i.l.bf16 %v7103_v42  ;;  %v3949_v44 = vmax.f32 %v11439_v58, %v3937_v56  ;;  %v3903_v23 = vld [vmem:[%s10720_s3] sm:$0xff] }
 0x39e   :  { %v7098_v55 = vpop.permute.xlu0 %7097  ;;  %v7131_v43 = vpack.i.bf16 %v4728_v13, %v4727_v48  ;;  %v4729_v53 = vmax.f32 %v4695_v31, %v4715_v16  ;;  %v4730_v18 = vmax.f32 %v4696_v62, %v4716_v5  ;;  %v3950_v36 = vmax.f32 %v11440_v7, %v3938_v40  ;;  %v11458_v7 = vld [vmem:[#allocation53_spill] sm:$0xff] }
 0x39f   :  { %v7100_v26 = vunpack.i.h.bf16 %v7098_v55  ;;  %v7099_v6 = vunpack.i.l.bf16 %v7098_v55  ;;  %v11441_v33 = vunpack.i.l.bf16 %v10323_v51  ;;  %vm11442_vm0 = vcmask 965632   ;;  %v3904_v51 = vld [vmem:[%s10721_s4] sm:$0xff]  ;;  %v7123_v1 = vpop.permute.xlu1 %7122 }
 0x3a0   :  { %7132 = vrot.lane.b32.xlu0 %v7131_v43, %s7174_s9  ;;  %v7136_v20 = vpack.i.bf16 %v4730_v18, %v4729_v53  ;;  %vm11443_vm4 = vmmov %vm11442_vm0  ;;  %v11444_v42 = vunpack.i.l.bf16 %v10339_v57  ;;  %v4002_v0 = vsel %vm444_vm3, %v7104_v15, %v7105_v59  ;;  %v7115_v34 = vunpack.i.h.bf16 %v7113_v30 }
 0x3a1   :  { %v3969_v24 = vsel %vm11442_vm0, %v11441_v33, %v7099_v6  ;;  %v3970_v29 = vsel %vm11443_vm4, %v7099_v6, %v7100_v26  ;;  %v7114_v4 = vunpack.i.l.bf16 %v7113_v30  ;;  %v11445_v13 = vunpack.i.h.bf16 %v10319_v10  ;;  %v11463_v33 = vld [vmem:[#allocation57_spill] sm:$0xff] }
 0x3a2   :  { %v7108_v11 = vpop.permute.xlu0 %7107  ;;  %v3981_v61 = vmax.f32 %v3949_v44, %v3969_v24  ;;  %v3982_v46 = vmax.f32 %v3950_v36, %v3970_v29  ;;  %7137 = vrot.lane.b32.xlu1 %v7136_v20, %s7174_s9  ;;  %v4001_v27 = vsel %vm444_vm3, %v11444_v42, %v7104_v15  ;;  %v11447_v39 = vunpack.i.h.bf16 %v10379_v32  ;;  %vm11448_vm3 = vmmov %vm11425_vm5  ;;  %v11456_v44 = vld [vmem:[#allocation51_spill] sm:$0xff]  ;;  %v11459_v36 = vld [vmem:[#allocation52_spill] sm:$0xff] }
 0x3a3   :  { %v7110_v37 = vunpack.i.h.bf16 %v7108_v11  ;;  %v7109_v12 = vunpack.i.l.bf16 %v7108_v11  ;;  %vm11449_vm7 = vmmov %vm11448_vm3  ;;  %v7125_v16 = vunpack.i.h.bf16 %v7123_v1  ;;  %v7124_v5 = vunpack.i.l.bf16 %v7123_v1  ;;  %v11460_v20 = vld [vmem:[#allocation56_spill] sm:$0xff]  ;;  %v11464_v24 = vld [vmem:[#allocation59_spill] sm:$0xff] }
 0x3a4   :  { %4451 = vperm.xlu0 %7141, %v3903_v23   ;;  %v4013_v38 = vmax.f32 %v3981_v61, %v4001_v27  ;;  %v4014_v48 = vmax.f32 %v3982_v46, %v4002_v0  ;;  %v4065_v14 = vsel %vm11448_vm3, %v11447_v39, %v7114_v4  ;;  %v4066_v40 = vsel %vm11449_vm7, %v7114_v4, %v7115_v34  ;;  %vm11451_vm5 = vmmov %vm11426_vm8  ;;  %v11461_v23 = vld [vmem:[#allocation55_spill] sm:$0xff]  ;;  %v11465_v29 = vld [vmem:[#allocation4_spill] sm:$0xff] }
 0x3a5   :  { %v4033_v52 = vsel %vm11446_vm9, %v11445_v13, %v7109_v12  ;;  %v4034_v57 = vsel %vm11422_vm2, %v7109_v12, %v7110_v37  ;;  %v11450_v10 = vunpack.i.h.bf16 %v10353_v54  ;;  %vm11452_vm8 = vmmov %vm11451_vm5  ;;  %v11453_v15 = vunpack.i.h.bf16 %v10377_v50  ;;  %v11457_v54 = vld [vmem:[#allocation50_spill] sm:$0xff]  ;;  %v11466_v11 = vld [vmem:[#allocation12_spill] sm:$0xff] }
 0x3a6   :  { %v7118_v17 = vpop.permute.xlu0 %7117  ;;  %v4045_v22 = vmax.f32 %v4013_v38, %v4033_v52  ;;  %v4046_v56 = vmax.f32 %v4014_v48, %v4034_v57  ;;  %4457 = vperm.xlu1 %7142, %v3904_v51   ;;  %v4130_v26 = vsel %vm11455_vm11, %v7124_v5, %v7125_v16  ;;  %v11462_v50 = vld [vmem:[#allocation58_spill] sm:$0xff]  ;;  %v11467_v61 = vld [vmem:[#allocation7_spill] sm:$0xff]  ;;  %v11468_v46 = vld [vmem:[#allocation20_spill] sm:$0xff]  ;;  %vm4848_vm12 = vcmask 195584  }
 0x3a7   :  { %v7120_v31 = vunpack.i.h.bf16 %v7118_v17  ;;  %v7119_v62 = vunpack.i.l.bf16 %v7118_v17  ;;  %v4129_v32 = vsel %vm11454_vm10, %v11453_v15, %v7124_v5  ;;  %v11469_v37 = vld [vmem:[#allocation17_spill] sm:$0xff]  ;;  %v11470_v12 = vld [vmem:[#allocation6_spill] sm:$0xff] }
 0x3a8   :  { %v4077_v55 = vmax.f32 %v4045_v22, %v4065_v14  ;;  %v4078_v18 = vmax.f32 %v4046_v56, %v4066_v40 }
 0x3a9   :  { %v4097_v43 = vsel %vm11451_vm5, %v11450_v10, %v7119_v62  ;;  %v4098_v53 = vsel %vm11452_vm8, %v7119_v62, %v7120_v31 }
 0x3aa   :  { %v4109_v30 = vmax.f32 %v4077_v55, %v4097_v43  ;;  %v4110_v59 = vmax.f32 %v4078_v18, %v4098_v53 }
 0x3ac   :  { %v4142_v6 = vmax.f32 %v4110_v59, %v4130_v26  ;;  %v4141_v58 = vmax.f32 %v4109_v30, %v4129_v32 }
 0x3ae   :  { %4443 = vmatprep.mubr.f32.mxu0 %v4142_v6 }
 0x3af   :  { %4444 = vmatmul.mubr.f32.vlgmr.msra.gmra.mrb[10].mxu0 %v4141_v58 }
 0x3b0   :  { %5835 = vmatpush3.bf16.msra.mxu0 %v11456_v44 }
 0x3b1   :  { %5837 = vmatprep.subr.bf16.mxu0 %v11457_v54 }
 0x3b4   :  { %5839 = vmatpush3.bf16.msra.mxu0 %v11458_v7 }
 0x3b5   :  { %5841 = vmatprep.subr.bf16.mxu0 %v11459_v36 }
 0x3b8   :  { %5843 = vmatpush3.bf16.msra.mxu0 %v11460_v20 }
 0x3b9   :  { %5845 = vmatprep.subr.bf16.mxu0 %v11461_v23 }
 0x3bc   :  { %5847 = vmatpush3.bf16.msra.mxu0 %v11462_v50 }
 0x3bd   :  { %5849 = vmatprep.subr.bf16.mxu0 %v11463_v33 }
 0x3c0   :  { %5851 = vmatpush3.bf16.msra.mxu0 %v11464_v24 }
 0x3c1   :  { %5853 = vmatprep.subr.bf16.mxu0 %v11465_v29 }
 0x3c4   :  { %5855 = vmatpush3.bf16.msra.mxu0 %v11466_v11 }
 0x3c5   :  { %5857 = vmatprep.subr.bf16.mxu0 %v11467_v61 }
 0x3c8   :  { %5859 = vmatpush3.bf16.msra.mxu0 %v11468_v46 }
 0x3c9   :  { %5861 = vmatprep.subr.bf16.mxu0 %v11469_v37 }
 0x3cc   :  { %5863 = vmatpush3.bf16.msra.mxu0 %v11470_v12 }
 0x3d4   :  { %v4835_v34 = vpop.permute.xlu1 %4834 }
 0x3de   :  { %v7128_v42 = vpop.permute.xlu0 %7127 }
 0x3df   :  { %v7130_v27 = vunpack.i.h.bf16 %v7128_v42  ;;  %v7129_v0 = vunpack.i.l.bf16 %v7128_v42 }
 0x3e1   :  { %v4850_v4 = vsel %vm4848_vm12, %v7129_v0, %v7130_v27  ;;  %v4849_v51 = vsel %vm4848_vm12, %v4835_v34, %v7129_v0 }
 0x3e2   :  { %4925 = vmatprep.mubr.f32.mxu1 %v4850_v4 }
 0x3e3   :  { %4926 = vmatmul.mubr.f32.vlgmr.msra.gmra.mrb[10].mxu1 %v4849_v51 }
 0x3e4   :  { %5867 = vmatpush3.bf16.msra.mxu1 %v10367_v21 }
 0x3e5   :  { %5869 = vmatprep.subr.bf16.mxu1 %v10409_v41 }
 0x3e8   :  { %5871 = vmatpush3.bf16.msra.mxu1 %v10424_v2 }
 0x3e9   :  { %5873 = vmatprep.subr.bf16.mxu1 %v10429_v47 }
 0x3ec   :  { %5875 = vmatpush3.bf16.msra.mxu1 %v10456_v63 }
 0x3ed   :  { %5877 = vmatprep.subr.bf16.mxu1 %v10475_v8 }
 0x3f0   :  { %5879 = vmatpush3.bf16.msra.mxu1 %v10517_v45 }
 0x3f1   :  { %5881 = vmatprep.subr.bf16.mxu1 %v10529_v19 }
 0x3f4   :  { %5883 = vmatpush3.bf16.msra.mxu1 %v10531_v3 }
 0x3f5   :  { %5885 = vmatprep.subr.bf16.mxu1 %v10533_v49 }
 0x3f8   :  { %5887 = vmatpush3.bf16.msra.mxu1 %v10544_v60 }
 0x3f9   :  { %5889 = vmatprep.subr.bf16.mxu1 %v10546_v25 }
 0x3fc   :  { %5891 = vmatpush3.bf16.msra.mxu1 %v10548_v28 }
 0x3fd   :  { %5893 = vmatprep.subr.bf16.mxu1 %v10558_v35 }
 0x400   :  { %5895 = vmatpush3.bf16.msra.mxu1 %v10560_v9 }
 0x412   :  { %v7133_v21 = vpop.permute.xlu0 %7132 }
 0x413   :  { %v7135_v41 = vunpack.i.h.bf16 %v7133_v21  ;;  %v7134_v2 = vunpack.i.l.bf16 %v7133_v21 }
 0x414   :  { %v7138_v47 = vpop.permute.xlu1 %7137 }
 0x415   :  { %v4852_v19 = vsel %vm4848_vm12, %v7134_v2, %v7135_v41  ;;  %v4851_v63 = vsel %vm4848_vm12, %v7130_v27, %v7134_v2  ;;  %v7140_v8 = vunpack.i.h.bf16 %v7138_v47  ;;  %v7139_v45 = vunpack.i.l.bf16 %v7138_v47 }
 0x416   :  { %4995 = vmatprep.mubr.f32.mxu0 %v4852_v19 }
 0x417   :  { %4996 = vmatmul.mubr.f32.vlgmr.msra.gmra.mrb[12].mxu0 %v4851_v63  ;;  %v4854_v3 = vsel %vm4848_vm12, %v7139_v45, %v7140_v8  ;;  %v4853_v49 = vsel %vm4848_vm12, %v7135_v41, %v7139_v45 }
 0x418   :  { %5065 = vmatprep.mubr.f32.mxu1 %v4854_v3 }
 0x419   :  { %5066 = vmatmul.mubr.f32.vlgmr.msra.gmra.mrb[12].mxu1 %v4853_v49 }
 0x423   :  { %v4452_v57 = vpop.permute.xlu0 %4451 }
 0x425   :  { %v4458_v22 = vpop.permute.xlu1 %4457 }
 0x452   :  { %v5123_v60 = vpop.f32.mrb[8].mxu0  ;;  %v5158_v25 = vpop.f32.mrb[8].mxu1 }
 0x453   :  { %v5124_v28 = vpop.f32.mrb[9].mxu0  ;;  %v5159_v35 = vpop.f32.mrb[9].mxu1 }
 0x454   :  { %v5125_v9 = vadd.f32 %v5124_v28, %v5123_v60  ;;  %v5160_v1 = vadd.f32 %v5159_v35, %v5158_v25 }
 0x456   :  { %v4376_v38 = vadd.f32 %v5160_v1, %v5125_v9 }
 0x482   :  { %v5193_v48 = vpop.f32.mrb[10].mxu0 }
 0x483   :  { %v5194_v13 = vpop.f32.mrb[11].mxu0 }
 0x484   :  { %v5195_v52 = vadd.f32 %v5194_v13, %v5193_v48 }
 0x486   :  { %v4446_v17 = vadd.f32 %v5195_v52, %v4376_v38 }
 0x488   :  { %v4454_v56 = vmul.f32 %v4452_v57, %v4446_v17 }
 0x48a   :  { %v4460_v31 = vadd.f32 %v4458_v22, %v4454_v56 }
 0x48c   :  { %vm4461_vm13 = vcmp.ge.f32.partialorder %v4460_v31, 0.0  ;;  %v4462_v62 = vmul.f32 0.01, %v4460_v31 }
 0x48e   :  { %v4463_v39 = vsel %vm4461_vm13, %v4460_v31, %v4462_v62 }
 0x48f   :  { %4464 = vst [vmem:[%s10722_s5] sm:$0xff] %v4463_v39 }
 0x4b6   :  { %v5228_v14 = vpop.f32.mrb[10].mxu1 }
 0x4b7   :  { %v5229_v40 = vpop.f32.mrb[11].mxu1 }
 0x4b8   :  { %v5230_v16 = vadd.f32 %v5229_v40, %v5228_v14 }
 0x4ea   :  { %v5263_v5 = vpop.f32.mrb[12].mxu0 }
 0x4eb   :  { %v5264_v55 = vpop.f32.mrb[13].mxu0 }
 0x4ec   :  { %v5265_v10 = vadd.f32 %v5264_v55, %v5263_v5  ;;  %v5298_v43 = vpop.f32.mrb[12].mxu1 }
 0x4ed   :  { %v5299_v18 = vpop.f32.mrb[13].mxu1 }
 0x4ee   :  { %v4998_v53 = vadd.f32 %v5265_v10, %v5230_v16  ;;  %v5300_v30 = vadd.f32 %v5299_v18, %v5298_v43 }
 0x4f0   :  { %v5068_v59 = vadd.f32 %v5300_v30, %v4998_v53 }
 0x4f2   :  { %v5071_v15 = vmul.f32 %v5068_v59, %v4452_v57 }
 0x4f4   :  { %v5072_v32 = vadd.f32 %v5071_v15, %v4458_v22 }
 0x4f6   :  { %vm5073_vm14 = vcmp.ge.f32.partialorder %v5072_v32, 0.0  ;;  %v5074_v26 = vmul.f32 0.01, %v5072_v32 }
 0x4f8   :  { %v5075_v6 = vsel %vm5073_vm14, %v5072_v32, %v5074_v26 }
 0x4f9   :  { %5090 = vst [vmem:[%s10722_s5 + $0x8] sm:$0xff] %v5075_v6 }

</bundles_post_ra>
